<compile_context>
chip_gen: v5e
topology: v5e:2x2
jax: 0.10.0
libtpu: 0.0.40
codegen_flags: <defaults>
</compile_context>

<pallas_src>
import functools

import jax
import jax.numpy as jnp
from jax import lax
from jax.experimental import pallas as pl
from jax.experimental.pallas import tpu as pltpu


def _pick_tile(n2, requested):
    """Largest tile in {256, 128} dividing 2n, else the full extent."""
    if requested is not None:
        t = min(int(requested), n2)
        assert n2 % t == 0, "2n must be divisible by the requested tile size"
        return t
    for t in (256, 128):
        if n2 % t == 0:
            return t
    return n2  # single full-extent block (always a legal BlockSpec)


# ----------------------------------------------------------------------------
# Pallas kernel: one (TM, TN) tile of the pairwise matrix per grid step.
# ----------------------------------------------------------------------------
def mmd_au_tile_kernel(kernels, n, tm, tn,
                       coef_ref, zr_ref, zc_ref, zmr_ref,
                       sqr_ref, sqc_ref, mzr_ref, mzc_ref,
                       part_ref, acc_ref):
    """Static args: kernels (tuple of names), n (half size), tm, tn.

    coef_ref : (n_b,)      f32 SMEM  exponent coefficients (-1/bw or -1/bw^2)
    zr_ref   : (TM, d)     f32 VMEM  row block of Z
    zc_ref   : (TN, d)     f32 VMEM  col block of Z
    zmr_ref  : (TM, d)     f32 VMEM  row block of Z @ M_sym
    sqr_ref  : (TM, 1)     f32 VMEM  row block of ||z_i||^2
    sqc_ref  : (1, TN)     f32 VMEM  col block of ||z_j||^2
    mzr_ref  : (TM, 1)     f32 VMEM  row block of z_i^T M z_i
    mzc_ref  : (1, TN)     f32 VMEM  col block of z_j^T M z_j
    part_ref : (1, 8, 128) f32 VMEM  per-row-block partial sums (lane k = kernel k)
    acc_ref  : (n_b,)      f32 SMEM  scratch accumulator over the col sweep
    """
    i = pl.program_id(0)
    j = pl.program_id(1)
    nj = pl.num_programs(1)
    n_b = len(kernels)

    # Reset the accumulator at the start of each row-block's column sweep.
    @pl.when(j == 0)
    def _():
        for k in range(n_b):
            acc_ref[k] = jnp.float32(0.0)

    zr = zr_ref[...]                                             # (TM, d)
    zc = zc_ref[...]                                             # (TN, d)

    # --- Euclidean squared distances for this tile (cdist^2) -----------------
    # Transposed-RHS matmul: no explicit transpose of zc.
    g = lax.dot_general(zr, zc, (((1,), (1,)), ((), ())),
                        preferred_element_type=jnp.float32)      # (TM, TN)
    dist_sq = jnp.maximum(sqr_ref[...] + sqc_ref[...] - 2.0 * g, 0.0)

    need_lap = any(k == "laplacian" for k in kernels)
    need_mah = any(k == "mahalanobis" for k in kernels)

    if need_lap:
        dist = jnp.sqrt(dist_sq)                                 # one EUP pass/tile

    if need_mah:
        # Symmetric-M Mahalanobis: mz_r + mz_c - 2 * (Z M_sym) Z^T
        mg = lax.dot_general(zmr_ref[...], zc, (((1,), (1,)), ((), ())),
                             preferred_element_type=jnp.float32)
        m_dist = jnp.maximum(mzr_ref[...] + mzc_ref[...] - 2.0 * mg, 0.0)

    # --- signed weights + h-matrix exclusions, built ONCE per tile -----------
    # sum(h) = sum_{a,b} w_ab K_ab with w = s_a s_b, s = [+1]*n ++ [-1]*n,
    # and w = 0 on the main diagonal and on both cross diagonals (a = b +/- n).
    gr = i * tm + lax.broadcasted_iota(jnp.int32, (tm, tn), 0)   # global rows
    gc = j * tn + lax.broadcasted_iota(jnp.int32, (tm, tn), 1)   # global cols
    diff = gr - gc
    s = jnp.where((gr < n) == (gc < n), jnp.float32(1.0), jnp.float32(-1.0))
    excl = (diff == 0) | (diff == n) | (diff == -n)
    w = jnp.where(excl, jnp.float32(0.0), s)                     # (TM, TN)

    # --- per-kernel partial sums (statically unrolled) ------------------------
    for k, kname in enumerate(kernels):
        c = coef_ref[k]                       # scalar: -1/bw^2 (or -1/bw)
        if kname == "gaussian":
            D = dist_sq
        elif kname == "laplacian":
            D = dist
        elif kname == "mahalanobis":
            D = m_dist
        else:
            raise ValueError(f"Unknown kernel: {kname}")
        part = jnp.sum(jnp.exp(D * c) * w)    # scalar-coef mul: no divide on EUP
        acc_ref[k] = acc_ref[k] + part

    # Write this row-block's partials at the end of its column sweep.
    @pl.when(j == nj - 1)
    def _():
        sub = lax.broadcasted_iota(jnp.int32, (1, 8, 128), 1)
        lane = lax.broadcasted_iota(jnp.int32, (1, 8, 128), 2)
        out = jnp.zeros((1, 8, 128), jnp.float32)
        for k in range(n_b):
            out = jnp.where((sub == 0) & (lane == k), acc_ref[k], out)
        part_ref[...] = out


# ----------------------------------------------------------------------------
# Wrapper: Pallas version of MMD_AU.compute_U_stats() (no encoder, no n_per).
# ----------------------------------------------------------------------------
def compute_U_stats_pallas(X, Y, M_matrix, bandwidths, kernels,
                           tile_m=None, tile_n=None):
    n, d = X.shape
    assert Y.shape == (n, d)
    n2 = 2 * n
    n_b = len(kernels)
    assert n_b <= 128, "partial-sum lane packing supports up to 128 kernels"

    Z = jnp.concatenate([X, Y], axis=0).astype(jnp.float32)      # (2n, d)

    TM = _pick_tile(n2, tile_m)
    TN = _pick_tile(n2, tile_n)
    n_rb, n_cb = n2 // TM, n2 // TN

    # Per-kernel exponent coefficients (scalars -> no per-element divides).
    coef_list = []
    for kname, bw in zip(kernels, list(bandwidths)):
        bwf = jnp.asarray(bw, jnp.float32)
        if kname == "laplacian":
            coef_list.append(-1.0 / bwf)
        else:                                   # gaussian / mahalanobis: bw^2
            coef_list.append(-1.0 / (bwf * bwf))
    coef = jnp.stack(coef_list).astype(jnp.float32)

    # O(n d) / O(n d^2) layout plumbing (the O(n^2 d) / O(n^2) work is in-kernel).
    # Symmetrizing M is exactly Pdist2's  -xMy^T - (yMx^T)^T  term.
    M_sym = (0.5 * (M_matrix + M_matrix.T)).astype(jnp.float32)
    sq = jnp.sum(Z * Z, axis=1)                                  # (2n,)
    ZM = Z @ M_sym                                               # (2n, d)
    zMz = jnp.sum(ZM * Z, axis=1)                                # (2n,)
    sq_row, sq_col = sq.reshape(n2, 1), sq.reshape(1, n2)
    mz_row, mz_col = zMz.reshape(n2, 1), zMz.reshape(1, n2)

    kern = functools.partial(mmd_au_tile_kernel, tuple(kernels), n, TM, TN)

    partial = pl.pallas_call(
        kern,
        out_shape=jax.ShapeDtypeStruct((n_rb, 8, 128), jnp.float32),
        grid=(n_rb, n_cb),
        in_specs=[
            pl.BlockSpec(memory_space=pltpu.MemorySpace.SMEM),    # coef
            pl.BlockSpec((TM, d), lambda i, j: (i, 0)),           # Z  row block
            pl.BlockSpec((TN, d), lambda i, j: (j, 0)),           # Z  col block
            pl.BlockSpec((TM, d), lambda i, j: (i, 0)),           # ZM row block
            pl.BlockSpec((TM, 1), lambda i, j: (i, 0)),           # ||z||^2 row
            pl.BlockSpec((1, TN), lambda i, j: (0, j)),           # ||z||^2 col
            pl.BlockSpec((TM, 1), lambda i, j: (i, 0)),           # zMz row
            pl.BlockSpec((1, TN), lambda i, j: (0, j)),           # zMz col
        ],
        # Per-row-block partials: block index depends only on i, so the row
        # axis can be "parallel" (v7x megacore) while j is the reduction axis.
        out_specs=pl.BlockSpec((1, 8, 128), lambda i, j: (i, 0, 0)),
        scratch_shapes=[pltpu.SMEM((n_b,), jnp.float32)],
        compiler_params=pltpu.CompilerParams(
            dimension_semantics=("parallel", "arbitrary")),
    )(coef, Z, Z, ZM, sq_row, sq_col, mz_row, mz_col)

    inv_denom = 1.0 / float(n * (n - 1))
    U = partial[:, 0, :n_b].sum(axis=0) * inv_denom               # (n_b,)
    return U.reshape(n_b, 1)   # matches U.unsqueeze(1) in the reference


# ----------------------------------------------------------------------------
# Pure-JAX reference (mirrors the PyTorch semantics) for verification.
# ----------------------------------------------------------------------------
def _reference(X, Y, M, bandwidths, kernels):
    n = X.shape[0]
    Z = jnp.concatenate([X, Y], axis=0)
    sq = jnp.sum(Z * Z, axis=1, keepdims=True)
    G = Z @ Z.T
    dist_sq = jnp.maximum(sq + sq.T - 2.0 * G, 0.0)
    dist = jnp.sqrt(dist_sq)

    zM = Z @ M
    zMz = jnp.sum(zM * Z, axis=1, keepdims=True)
    ZMZt = zM @ Z.T
    m_dist = jnp.maximum(zMz + zMz.T - ZMZt - ZMZt.T, 0.0)

    def mmd_u(K):
        K_XX = K[:n, :n] - jnp.diag(jnp.diag(K[:n, :n]))
        K_YY = K[n:, n:] - jnp.diag(jnp.diag(K[n:, n:]))
        K_XY = K[:n, n:] - jnp.diag(jnp.diag(K[:n, n:]))
        h = K_XX + K_YY - K_XY - K_XY.T
        return jnp.sum(h) / (n * (n - 1))

    out = []
    for kname, bw in zip(kernels, bandwidths):
        if kname == "gaussian":
            K = jnp.exp(-dist_sq / (bw * bw))
        elif kname == "laplacian":
            K = jnp.exp(-dist / bw)
        else:  # mahalanobis
            K = jnp.exp(-m_dist / (bw * bw))
        out.append(mmd_u(K))
    return jnp.stack(out).reshape(-1, 1)


# ----------------------------------------------------------------------------
if __name__ == "__main__":
    key = jax.random.PRNGKey(0)
    n, d = 128, 32   # n samples per class, d features -> Z is (256, 32)

    kx, ky, km, _ = jax.random.split(key, 4)
    X = jax.random.normal(kx, (n, d), dtype=jnp.float32)
    Y = jax.random.normal(ky, (n, d), dtype=jnp.float32) + 0.25

    # Deterministic "parameters" of MMD_AU.__init__:
    # k_b_pair = [('gaussian', bw0), ('laplacian', bw1), ('mahalanobis', (bw2, M))]
    kernels = ["gaussian", "laplacian", "mahalanobis"]
    bandwidths = jnp.array([4.0, 2.0, 3.0], dtype=jnp.float32)
    A = jax.random.normal(km, (d, d), dtype=jnp.float32)
    M_matrix = (A @ A.T) / d + 0.1 * jnp.eye(d, dtype=jnp.float32)  # PSD M

    U_ref = _reference(X, Y, M_matrix, bandwidths, kernels)

    # 1) auto tile size (256 here -> single tile, grid (1,1))
    U_auto = compute_U_stats_pallas(X, Y, M_matrix, bandwidths, kernels)
    U_auto = jax.block_until_ready(U_auto)
    assert U_auto.shape == (len(kernels), 1)
    assert jnp.allclose(U_auto, U_ref, rtol=1e-4, atol=1e-5), (U_auto, U_ref)

    # 2) explicit 128 tiles -> grid (2, 2): exercises the multi-step
    #    row-parallel / column-reduction accumulation path.
    U_tiled = compute_U_stats_pallas(X, Y, M_matrix, bandwidths, kernels,
                                     tile_m=128, tile_n=128)
    U_tiled = jax.block_until_ready(U_tiled)
    assert jnp.allclose(U_tiled, U_ref, rtol=1e-4, atol=1e-5), (U_tiled, U_ref)

    print("KERNEL_OK")
</pallas_src>

<mosaic_0001>
module attributes {stable_mosaic.version = 11 : i64} {
  func.func @mmd_au_tile_kernel(%arg0: i32, %arg1: i32, %arg2: memref<3xf32, #tpu.memory_space<smem>>, %arg3: memref<256x32xf32, #tpu.memory_space<vmem>>, %arg4: memref<256x32xf32, #tpu.memory_space<vmem>>, %arg5: memref<256x32xf32, #tpu.memory_space<vmem>>, %arg6: memref<256x1xf32, #tpu.memory_space<vmem>>, %arg7: memref<1x256xf32, #tpu.memory_space<vmem>>, %arg8: memref<256x1xf32, #tpu.memory_space<vmem>>, %arg9: memref<1x256xf32, #tpu.memory_space<vmem>>, %arg10: memref<1x8x128xf32, #tpu.memory_space<vmem>>, %arg11: memref<3xf32, #tpu.memory_space<smem>>) attributes {dimension_semantics = [#tpu.dimension_semantics<parallel>, #tpu.dimension_semantics<arbitrary>], iteration_bounds = array<i64: 1, 1>, scalar_prefetch = 0 : i64, scratch_operands = 1 : i64, tpu.core_type = #tpu.core_type<tc>, window_params = [{transform_indices = @transform_0, window_bounds = array<i64: 3>}, {transform_indices = @transform_1, window_bounds = array<i64: 256, 32>}, {transform_indices = @transform_2, window_bounds = array<i64: 256, 32>}, {transform_indices = @transform_3, window_bounds = array<i64: 256, 32>}, {transform_indices = @transform_4, window_bounds = array<i64: 256, 1>}, {transform_indices = @transform_5, window_bounds = array<i64: 1, 256>}, {transform_indices = @transform_6, window_bounds = array<i64: 256, 1>}, {transform_indices = @transform_7, window_bounds = array<i64: 1, 256>}, {transform_indices = @transform_8, window_bounds = array<i64: 1, 8, 128>}]} {
    %c0_i32 = arith.constant 0 : i32
    %0 = arith.cmpi eq, %arg1, %c0_i32 : i32
    %1 = arith.extui %0 : i1 to i32
    %c0_i32_0 = arith.constant 0 : i32
    %2 = arith.cmpi ne, %1, %c0_i32_0 : i32
    scf.if %2 {
      %cst_39 = arith.constant 0.000000e+00 : f32
      %c0_40 = arith.constant 0 : index
      %96 = memref.load %arg11[%c0_40] : memref<3xf32, #tpu.memory_space<smem>>
      memref.store %cst_39, %arg11[%c0_40] : memref<3xf32, #tpu.memory_space<smem>>
      %cst_41 = arith.constant 0.000000e+00 : f32
      %c1_42 = arith.constant 1 : index
      %97 = memref.load %arg11[%c1_42] : memref<3xf32, #tpu.memory_space<smem>>
      memref.store %cst_41, %arg11[%c1_42] : memref<3xf32, #tpu.memory_space<smem>>
      %cst_43 = arith.constant 0.000000e+00 : f32
      %c2_44 = arith.constant 2 : index
      %98 = memref.load %arg11[%c2_44] : memref<3xf32, #tpu.memory_space<smem>>
      memref.store %cst_43, %arg11[%c2_44] : memref<3xf32, #tpu.memory_space<smem>>
    } else {
    }
    %c0 = arith.constant 0 : index
    %c0_1 = arith.constant 0 : index
    %3 = vector.load %arg3[%c0, %c0_1] : memref<256x32xf32, #tpu.memory_space<vmem>>, vector<256x32xf32>
    %c0_2 = arith.constant 0 : index
    %c0_3 = arith.constant 0 : index
    %4 = vector.load %arg4[%c0_2, %c0_3] : memref<256x32xf32, #tpu.memory_space<vmem>>, vector<256x32xf32>
    %cst = arith.constant dense<0.000000e+00> : vector<256x256xf32>
    %5 = tpu.matmul %3, %4, %cst {dimension_numbers = #tpu.dot_dimension_numbers<[1], [1], [0], [0], [0, 0, 1, 0], [], []>} : vector<256x32xf32>, vector<256x32xf32>, vector<256x256xf32> -> vector<256x256xf32>
    %c0_4 = arith.constant 0 : index
    %c0_5 = arith.constant 0 : index
    %6 = vector.load %arg6[%c0_4, %c0_5] : memref<256x1xf32, #tpu.memory_space<vmem>>, vector<256x1xf32>
    %c0_6 = arith.constant 0 : index
    %c0_7 = arith.constant 0 : index
    %7 = vector.load %arg7[%c0_6, %c0_7] : memref<1x256xf32, #tpu.memory_space<vmem>>, vector<1x256xf32>
    %8 = vector.broadcast %6 : vector<256x1xf32> to vector<256x256xf32>
    %9 = vector.broadcast %7 : vector<1x256xf32> to vector<256x256xf32>
    %10 = arith.addf %8, %9 : vector<256x256xf32>
    %cst_8 = arith.constant 2.000000e+00 : f32
    %11 = vector.broadcast %cst_8 : f32 to vector<256x256xf32>
    %12 = arith.mulf %11, %5 : vector<256x256xf32>
    %13 = arith.subf %10, %12 : vector<256x256xf32>
    %cst_9 = arith.constant 0.000000e+00 : f32
    %14 = vector.broadcast %cst_9 : f32 to vector<256x256xf32>
    %15 = arith.maximumf %13, %14 : vector<256x256xf32>
    %16 = math.sqrt %15 : vector<256x256xf32>
    %c0_10 = arith.constant 0 : index
    %c0_11 = arith.constant 0 : index
    %17 = vector.load %arg5[%c0_10, %c0_11] : memref<256x32xf32, #tpu.memory_space<vmem>>, vector<256x32xf32>
    %cst_12 = arith.constant dense<0.000000e+00> : vector<256x256xf32>
    %18 = tpu.matmul %17, %4, %cst_12 {dimension_numbers = #tpu.dot_dimension_numbers<[1], [1], [0], [0], [0, 0, 1, 0], [], []>} : vector<256x32xf32>, vector<256x32xf32>, vector<256x256xf32> -> vector<256x256xf32>
    %c0_13 = arith.constant 0 : index
    %c0_14 = arith.constant 0 : index
    %19 = vector.load %arg8[%c0_13, %c0_14] : memref<256x1xf32, #tpu.memory_space<vmem>>, vector<256x1xf32>
    %c0_15 = arith.constant 0 : index
    %c0_16 = arith.constant 0 : index
    %20 = vector.load %arg9[%c0_15, %c0_16] : memref<1x256xf32, #tpu.memory_space<vmem>>, vector<1x256xf32>
    %21 = vector.broadcast %19 : vector<256x1xf32> to vector<256x256xf32>
    %22 = vector.broadcast %20 : vector<1x256xf32> to vector<256x256xf32>
    %23 = arith.addf %21, %22 : vector<256x256xf32>
    %cst_17 = arith.constant 2.000000e+00 : f32
    %24 = vector.broadcast %cst_17 : f32 to vector<256x256xf32>
    %25 = arith.mulf %24, %18 : vector<256x256xf32>
    %26 = arith.subf %23, %25 : vector<256x256xf32>
    %cst_18 = arith.constant 0.000000e+00 : f32
    %27 = vector.broadcast %cst_18 : f32 to vector<256x256xf32>
    %28 = arith.maximumf %26, %27 : vector<256x256xf32>
    %c256_i32 = arith.constant 256 : i32
    %29 = arith.muli %arg0, %c256_i32 : i32
    %30 = tpu.iota {dimensions = array<i32: 0>} : vector<256x256xi32>
    %31 = vector.broadcast %29 : i32 to vector<256x256xi32>
    %32 = arith.addi %31, %30 : vector<256x256xi32>
    %c256_i32_19 = arith.constant 256 : i32
    %33 = arith.muli %arg1, %c256_i32_19 : i32
    %34 = tpu.iota {dimensions = array<i32: 1>} : vector<256x256xi32>
    %35 = vector.broadcast %33 : i32 to vector<256x256xi32>
    %36 = arith.addi %35, %34 : vector<256x256xi32>
    %37 = arith.subi %32, %36 : vector<256x256xi32>
    %c128_i32 = arith.constant 128 : i32
    %38 = vector.broadcast %c128_i32 : i32 to vector<256x256xi32>
    %39 = arith.cmpi slt, %32, %38 : vector<256x256xi32>
    %c128_i32_20 = arith.constant 128 : i32
    %40 = vector.broadcast %c128_i32_20 : i32 to vector<256x256xi32>
    %41 = arith.cmpi slt, %36, %40 : vector<256x256xi32>
    %42 = arith.xori %39, %41 : vector<256x256xi1>
    %cst_21 = arith.constant dense<true> : vector<256x256xi1>
    %43 = arith.xori %42, %cst_21 : vector<256x256xi1>
    %cst_22 = arith.constant 1.000000e+00 : f32
    %cst_23 = arith.constant -1.000000e+00 : f32
    %44 = vector.broadcast %cst_22 : f32 to vector<256x256xf32>
    %45 = vector.broadcast %cst_23 : f32 to vector<256x256xf32>
    %46 = arith.select %43, %44, %45 : vector<256x256xi1>, vector<256x256xf32>
    %c0_i32_24 = arith.constant 0 : i32
    %47 = vector.broadcast %c0_i32_24 : i32 to vector<256x256xi32>
    %48 = arith.cmpi eq, %37, %47 : vector<256x256xi32>
    %c128_i32_25 = arith.constant 128 : i32
    %49 = vector.broadcast %c128_i32_25 : i32 to vector<256x256xi32>
    %50 = arith.cmpi eq, %37, %49 : vector<256x256xi32>
    %51 = arith.ori %48, %50 : vector<256x256xi1>
    %c-128_i32 = arith.constant -128 : i32
    %52 = vector.broadcast %c-128_i32 : i32 to vector<256x256xi32>
    %53 = arith.cmpi eq, %37, %52 : vector<256x256xi32>
    %54 = arith.ori %51, %53 : vector<256x256xi1>
    %cst_26 = arith.constant 0.000000e+00 : f32
    %55 = vector.broadcast %cst_26 : f32 to vector<256x256xf32>
    %56 = arith.select %54, %55, %46 : vector<256x256xi1>, vector<256x256xf32>
    %c0_27 = arith.constant 0 : index
    %57 = memref.load %arg2[%c0_27] : memref<3xf32, #tpu.memory_space<smem>>
    %58 = vector.broadcast %57 : f32 to vector<256x256xf32>
    %59 = arith.mulf %15, %58 : vector<256x256xf32>
    %60 = math.exp %59 : vector<256x256xf32>
    %61 = arith.mulf %60, %56 : vector<256x256xf32>
    %62 = vector.shape_cast %61 : vector<256x256xf32> to vector<1x256x256xf32>
    %cst_28 = arith.constant dense<0.000000e+00> : vector<1xf32>
    %63 = vector.multi_reduction <add>, %62, %cst_28 [1, 2] : vector<1x256x256xf32> to vector<1xf32>
    %64 = vector.shape_cast %63 : vector<1xf32> to vector<1x1x1xf32>
    %65 = vector.extract %64[0, 0, 0] : f32 from vector<1x1x1xf32>
    %c0_29 = arith.constant 0 : index
    %66 = memref.load %arg11[%c0_29] : memref<3xf32, #tpu.memory_space<smem>>
    %67 = arith.addf %66, %65 : f32
    %c0_30 = arith.constant 0 : index
    %68 = memref.load %arg11[%c0_30] : memref<3xf32, #tpu.memory_space<smem>>
    memref.store %67, %arg11[%c0_30] : memref<3xf32, #tpu.memory_space<smem>>
    %c1 = arith.constant 1 : index
    %69 = memref.load %arg2[%c1] : memref<3xf32, #tpu.memory_space<smem>>
    %70 = vector.broadcast %69 : f32 to vector<256x256xf32>
    %71 = arith.mulf %16, %70 : vector<256x256xf32>
    %72 = math.exp %71 : vector<256x256xf32>
    %73 = arith.mulf %72, %56 : vector<256x256xf32>
    %74 = vector.shape_cast %73 : vector<256x256xf32> to vector<1x256x256xf32>
    %cst_31 = arith.constant dense<0.000000e+00> : vector<1xf32>
    %75 = vector.multi_reduction <add>, %74, %cst_31 [1, 2] : vector<1x256x256xf32> to vector<1xf32>
    %76 = vector.shape_cast %75 : vector<1xf32> to vector<1x1x1xf32>
    %77 = vector.extract %76[0, 0, 0] : f32 from vector<1x1x1xf32>
    %c1_32 = arith.constant 1 : index
    %78 = memref.load %arg11[%c1_32] : memref<3xf32, #tpu.memory_space<smem>>
    %79 = arith.addf %78, %77 : f32
    %c1_33 = arith.constant 1 : index
    %80 = memref.load %arg11[%c1_33] : memref<3xf32, #tpu.memory_space<smem>>
    memref.store %79, %arg11[%c1_33] : memref<3xf32, #tpu.memory_space<smem>>
    %c2 = arith.constant 2 : index
    %81 = memref.load %arg2[%c2] : memref<3xf32, #tpu.memory_space<smem>>
    %82 = vector.broadcast %81 : f32 to vector<256x256xf32>
    %83 = arith.mulf %28, %82 : vector<256x256xf32>
    %84 = math.exp %83 : vector<256x256xf32>
    %85 = arith.mulf %84, %56 : vector<256x256xf32>
    %86 = vector.shape_cast %85 : vector<256x256xf32> to vector<1x256x256xf32>
    %cst_34 = arith.constant dense<0.000000e+00> : vector<1xf32>
    %87 = vector.multi_reduction <add>, %86, %cst_34 [1, 2] : vector<1x256x256xf32> to vector<1xf32>
    %88 = vector.shape_cast %87 : vector<1xf32> to vector<1x1x1xf32>
    %89 = vector.extract %88[0, 0, 0] : f32 from vector<1x1x1xf32>
    %c2_35 = arith.constant 2 : index
    %90 = memref.load %arg11[%c2_35] : memref<3xf32, #tpu.memory_space<smem>>
    %91 = arith.addf %90, %89 : f32
    %c2_36 = arith.constant 2 : index
    %92 = memref.load %arg11[%c2_36] : memref<3xf32, #tpu.memory_space<smem>>
    memref.store %91, %arg11[%c2_36] : memref<3xf32, #tpu.memory_space<smem>>
    %c0_i32_37 = arith.constant 0 : i32
    %93 = arith.cmpi eq, %arg1, %c0_i32_37 : i32
    %94 = arith.extui %93 : i1 to i32
    %c0_i32_38 = arith.constant 0 : i32
    %95 = arith.cmpi ne, %94, %c0_i32_38 : i32
    scf.if %95 {
      %96 = tpu.iota {dimensions = array<i32: 1>} : vector<1x8x128xi32>
      %97 = tpu.iota {dimensions = array<i32: 2>} : vector<1x8x128xi32>
      %cst_39 = arith.constant 0.000000e+00 : f32
      %98 = vector.broadcast %cst_39 : f32 to vector<1x8x128xf32>
      %c0_i32_40 = arith.constant 0 : i32
      %99 = vector.broadcast %c0_i32_40 : i32 to vector<1x8x128xi32>
      %100 = arith.cmpi eq, %96, %99 : vector<1x8x128xi32>
      %c0_i32_41 = arith.constant 0 : i32
      %101 = vector.broadcast %c0_i32_41 : i32 to vector<1x8x128xi32>
      %102 = arith.cmpi eq, %97, %101 : vector<1x8x128xi32>
      %103 = arith.andi %100, %102 : vector<1x8x128xi1>
      %c0_42 = arith.constant 0 : index
      %104 = memref.load %arg11[%c0_42] : memref<3xf32, #tpu.memory_space<smem>>
      %105 = vector.broadcast %104 : f32 to vector<1x8x128xf32>
      %106 = arith.select %103, %105, %98 : vector<1x8x128xi1>, vector<1x8x128xf32>
      %c0_i32_43 = arith.constant 0 : i32
      %107 = vector.broadcast %c0_i32_43 : i32 to vector<1x8x128xi32>
      %108 = arith.cmpi eq, %96, %107 : vector<1x8x128xi32>
      %c1_i32 = arith.constant 1 : i32
      %109 = vector.broadcast %c1_i32 : i32 to vector<1x8x128xi32>
      %110 = arith.cmpi eq, %97, %109 : vector<1x8x128xi32>
      %111 = arith.andi %108, %110 : vector<1x8x128xi1>
      %c1_44 = arith.constant 1 : index
      %112 = memref.load %arg11[%c1_44] : memref<3xf32, #tpu.memory_space<smem>>
      %113 = vector.broadcast %112 : f32 to vector<1x8x128xf32>
      %114 = arith.select %111, %113, %106 : vector<1x8x128xi1>, vector<1x8x128xf32>
      %c0_i32_45 = arith.constant 0 : i32
      %115 = vector.broadcast %c0_i32_45 : i32 to vector<1x8x128xi32>
      %116 = arith.cmpi eq, %96, %115 : vector<1x8x128xi32>
      %c2_i32 = arith.constant 2 : i32
      %117 = vector.broadcast %c2_i32 : i32 to vector<1x8x128xi32>
      %118 = arith.cmpi eq, %97, %117 : vector<1x8x128xi32>
      %119 = arith.andi %116, %118 : vector<1x8x128xi1>
      %c2_46 = arith.constant 2 : index
      %120 = memref.load %arg11[%c2_46] : memref<3xf32, #tpu.memory_space<smem>>
      %121 = vector.broadcast %120 : f32 to vector<1x8x128xf32>
      %122 = arith.select %119, %121, %114 : vector<1x8x128xi1>, vector<1x8x128xf32>
      %c0_47 = arith.constant 0 : index
      %c0_48 = arith.constant 0 : index
      %c0_49 = arith.constant 0 : index
      %123 = vector.load %arg10[%c0_47, %c0_48, %c0_49] : memref<1x8x128xf32, #tpu.memory_space<vmem>>, vector<1x8x128xf32>
      tpu.vector_store %arg10[%c0_47, %c0_48, %c0_49], %122 {strides = array<i32>} : memref<1x8x128xf32, #tpu.memory_space<vmem>>, vector<1x8x128xf32>,
    } else {
    }
    return
  }
  func.func @transform_0(%arg0: i32, %arg1: i32) -> i32 {
    %c0_i32 = arith.constant 0 : i32
    %c0_i32_0 = arith.constant 0 : i32
    return %c0_i32 : i32
  }
  func.func @transform_1(%arg0: i32, %arg1: i32) -> (i32, i32) {
    %c0_i32 = arith.constant 0 : i32
    %c0_i32_0 = arith.constant 0 : i32
    return %arg0, %c0_i32 : i32, i32
  }
  func.func @transform_2(%arg0: i32, %arg1: i32) -> (i32, i32) {
    %c0_i32 = arith.constant 0 : i32
    %c0_i32_0 = arith.constant 0 : i32
    return %arg1, %c0_i32 : i32, i32
  }
  func.func @transform_3(%arg0: i32, %arg1: i32) -> (i32, i32) {
    %c0_i32 = arith.constant 0 : i32
    %c0_i32_0 = arith.constant 0 : i32
    return %arg0, %c0_i32 : i32, i32
  }
  func.func @transform_4(%arg0: i32, %arg1: i32) -> (i32, i32) {
    %c0_i32 = arith.constant 0 : i32
    %c0_i32_0 = arith.constant 0 : i32
    return %arg0, %c0_i32 : i32, i32
  }
  func.func @transform_5(%arg0: i32, %arg1: i32) -> (i32, i32) {
    %c0_i32 = arith.constant 0 : i32
    %c0_i32_0 = arith.constant 0 : i32
    return %c0_i32, %arg1 : i32, i32
  }
  func.func @transform_6(%arg0: i32, %arg1: i32) -> (i32, i32) {
    %c0_i32 = arith.constant 0 : i32
    %c0_i32_0 = arith.constant 0 : i32
    return %arg0, %c0_i32 : i32, i32
  }
  func.func @transform_7(%arg0: i32, %arg1: i32) -> (i32, i32) {
    %c0_i32 = arith.constant 0 : i32
    %c0_i32_0 = arith.constant 0 : i32
    return %c0_i32, %arg1 : i32, i32
  }
  func.func @transform_8(%arg0: i32, %arg1: i32) -> (i32, i32, i32) {
    %c0_i32 = arith.constant 0 : i32
    %c0_i32_0 = arith.constant 0 : i32
    %c0_i32_1 = arith.constant 0 : i32
    return %arg0, %c0_i32, %c0_i32_0 : i32, i32, i32
  }
}

</mosaic_0001>

<bundles_post_ra>
// kernel: tpu_custom_call.1
= control target key start
LH: loop header
LB: loop body
LE: loop exit
PB: predicated region body
PF: predicated region fallthrough
CT: control target
= control target key end

     0   :  { %13 = vsyncpa [#allocation5], 0  ;;  %s8502_s0 = inlined_call_operand.vmem [shape: f32[3], index: 0, kind: input, shape index: {}]   ;;  %s8503_s1 = inlined_call_operand.vmem [shape: f32[256,32], index: 1, kind: input, shape index: {}]   ;;  %s8504_s2 = inlined_call_operand.vmem [shape: f32[256,32], index: 2, kind: input, shape index: {}]   ;;  %s8505_s3 = inlined_call_operand.vmem [shape: f32[256,32], index: 3, kind: input, shape index: {}]   ;;  %s8506_s4 = inlined_call_operand.vmem [shape: f32[256,1], index: 4, kind: input, shape index: {}]   ;;  %s8507_s5 = inlined_call_operand.vmem [shape: f32[1,256], index: 5, kind: input, shape index: {}]   ;;  %s8508_s6 = inlined_call_operand.vmem [shape: f32[256,1], index: 6, kind: input, shape index: {}]   ;;  %s8509_s7 = inlined_call_operand.vmem [shape: f32[1,256], index: 7, kind: input, shape index: {}]   ;;  %s8510_s8 = inlined_call_operand.hbm [shape: f32[1,8,128], index: 8, kind: output, shape index: {}]  }
   0x1   :  { %14 = vsyncpa [#allocation4], 0  ;;  %s20_s29 = sshll.u32 %s8502_s0, 4  ;;  %s5117_s30 = smov [#allocation3]   ;;  %s21_s29 = int_to_ptr.vmem [resolvable:$true] %s20_s29 }
   0x2   :  { %23 = dma.vmem_to_smem %s21_s29, 16, %s5117_s30, [#allocation5]  }
   0x3   :  { %5113 = dma.done.wait [#allocation5], 16  }
   0x4   :  { %5114 = vsyncadd [#allocation5], 4294967280 }
   0x5   :  { %42 = sfence }
   0x6   :  { %v100_v0 = vld [vmem:[%s8504_s2 + $0x78] sm:$0xff]  ;;  %vm117_vm0 = vcmask 261120   ;;  %v536_v2 = vld [vmem:[%s8506_s4] sm:$0xff]  ;;  %v5118_v3 = vmov 0   ;;  %v99_v4 = vld [vmem:[%s8504_s2 + $0x70] sm:$0xff]  ;;  %s5826_s30 = sld [smem:[#allocation3]] }
   0x7   :  { %v116_v1 = vld [vmem:[%s8504_s2 + $0xf8] sm:$0xff]  ;;  %4562 = vset.pattern.permute.xlu0 %v5118_v3  ;;  %4353 = vmatpush.xpose.msk.msra.mxu0 %vm117_vm0, %v100_v0  ;;  %v538_v5 = vld [vmem:[%s8506_s4 + $0x10] sm:$0xff]  ;;  %v98_v7 = vld [vmem:[%s8504_s2 + $0x68] sm:$0xff]  ;;  %s5940_s13 = sld [smem:[#allocation3 + $0x2]]  ;;  %s4343_s17 = sshll.u32 %s8510_s8, 4  ;;  %s4344_s17 = int_to_ptr.hbm [resolvable:$true] %s4343_s17 }
   0x8   :  { %4401 = vmatpush.xpose.msk.msra.mxu1 %vm117_vm0, %v116_v1  ;;  %4449 = vmatpush.xpose.msk.msra.mxu2 %vm117_vm0, %v100_v0  ;;  %v115_v6 = vld [vmem:[%s8504_s2 + $0xf0] sm:$0xff]  ;;  %v114_v8 = vld [vmem:[%s8504_s2 + $0xe8] sm:$0xff]  ;;  %v540_v10 = vld [vmem:[%s8506_s4 + $0x20] sm:$0xff]  ;;  %s5962_s14 = sld [smem:[#allocation3 + $0x1]] }
   0x9   :  { %4497 = vmatpush.xpose.msk.msra.mxu3 %vm117_vm0, %v116_v1  ;;  %571 = vperm.xlu0 %4562, %v536_v2   ;;  %v537_v9 = vld [vmem:[%s8506_s4 + $0x8] sm:$0xff]  ;;  %v97_v11 = vld [vmem:[%s8504_s2 + $0x60] sm:$0xff]  ;;  %v539_v12 = vld [vmem:[%s8506_s4 + $0x18] sm:$0xff] }
   0xa   :  { %4563 = vset.pattern.permute.xlu1 %v5118_v3  ;;  %4564 = vset.pattern.permute.xlu2 %v5118_v3  ;;  %v113_v13 = vld [vmem:[%s8504_s2 + $0xe0] sm:$0xff]  ;;  %v96_v14 = vld [vmem:[%s8504_s2 + $0x58] sm:$0xff]  ;;  %v542_v16 = vld [vmem:[%s8506_s4 + $0x30] sm:$0xff] }
   0xb   :  { %4354 = vmatpush.xpose.msk.msra.mxu0 %vm117_vm0, %v99_v4  ;;  %581 = vperm.xlu1 %4563, %v538_v5   ;;  %v112_v15 = vld [vmem:[%s8504_s2 + $0xd8] sm:$0xff]  ;;  %v541_v17 = vld [vmem:[%s8506_s4 + $0x28] sm:$0xff]  ;;  %v95_v18 = vld [vmem:[%s8504_s2 + $0x50] sm:$0xff] }
   0xc   :  { %4402 = vmatpush.xpose.msk.msra.mxu1 %vm117_vm0, %v115_v6  ;;  %4450 = vmatpush.xpose.msk.msra.mxu2 %vm117_vm0, %v99_v4  ;;  %v543_v19 = vld [vmem:[%s8506_s4 + $0x38] sm:$0xff]  ;;  %v111_v20 = vld [vmem:[%s8504_s2 + $0xd0] sm:$0xff]  ;;  %v94_v21 = vld [vmem:[%s8504_s2 + $0x48] sm:$0xff] }
   0xd   :  { %4498 = vmatpush.xpose.msk.msra.mxu3 %vm117_vm0, %v115_v6  ;;  %591 = vperm.xlu2 %4564, %v540_v10   ;;  %v110_v22 = vld [vmem:[%s8504_s2 + $0xc8] sm:$0xff]  ;;  %v544_v24 = vld [vmem:[%s8506_s4 + $0x40] sm:$0xff]  ;;  %v546_v26 = vld [vmem:[%s8506_s4 + $0x50] sm:$0xff] }
   0xe   :  { %v545_v23 = vld [vmem:[%s8506_s4 + $0x48] sm:$0xff]  ;;  %v93_v25 = vld [vmem:[%s8504_s2 + $0x40] sm:$0xff]  ;;  %v92_v28 = vld [vmem:[%s8504_s2 + $0x38] sm:$0xff] }
   0xf   :  { %4355 = vmatpush.xpose.msk.msra.mxu0 %vm117_vm0, %v98_v7  ;;  %v109_v27 = vld [vmem:[%s8504_s2 + $0xc0] sm:$0xff]  ;;  %v108_v29 = vld [vmem:[%s8504_s2 + $0xb8] sm:$0xff]  ;;  %v91_v32 = vld [vmem:[%s8504_s2 + $0x30] sm:$0xff] }
  0x10   :  { %4403 = vmatpush.xpose.msk.msra.mxu1 %vm117_vm0, %v114_v8  ;;  %4451 = vmatpush.xpose.msk.msra.mxu2 %vm117_vm0, %v98_v7  ;;  %v548_v30 = vld [vmem:[%s8506_s4 + $0x60] sm:$0xff]  ;;  %v547_v31 = vld [vmem:[%s8506_s4 + $0x58] sm:$0xff]  ;;  %v549_v33 = vld [vmem:[%s8506_s4 + $0x68] sm:$0xff] }
  0x11   :  { %4499 = vmatpush.xpose.msk.msra.mxu3 %vm117_vm0, %v114_v8  ;;  %576 = vperm.xlu0 %4562, %v537_v9   ;;  %v107_v34 = vld [vmem:[%s8504_s2 + $0xb0] sm:$0xff]  ;;  %v90_v35 = vld [vmem:[%s8504_s2 + $0x28] sm:$0xff]  ;;  %v551_v37 = vld [vmem:[%s8506_s4 + $0x78] sm:$0xff] }
  0x12   :  { %v106_v36 = vld [vmem:[%s8504_s2 + $0xa8] sm:$0xff]  ;;  %v550_v38 = vld [vmem:[%s8506_s4 + $0x70] sm:$0xff]  ;;  %v89_v39 = vld [vmem:[%s8504_s2 + $0x20] sm:$0xff] }
  0x13   :  { %4356 = vmatpush.xpose.msk.msra.mxu0 %vm117_vm0, %v97_v11  ;;  %586 = vperm.xlu1 %4563, %v539_v12   ;;  %v552_v40 = vld [vmem:[%s8506_s4 + $0x80] sm:$0xff]  ;;  %v88_v42 = vld [vmem:[%s8504_s2 + $0x18] sm:$0xff]  ;;  %v554_v44 = vld [vmem:[%s8506_s4 + $0x90] sm:$0xff] }
  0x14   :  { %4404 = vmatpush.xpose.msk.msra.mxu1 %vm117_vm0, %v113_v13  ;;  %4452 = vmatpush.xpose.msk.msra.mxu2 %vm117_vm0, %v97_v11  ;;  %v105_v41 = vld [vmem:[%s8504_s2 + $0xa0] sm:$0xff]  ;;  %v104_v43 = vld [vmem:[%s8504_s2 + $0x98] sm:$0xff]  ;;  %v553_v45 = vld [vmem:[%s8506_s4 + $0x88] sm:$0xff] }
  0x15   :  { %4500 = vmatpush.xpose.msk.msra.mxu3 %vm117_vm0, %v113_v13  ;;  %596 = vperm.xlu2 %4564, %v541_v17   ;;  %v87_v46 = vld [vmem:[%s8504_s2 + $0x10] sm:$0xff]  ;;  %v555_v47 = vld [vmem:[%s8506_s4 + $0x98] sm:$0xff]  ;;  %v86_v49 = vld [vmem:[%s8504_s2 + $0x8] sm:$0xff] }
  0x16   :  { %v103_v48 = vld [vmem:[%s8504_s2 + $0x90] sm:$0xff]  ;;  %v102_v50 = vld [vmem:[%s8504_s2 + $0x88] sm:$0xff]  ;;  %v2112_v52 = vld [vmem:[%s8508_s6] sm:$0xff] }
  0x17   :  { %4357 = vmatpush.xpose.msk.msra.mxu0 %vm117_vm0, %v96_v14  ;;  %v2113_v51 = vld [vmem:[%s8508_s6 + $0x8] sm:$0xff]  ;;  %v85_v53 = vld [vmem:[%s8504_s2] sm:$0xff]  ;;  %v2114_v54 = vld [vmem:[%s8508_s6 + $0x10] sm:$0xff] }
  0x18   :  { %4405 = vmatpush.xpose.msk.msra.mxu1 %vm117_vm0, %v112_v15  ;;  %4453 = vmatpush.xpose.msk.msra.mxu2 %vm117_vm0, %v96_v14  ;;  %v101_v55 = vld [vmem:[%s8504_s2 + $0x80] sm:$0xff]  ;;  %v2115_v59 = vld [vmem:[%s8508_s6 + $0x18] sm:$0xff]  ;;  %v2117_v60 = vld [vmem:[%s8508_s6 + $0x28] sm:$0xff] }
  0x19   :  { %4501 = vmatpush.xpose.msk.msra.mxu3 %vm117_vm0, %v112_v15  ;;  %601 = vperm.xlu0 %4562, %v542_v16   ;;  %v53_v56 = vld [vmem:[%s8503_s1] sm:$0xff]  ;;  %v54_v61 = vld [vmem:[%s8503_s1 + $0x8] sm:$0xff]  ;;  %v2119_v63 = vld [vmem:[%s8508_s6 + $0x38] sm:$0xff] }
  0x1a   :  { %v1758_v57 = vld [vmem:[%s8505_s3] sm:$0xff]  ;;  %v1759_v62 = vld [vmem:[%s8505_s3 + $0x8] sm:$0xff]  ;;  %v2118_v0 = vld [vmem:[%s8508_s6 + $0x30] sm:$0xff] }
  0x1b   :  { %4358 = vmatpush.xpose.msk.msra.mxu0 %vm117_vm0, %v95_v18  ;;  %606 = vperm.xlu1 %4563, %v543_v19   ;;  %v2116_v58 = vld [vmem:[%s8508_s6 + $0x20] sm:$0xff]  ;;  %v55_v2 = vld [vmem:[%s8503_s1 + $0x10] sm:$0xff]  ;;  %v2121_v5 = vld [vmem:[%s8508_s6 + $0x48] sm:$0xff] }
  0x1c   :  { %4406 = vmatpush.xpose.msk.msra.mxu1 %vm117_vm0, %v111_v20  ;;  %4454 = vmatpush.xpose.msk.msra.mxu2 %vm117_vm0, %v95_v18  ;;  %v2120_v1 = vld [vmem:[%s8508_s6 + $0x40] sm:$0xff]  ;;  %v1760_v3 = vld [vmem:[%s8505_s3 + $0x10] sm:$0xff]  ;;  %v2123_v6 = vld [vmem:[%s8508_s6 + $0x58] sm:$0xff] }
  0x1d   :  { %4502 = vmatpush.xpose.msk.msra.mxu3 %vm117_vm0, %v111_v20  ;;  %611 = vperm.xlu2 %4564, %v544_v24   ;;  %v2122_v4 = vld [vmem:[%s8508_s6 + $0x50] sm:$0xff]  ;;  %v56_v7 = vld [vmem:[%s8503_s1 + $0x18] sm:$0xff]  ;;  %v2125_v9 = vld [vmem:[%s8508_s6 + $0x68] sm:$0xff] }
  0x1e   :  { %v1761_v8 = vld [vmem:[%s8505_s3 + $0x18] sm:$0xff]  ;;  %v2124_v10 = vld [vmem:[%s8508_s6 + $0x60] sm:$0xff]  ;;  %v2126_v11 = vld [vmem:[%s8508_s6 + $0x70] sm:$0xff] }
  0x1f   :  { %4359 = vmatpush.xpose.msk.msra.mxu0 %vm117_vm0, %v94_v21  ;;  %v57_v12 = vld [vmem:[%s8503_s1 + $0x20] sm:$0xff]  ;;  %v2127_v14 = vld [vmem:[%s8508_s6 + $0x78] sm:$0xff]  ;;  %v557_v16 = vld [vmem:[%s8506_s4 + $0xa8] sm:$0xff] }
  0x20   :  { %4407 = vmatpush.xpose.msk.msra.mxu1 %vm117_vm0, %v110_v22  ;;  %4455 = vmatpush.xpose.msk.msra.mxu2 %vm117_vm0, %v94_v21  ;;  %v1762_v13 = vld [vmem:[%s8505_s3 + $0x20] sm:$0xff]  ;;  %v58_v17 = vld [vmem:[%s8503_s1 + $0x28] sm:$0xff]  ;;  %v558_v19 = vld [vmem:[%s8506_s4 + $0xb0] sm:$0xff] }
  0x21   :  { %4503 = vmatpush.xpose.msk.msra.mxu3 %vm117_vm0, %v110_v22  ;;  %616 = vperm.xlu0 %4562, %v545_v23   ;;  %v556_v15 = vld [vmem:[%s8506_s4 + $0xa0] sm:$0xff]  ;;  %v1763_v18 = vld [vmem:[%s8505_s3 + $0x28] sm:$0xff]  ;;  %v59_v22 = vld [vmem:[%s8503_s1 + $0x30] sm:$0xff] }
  0x22   :  { %v2128_v20 = vld [vmem:[%s8508_s6 + $0x80] sm:$0xff]  ;;  %v2129_v21 = vld [vmem:[%s8508_s6 + $0x88] sm:$0xff]  ;;  %v1764_v23 = vld [vmem:[%s8505_s3 + $0x30] sm:$0xff] }
  0x23   :  { %4360 = vmatpush.xpose.msk.msra.mxu0 %vm117_vm0, %v93_v25  ;;  %621 = vperm.xlu1 %4563, %v546_v26   ;;  %v2130_v24 = vld [vmem:[%s8508_s6 + $0x90] sm:$0xff]  ;;  %v560_v26 = vld [vmem:[%s8506_s4 + $0xc0] sm:$0xff] }
  0x24   :  { %4408 = vmatpush.xpose.msk.msra.mxu1 %vm117_vm0, %v109_v27  ;;  %4456 = vmatpush.xpose.msk.msra.mxu2 %vm117_vm0, %v93_v25  ;;  %v559_v25 = vld [vmem:[%s8506_s4 + $0xb8] sm:$0xff] }
  0x25   :  { %4504 = vmatpush.xpose.msk.msra.mxu3 %vm117_vm0, %v109_v27  ;;  %626 = vperm.xlu2 %4564, %v547_v31   ;;  %v60_v27 = vld [vmem:[%s8503_s1 + $0x38] sm:$0xff] }
  0x27   :  { %4361 = vmatpush.xpose.msk.msra.mxu0 %vm117_vm0, %v92_v28 }
  0x28   :  { %4409 = vmatpush.xpose.msk.msra.mxu1 %vm117_vm0, %v108_v29  ;;  %4457 = vmatpush.xpose.msk.msra.mxu2 %vm117_vm0, %v92_v28  ;;  %v1765_v28 = vld [vmem:[%s8505_s3 + $0x38] sm:$0xff] }
  0x29   :  { %4505 = vmatpush.xpose.msk.msra.mxu3 %vm117_vm0, %v108_v29  ;;  %631 = vperm.xlu0 %4562, %v548_v30   ;;  %v561_v29 = vld [vmem:[%s8506_s4 + $0xc8] sm:$0xff]  ;;  %v2131_v30 = vld [vmem:[%s8508_s6 + $0x98] sm:$0xff] }
  0x2b   :  { %4362 = vmatpush.xpose.msk.msra.mxu0 %vm117_vm0, %v91_v32  ;;  %636 = vperm.xlu1 %4563, %v549_v33  }
  0x2c   :  { %4410 = vmatpush.xpose.msk.msra.mxu1 %vm117_vm0, %v107_v34  ;;  %4458 = vmatpush.xpose.msk.msra.mxu2 %vm117_vm0, %v91_v32  ;;  %v2132_v32 = vld [vmem:[%s8508_s6 + $0xa0] sm:$0xff] }
  0x2d   :  { %4506 = vmatpush.xpose.msk.msra.mxu3 %vm117_vm0, %v107_v34  ;;  %641 = vperm.xlu2 %4564, %v550_v38   ;;  %v61_v34 = vld [vmem:[%s8503_s1 + $0x40] sm:$0xff]  ;;  %v562_v38 = vld [vmem:[%s8506_s4 + $0xd0] sm:$0xff] }
  0x2f   :  { %4363 = vmatpush.xpose.msk.msra.mxu0 %vm117_vm0, %v90_v35 }
  0x30   :  { %4411 = vmatpush.xpose.msk.msra.mxu1 %vm117_vm0, %v106_v36  ;;  %4459 = vmatpush.xpose.msk.msra.mxu2 %vm117_vm0, %v90_v35 }
  0x31   :  { %4507 = vmatpush.xpose.msk.msra.mxu3 %vm117_vm0, %v106_v36  ;;  %646 = vperm.xlu0 %4562, %v551_v37   ;;  %v1766_v36 = vld [vmem:[%s8505_s3 + $0x40] sm:$0xff]  ;;  %v2133_v37 = vld [vmem:[%s8508_s6 + $0xa8] sm:$0xff] }
  0x33   :  { %4364 = vmatpush.xpose.msk.msra.mxu0 %vm117_vm0, %v89_v39  ;;  %651 = vperm.xlu1 %4563, %v552_v40  }
  0x34   :  { %4412 = vmatpush.xpose.msk.msra.mxu1 %vm117_vm0, %v105_v41  ;;  %4460 = vmatpush.xpose.msk.msra.mxu2 %vm117_vm0, %v89_v39  ;;  %v563_v39 = vld [vmem:[%s8506_s4 + $0xd8] sm:$0xff] }
  0x35   :  { %4508 = vmatpush.xpose.msk.msra.mxu3 %vm117_vm0, %v105_v41  ;;  %656 = vperm.xlu2 %4564, %v553_v45   ;;  %v62_v41 = vld [vmem:[%s8503_s1 + $0x48] sm:$0xff]  ;;  %v564_v45 = vld [vmem:[%s8506_s4 + $0xe0] sm:$0xff] }
  0x37   :  { %4365 = vmatpush.xpose.msk.msra.mxu0 %vm117_vm0, %v88_v42 }
  0x38   :  { %4413 = vmatpush.xpose.msk.msra.mxu1 %vm117_vm0, %v104_v43  ;;  %4461 = vmatpush.xpose.msk.msra.mxu2 %vm117_vm0, %v88_v42  ;;  %v1767_v42 = vld [vmem:[%s8505_s3 + $0x48] sm:$0xff] }
  0x39   :  { %4509 = vmatpush.xpose.msk.msra.mxu3 %vm117_vm0, %v104_v43  ;;  %661 = vperm.xlu0 %4562, %v554_v44  }
  0x3b   :  { %4366 = vmatpush.xpose.msk.msra.mxu0 %vm117_vm0, %v87_v46  ;;  %666 = vperm.xlu1 %4563, %v555_v47   ;;  %v2135_v47 = vld [vmem:[%s8508_s6 + $0xb8] sm:$0xff] }
  0x3c   :  { %4414 = vmatpush.xpose.msk.msra.mxu1 %vm117_vm0, %v103_v48  ;;  %4462 = vmatpush.xpose.msk.msra.mxu2 %vm117_vm0, %v87_v46  ;;  %v2134_v46 = vld [vmem:[%s8508_s6 + $0xb0] sm:$0xff] }
  0x3d   :  { %4510 = vmatpush.xpose.msk.msra.mxu3 %vm117_vm0, %v103_v48  ;;  %2147 = vperm.xlu2 %4564, %v2112_v52   ;;  %v63_v48 = vld [vmem:[%s8503_s1 + $0x50] sm:$0xff] }
  0x3f   :  { %4367 = vmatpush.xpose.msk.msra.mxu0 %vm117_vm0, %v86_v49 }
  0x40   :  { %4415 = vmatpush.xpose.msk.msra.mxu1 %vm117_vm0, %v102_v50  ;;  %4463 = vmatpush.xpose.msk.msra.mxu2 %vm117_vm0, %v86_v49  ;;  %v1768_v49 = vld [vmem:[%s8505_s3 + $0x50] sm:$0xff] }
  0x41   :  { %4511 = vmatpush.xpose.msk.msra.mxu3 %vm117_vm0, %v102_v50  ;;  %2152 = vperm.xlu0 %4562, %v2113_v51   ;;  %v2136_v51 = vld [vmem:[%s8508_s6 + $0xc0] sm:$0xff] }
  0x43   :  { %4368 = vmatpush.xpose.msk.msra.mxu0 %vm117_vm0, %v85_v53  ;;  %2157 = vperm.xlu1 %4563, %v2114_v54  }
  0x44   :  { %4416 = vmatpush.xpose.msk.msra.mxu1 %vm117_vm0, %v101_v55  ;;  %4464 = vmatpush.xpose.msk.msra.mxu2 %vm117_vm0, %v85_v53  ;;  %v565_v53 = vld [vmem:[%s8506_s4 + $0xe8] sm:$0xff] }
  0x45   :  { %4512 = vmatpush.xpose.msk.msra.mxu3 %vm117_vm0, %v101_v55  ;;  %2162 = vperm.xlu2 %4564, %v2115_v59   ;;  %v566_v55 = vld [vmem:[%s8506_s4 + $0xf0] sm:$0xff]  ;;  %v567_v59 = vld [vmem:[%s8506_s4 + $0xf8] sm:$0xff] }
  0x46   :  { %4369 = vmatmul.msk.f32.vlgmr.msra.gmra.mxu0 %vm117_vm0, %v53_v56 }
  0x47   :  { %4417 = vmatmul.msk.f32.vlgmr.msra.gmra.mxu1 %vm117_vm0, %v53_v56  ;;  %4465 = vmatmul.msk.f32.vlgmr.msra.gmra.mxu2 %vm117_vm0, %v1758_v57  ;;  %v64_v56 = vld [vmem:[%s8503_s1 + $0x58] sm:$0xff] }
  0x48   :  { %4513 = vmatmul.msk.f32.vlgmr.msra.gmra.mxu3 %vm117_vm0, %v1758_v57  ;;  %v1769_v57 = vld [vmem:[%s8505_s3 + $0x58] sm:$0xff] }
  0x49   :  { %2167 = vperm.xlu0 %4562, %v2116_v58  }
  0x4b   :  { %2172 = vperm.xlu1 %4563, %v2117_v60   ;;  %v2137_v60 = vld [vmem:[%s8508_s6 + $0xc8] sm:$0xff] }
  0x4d   :  { %2177 = vperm.xlu2 %4564, %v2118_v0   ;;  %v65_v0 = vld [vmem:[%s8503_s1 + $0x60] sm:$0xff] }
  0x4e   :  { %4370 = vmatmul.msk.f32.gmra.mxu0 %vm117_vm0, %v54_v61 }
  0x4f   :  { %4418 = vmatmul.msk.f32.gmra.mxu1 %vm117_vm0, %v54_v61  ;;  %4466 = vmatmul.msk.f32.gmra.mxu2 %vm117_vm0, %v1759_v62  ;;  %v2138_v61 = vld [vmem:[%s8508_s6 + $0xd0] sm:$0xff] }
  0x50   :  { %4514 = vmatmul.msk.f32.gmra.mxu3 %vm117_vm0, %v1759_v62 }
  0x51   :  { %2182 = vperm.xlu0 %4562, %v2119_v63  }
  0x53   :  { %2187 = vperm.xlu1 %4563, %v2120_v1   ;;  %v1770_v1 = vld [vmem:[%s8505_s3 + $0x60] sm:$0xff] }
  0x55   :  { %2192 = vperm.xlu2 %4564, %v2121_v5   ;;  %v2141_v5 = vld [vmem:[%s8508_s6 + $0xe8] sm:$0xff] }
  0x56   :  { %4371 = vmatmul.msk.f32.gmra.mxu0 %vm117_vm0, %v55_v2 }
  0x57   :  { %4419 = vmatmul.msk.f32.gmra.mxu1 %vm117_vm0, %v55_v2  ;;  %4467 = vmatmul.msk.f32.gmra.mxu2 %vm117_vm0, %v1760_v3  ;;  %v2140_v2 = vld [vmem:[%s8508_s6 + $0xe0] sm:$0xff] }
  0x58   :  { %4515 = vmatmul.msk.f32.gmra.mxu3 %vm117_vm0, %v1760_v3  ;;  %v2139_v3 = vld [vmem:[%s8508_s6 + $0xd8] sm:$0xff] }
  0x59   :  { %2197 = vperm.xlu0 %4562, %v2122_v4  }
  0x5b   :  { %2202 = vperm.xlu1 %4563, %v2123_v6  }
  0x5d   :  { %2207 = vperm.xlu2 %4564, %v2124_v10   ;;  %v2143_v10 = vld [vmem:[%s8508_s6 + $0xf8] sm:$0xff] }
  0x5e   :  { %4372 = vmatmul.msk.f32.gmra.mxu0 %vm117_vm0, %v56_v7 }
  0x5f   :  { %4420 = vmatmul.msk.f32.gmra.mxu1 %vm117_vm0, %v56_v7  ;;  %4468 = vmatmul.msk.f32.gmra.mxu2 %vm117_vm0, %v1761_v8  ;;  %v66_v7 = vld [vmem:[%s8503_s1 + $0x68] sm:$0xff] }
  0x60   :  { %4516 = vmatmul.msk.f32.gmra.mxu3 %vm117_vm0, %v1761_v8 }
  0x61   :  { %2212 = vperm.xlu0 %4562, %v2125_v9   ;;  %v1771_v9 = vld [vmem:[%s8505_s3 + $0x68] sm:$0xff] }
  0x63   :  { %2217 = vperm.xlu1 %4563, %v2126_v11   ;;  %v2142_v11 = vld [vmem:[%s8508_s6 + $0xf0] sm:$0xff] }
  0x65   :  { %671 = vperm.xlu2 %4564, %v556_v15  }
  0x66   :  { %4373 = vmatmul.msk.f32.gmra.mxu0 %vm117_vm0, %v57_v12 }
  0x67   :  { %4421 = vmatmul.msk.f32.gmra.mxu1 %vm117_vm0, %v57_v12  ;;  %4469 = vmatmul.msk.f32.gmra.mxu2 %vm117_vm0, %v1762_v13  ;;  %v5548_v31 = vpop.permute.xlu2 %591 }
  0x68   :  { %4517 = vmatmul.msk.f32.gmra.mxu3 %vm117_vm0, %v1762_v13  ;;  %v67_v13 = vld [vmem:[%s8503_s1 + $0x70] sm:$0xff] }
  0x69   :  { %2222 = vperm.xlu0 %4562, %v2127_v14   ;;  %v1772_v14 = vld [vmem:[%s8505_s3 + $0x70] sm:$0xff] }
  0x6b   :  { %676 = vperm.xlu1 %4563, %v557_v16  }
  0x6d   :  { %2227 = vperm.xlu2 %4564, %v2128_v20   ;;  %v68_v20 = vld [vmem:[%s8503_s1 + $0x78] sm:$0xff] }
  0x6e   :  { %4374 = vmatmul.msk.f32.gmra.mxu0 %vm117_vm0, %v58_v17 }
  0x6f   :  { %4422 = vmatmul.msk.f32.gmra.mxu1 %vm117_vm0, %v58_v17  ;;  %4470 = vmatmul.msk.f32.gmra.mxu2 %vm117_vm0, %v1763_v18  ;;  %v5576_v40 = vpop.permute.xlu2 %596  ;;  %v568_v17 = vld [vmem:[%s8507_s5] sm:$0x3] }
  0x70   :  { %4518 = vmatmul.msk.f32.gmra.mxu3 %vm117_vm0, %v1763_v18  ;;  %v5707_v18 = vperm.slane %v568_v17, 0 }
  0x71   :  { %681 = vperm.xlu0 %4562, %v558_v19   ;;  %v5709_v19 = vperm.slane %v568_v17, 1 }
  0x72   :  { %8519 = vst [vmem:[#allocation9_spill] sm:$0xff] %v5707_v18 }
  0x73   :  { %2232 = vperm.xlu1 %4563, %v2129_v21   ;;  %8520 = vst [vmem:[#allocation10_spill] sm:$0xff] %v5709_v19 }
  0x75   :  { %686 = vperm.xlu2 %4564, %v559_v25   ;;  %v5727_v25 = vadd.f32 %v5707_v18, %v5576_v40 }
  0x76   :  { %4375 = vmatmul.msk.f32.gmra.mxu0 %vm117_vm0, %v59_v22 }
  0x77   :  { %4423 = vmatmul.msk.f32.gmra.mxu1 %vm117_vm0, %v59_v22  ;;  %4471 = vmatmul.msk.f32.gmra.mxu2 %vm117_vm0, %v1764_v23  ;;  %v5607_v50 = vpop.permute.xlu2 %611  ;;  %v1773_v22 = vld [vmem:[%s8505_s3 + $0x78] sm:$0xff] }
  0x78   :  { %4519 = vmatmul.msk.f32.gmra.mxu3 %vm117_vm0, %v1764_v23  ;;  %v5719_v23 = vadd.f32 %v5707_v18, %v5548_v31 }
  0x79   :  { %2237 = vperm.xlu0 %4562, %v2130_v24   ;;  %v5723_v24 = vadd.f32 %v5709_v19, %v5548_v31  ;;  %v2567_v31 = vlaneseq }
  0x7b   :  { %691 = vperm.xlu1 %4563, %v560_v26   ;;  %v5553_v33 = vpop.permute.xlu0 %571  ;;  %v5731_v26 = vadd.f32 %v5709_v19, %v5576_v40 }
  0x7d   :  { %2242 = vperm.xlu2 %4564, %v2131_v30   ;;  %v5558_v35 = vpop.permute.xlu1 %581 }
  0x7e   :  { %4376 = vmatmul.msk.f32.gmra.mxu0 %vm117_vm0, %v60_v27 }
  0x7f   :  { %4424 = vmatmul.msk.f32.gmra.mxu1 %vm117_vm0, %v60_v27  ;;  %4472 = vmatmul.msk.f32.gmra.mxu2 %vm117_vm0, %v1765_v28  ;;  %v5633_v58 = vpop.permute.xlu2 %626  ;;  %v734_v27 = vadd.f32 %v5707_v18, %v5553_v33 }
  0x80   :  { %4520 = vmatmul.msk.f32.gmra.mxu3 %vm117_vm0, %v1765_v28  ;;  %v735_v28 = vadd.f32 %v5709_v19, %v5553_v33  ;;  %v5756_v33 = vadd.f32 %v5709_v19, %v5558_v35  ;;  %v5779_v40 = vadd.f32 %v5709_v19, %v5633_v58 }
  0x81   :  { %696 = vperm.xlu0 %4562, %v561_v29   ;;  %v5740_v29 = vadd.f32 %v5707_v18, %v5607_v50 }
  0x82   :  { %8524 = vst [vmem:[#allocation14_spill] sm:$0xff] %v5779_v40 }
  0x83   :  { %2247 = vperm.xlu1 %4563, %v2132_v32   ;;  %v5584_v43 = vpop.permute.xlu0 %576  ;;  %8521 = vst [vmem:[#allocation11_spill] sm:$0xff] %v5740_v29 }
  0x84   :  { %v5748_v32 = vadd.f32 %v5707_v18, %v5584_v43 }
  0x85   :  { %701 = vperm.xlu2 %4564, %v562_v38   ;;  %v5586_v44 = vpop.permute.xlu1 %586  ;;  %v5767_v38 = vadd.f32 %v5709_v19, %v5584_v43 }
  0x86   :  { %4377 = vmatmul.msk.f32.gmra.mxu0 %vm117_vm0, %v61_v34 }
  0x87   :  { %4425 = vmatmul.msk.f32.gmra.mxu1 %vm117_vm0, %v61_v34  ;;  %4473 = vmatmul.msk.f32.gmra.mxu2 %vm117_vm0, %v1766_v36  ;;  %v642_v4 = vpop.permute.xlu2 %641  ;;  %v5752_v34 = vadd.f32 %v5707_v18, %v5558_v35  ;;  %v5775_v35 = vadd.f32 %v5707_v18, %v5633_v58 }
  0x88   :  { %4521 = vmatmul.msk.f32.gmra.mxu3 %vm117_vm0, %v1766_v36  ;;  %v5760_v36 = vadd.f32 %v5709_v19, %v5607_v50 }
  0x89   :  { %2252 = vperm.xlu0 %4562, %v2133_v37   ;;  %8523 = vst [vmem:[#allocation13_spill] sm:$0xff] %v5775_v35 }
  0x8a   :  { %8522 = vst [vmem:[#allocation12_spill] sm:$0xff] %v5760_v36 }
  0x8b   :  { %706 = vperm.xlu1 %4563, %v563_v39   ;;  %v5613_v52 = vpop.permute.xlu0 %601  ;;  %v5771_v39 = vadd.f32 %v5707_v18, %v5586_v44 }
  0x8c   :  { %v5790_v43 = vadd.f32 %v5709_v19, %v5613_v52 }
  0x8d   :  { %2257 = vperm.xlu2 %4564, %v2134_v46   ;;  %v5620_v54 = vpop.permute.xlu1 %606  ;;  %v5797_v46 = vadd.f32 %v5707_v18, %v642_v4 }
  0x8e   :  { %4378 = vmatmul.msk.f32.gmra.mxu0 %vm117_vm0, %v62_v41 }
  0x8f   :  { %4426 = vmatmul.msk.f32.gmra.mxu1 %vm117_vm0, %v62_v41  ;;  %4474 = vmatmul.msk.f32.gmra.mxu2 %vm117_vm0, %v1767_v42  ;;  %v657_v12 = vpop.permute.xlu2 %656  ;;  %v2144_v41 = vld [vmem:[%s8509_s7] sm:$0x3]  ;;  %8525 = vst [vmem:[#allocation15_spill] sm:$0xff] %v5797_v46 }
  0x90   :  { %4522 = vmatmul.msk.f32.gmra.mxu3 %vm117_vm0, %v1767_v42  ;;  %v5786_v42 = vadd.f32 %v5707_v18, %v5613_v52 }
  0x91   :  { %711 = vperm.xlu0 %4562, %v564_v45   ;;  %v5794_v45 = vadd.f32 %v5709_v19, %v5586_v44  ;;  %v69_v44 = vld [vmem:[%s8503_s1 + $0x80] sm:$0xff] }
  0x93   :  { %2262 = vperm.xlu1 %4563, %v2135_v47   ;;  %v5647_v62 = vpop.permute.xlu0 %616  ;;  %v5801_v47 = vadd.f32 %v5707_v18, %v5620_v54 }
  0x94   :  { %v5817_v52 = vadd.f32 %v5707_v18, %v5647_v62  ;;  %v5830_v58 = vadd.f32 %v5709_v19, %v5647_v62 }
  0x95   :  { %716 = vperm.xlu2 %4564, %v565_v53   ;;  %v5649_v63 = vpop.permute.xlu1 %621  ;;  %v5819_v53 = vperm.slane %v2144_v41, 0 }
  0x96   :  { %4379 = vmatmul.msk.f32.gmra.mxu0 %vm117_vm0, %v63_v48  ;;  %8528 = vst [vmem:[#allocation18_spill] sm:$0xff] %v5817_v52 }
  0x97   :  { %4427 = vmatmul.msk.f32.gmra.mxu1 %vm117_vm0, %v63_v48  ;;  %4475 = vmatmul.msk.f32.gmra.mxu2 %vm117_vm0, %v1768_v49  ;;  %v2148_v21 = vpop.permute.xlu2 %2147  ;;  %v5805_v48 = vadd.f32 %v5709_v19, %v5620_v54  ;;  %8529 = vst [vmem:[#allocation19_spill] sm:$0xff] %v5830_v58 }
  0x98   :  { %4523 = vmatmul.msk.f32.gmra.mxu3 %vm117_vm0, %v1768_v49  ;;  %v5808_v49 = vadd.f32 %v5709_v19, %v642_v4 }
  0x99   :  { %2267 = vperm.xlu0 %4562, %v2136_v51   ;;  %8526 = vst [vmem:[#allocation16_spill] sm:$0xff] %v5805_v48  ;;  %v5813_v51 = vand.u32 127, %v2567_v31 }
  0x9a   :  { %8527 = vst [vmem:[#allocation17_spill] sm:$0xff] %v5808_v49 }
  0x9b   :  { %721 = vperm.xlu1 %4563, %v566_v55   ;;  %v5670_v6 = vpop.permute.xlu0 %631  ;;  %v5821_v55 = vperm.slane %v2144_v41, 1 }
  0x9c   :  { %v5853_v4 = vadd.f32 %v5709_v19, %v5670_v6 }
  0x9d   :  { %2272 = vperm.xlu2 %4564, %v2137_v60   ;;  %v5675_v8 = vpop.permute.xlu1 %636  ;;  %v5836_v60 = vadd.f32 %v5709_v19, %v657_v12 }
  0x9e   :  { %4380 = vmatmul.msk.f32.gmra.mxu0 %vm117_vm0, %v64_v56  ;;  %8535 = vst [vmem:[#allocation25_spill] sm:$0xff] %v5853_v4 }
  0x9f   :  { %4428 = vmatmul.msk.f32.gmra.mxu1 %vm117_vm0, %v64_v56  ;;  %4476 = vmatmul.msk.f32.gmra.mxu2 %vm117_vm0, %v1769_v57  ;;  %8531 = vst [vmem:[#allocation21_spill] sm:$0xff] %v5836_v60  ;;  %v2163_v62 = vpop.permute.xlu2 %2162 }
  0xa0   :  { %4524 = vmatmul.msk.f32.gmra.mxu3 %vm117_vm0, %v1769_v57  ;;  %v1774_v57 = vld [vmem:[%s8505_s3 + $0x80] sm:$0xff] }
  0xa1   :  { %726 = vperm.xlu0 %4562, %v567_v59   ;;  %v5833_v59 = vadd.f32 %v5707_v18, %v657_v12 }
  0xa3   :  { %2277 = vperm.xlu1 %4563, %v2138_v61   ;;  %v5696_v15 = vpop.permute.xlu0 %646  ;;  %8530 = vst [vmem:[#allocation20_spill] sm:$0xff] %v5833_v59 }
  0xa4   :  { %v5877_v12 = vadd.f32 %v5707_v18, %v5696_v15 }
  0xa5   :  { %2282 = vperm.xlu2 %4564, %v2139_v3   ;;  %v5698_v16 = vpop.permute.xlu1 %651 }
  0xa6   :  { %4381 = vmatmul.msk.f32.gmra.mxu0 %vm117_vm0, %v65_v0  ;;  %8537 = vst [vmem:[#allocation27_spill] sm:$0xff] %v5877_v12 }
  0xa7   :  { %4429 = vmatmul.msk.f32.gmra.mxu1 %vm117_vm0, %v65_v0  ;;  %4477 = vmatmul.msk.f32.gmra.mxu2 %vm117_vm0, %v1770_v1  ;;  %v5840_v0 = vadd.f32 %v5707_v18, %v5670_v6  ;;  %v5870_v6 = vadd.f32 %v5821_v55, %v2148_v21 }
  0xa8   :  { %4525 = vmatmul.msk.f32.gmra.mxu3 %vm117_vm0, %v1770_v1  ;;  %v5844_v1 = vadd.f32 %v5707_v18, %v5649_v63 }
  0xa9   :  { %2287 = vperm.xlu0 %4562, %v2140_v2   ;;  %8532 = vst [vmem:[#allocation22_spill] sm:$0xff] %v5840_v0  ;;  %v5848_v2 = vadd.f32 %v5709_v19, %v5649_v63  ;;  %v5864_v63 = vadd.f32 %v5707_v18, %v5675_v8  ;;  %v6010_v0 = vstv %s5940_s13 }
  0xaa   :  { %8533 = vst [vmem:[#allocation23_spill] sm:$0xff] %v5844_v1 }
  0xab   :  { %2292 = vperm.xlu1 %4563, %v2141_v5   ;;  %v5742_v30 = vpop.permute.xlu0 %661  ;;  %8534 = vst [vmem:[#allocation24_spill] sm:$0xff] %v5848_v2  ;;  %v8552_v2 = vmov 1.0  }
  0xac   :  { %8536 = vst [vmem:[#allocation26_spill] sm:$0xff] %v5864_v63 }
  0xad   :  { %2297 = vperm.xlu2 %4564, %v2142_v11   ;;  %v5762_v37 = vpop.permute.xlu1 %666 }
  0xae   :  { %4382 = vmatmul.msk.f32.gmra.mxu0 %vm117_vm0, %v66_v7 }
  0xaf   :  { %4430 = vmatmul.msk.f32.gmra.mxu1 %vm117_vm0, %v66_v7  ;;  %4478 = vmatmul.msk.f32.gmra.mxu2 %vm117_vm0, %v1771_v9  ;;  %v5857_v7 = vshrl.u32 %v2567_v31, 7 }
  0xb0   :  { %4526 = vmatmul.msk.f32.gmra.mxu3 %vm117_vm0, %v1771_v9  ;;  %v5860_v9 = vadd.s32 128, %v5813_v51 }
  0xb1   :  { %2302 = vperm.xlu0 %4562, %v2143_v10   ;;  %v5867_v10 = vadd.f32 %v5819_v53, %v2148_v21  ;;  %v5891_v21 = vadd.f32 %v5707_v18, %v5698_v16  ;;  %v2640_v31 = vsub.s32 %v5857_v7, %v5813_v51 }
  0xb2   :  { %v2641_v41 = vsub.s32 %v5857_v7, %v5860_v9 }
  0xb3   :  { %v2153_v17 = vpop.permute.xlu0 %2152  ;;  %8540 = vst [vmem:[#allocation30_spill] sm:$0xff] %v5891_v21  ;;  %vm5946_vm1 = vcmp.eq.s32.totalorder %v2640_v31, 0 }
  0xb4   :  { %vm5950_vm2 = vcmp.eq.s32.totalorder %v2641_v41, 4294967168 }
  0xb6   :  { %4383 = vmatmul.msk.f32.gmra.mxu0 %vm117_vm0, %v67_v13 }
  0xb7   :  { %4431 = vmatmul.msk.f32.gmra.mxu1 %vm117_vm0, %v67_v13  ;;  %4479 = vmatmul.msk.f32.gmra.mxu2 %vm117_vm0, %v1772_v14  ;;  %v5881_v13 = vadd.f32 %v5709_v19, %v5696_v15 }
  0xb8   :  { %4527 = vmatmul.msk.f32.gmra.mxu3 %vm117_vm0, %v1772_v14  ;;  %v5885_v14 = vadd.f32 %v5709_v19, %v5675_v8  ;;  %v5902_v8 = vadd.f32 %v5709_v19, %v5698_v16  ;;  %v5918_v16 = vadd.f32 %v5709_v19, %v5742_v30 }
  0xb9   :  { %8538 = vst [vmem:[#allocation28_spill] sm:$0xff] %v5881_v13 }
  0xba   :  { %8539 = vst [vmem:[#allocation29_spill] sm:$0xff] %v5885_v14 }
  0xbb   :  { %8541 = vst [vmem:[#allocation31_spill] sm:$0xff] %v5902_v8  ;;  %v5944_v8 = vadd.s32 8, %v5857_v7 }
  0xbc   :  { %8543 = vst [vmem:[#allocation33_spill] sm:$0xff] %v5918_v16 }
  0xbe   :  { %4384 = vmatmul.msk.f32.gmra.mxu0 %vm117_vm0, %v68_v20 }
  0xbf   :  { %4432 = vmatmul.msk.f32.gmra.mxu1 %vm117_vm0, %v68_v20  ;;  %4480 = vmatmul.msk.f32.gmra.mxu2 %vm117_vm0, %v1773_v22 }
  0xc0   :  { %4528 = vmatmul.msk.f32.gmra.mxu3 %vm117_vm0, %v1773_v22  ;;  %v2158_v22 = vpop.permute.xlu1 %2157 }
  0xc3   :  { %v327_v50 = vpop.f32.mrf.mxu0 }
  0xc4   :  { %v798_v54 = vmul.f32 2.0, %v327_v50  ;;  %v440_v56 = vpop.f32.mrf.mxu1  ;;  %v70_v50 = vld [vmem:[%s8503_s1 + $0x88] sm:$0xff] }
  0xc5   :  { %v799_v61 = vmul.f32 2.0, %v440_v56  ;;  %v5925_v56 = vstv %s5826_s30 }
  0xc6   :  { %v862_v3 = vsub.f32 %v734_v27, %v798_v54  ;;  %4385 = vmatmul.msk.f32.gmra.mxu0 %vm117_vm0, %v69_v44  ;;  %v5894_v27 = vadd.f32 %v5819_v53, %v2163_v62  ;;  %v5922_v54 = vadd.f32 %v5707_v18, %v5762_v37 }
  0xc7   :  { %v863_v5 = vsub.f32 %v735_v28, %v799_v61  ;;  %4433 = vmatmul.msk.f32.gmra.mxu1 %vm117_vm0, %v69_v44  ;;  %4481 = vmatmul.msk.f32.gmra.mxu2 %vm117_vm0, %v1774_v57  ;;  %v5897_v28 = vadd.f32 %v5821_v55, %v2163_v62  ;;  %v5914_v44 = vadd.f32 %v5707_v18, %v5742_v30  ;;  %v1775_v62 = vld [vmem:[%s8505_s3 + $0x88] sm:$0xff] }
  0xc8   :  { %v5872_v11 = vmax.f32 %v862_v3, 0.0  ;;  %4529 = vmatmul.msk.f32.gmra.mxu3 %vm117_vm0, %v1774_v57  ;;  %8544 = vst [vmem:[#allocation34_spill] sm:$0xff] %v5922_v54  ;;  %v5931_v3 = vadd.f32 %v5819_v53, %v2153_v17  ;;  %v5938_v30 = vadd.f32 %v5709_v19, %v5762_v37 }
  0xc9   :  { %v5887_v20 = vmax.f32 %v863_v5, 0.0  ;;  %8542 = vst [vmem:[#allocation32_spill] sm:$0xff] %v5914_v44  ;;  %v5934_v5 = vadd.f32 %v5821_v55, %v2153_v17 }
  0xca   :  { %4565 = vrsqrt.f32 %v5872_v11  ;;  %v1903_v15 = vpop.f32.mrf.mxu2  ;;  %8545 = vst [vmem:[#allocation35_spill] sm:$0xff] %v5938_v30  ;;  %vm997_vm4 = vcmp.eq.f32.partialorder %v5872_v11, inf  ;;  %vm999_vm5 = vcmp.eq.f32.partialorder %v5872_v11, 0.0 }
  0xcb   :  { %4567 = vrsqrt.f32 %v5887_v20  ;;  %v330_v57 = vpop.f32.mrf.mxu0  ;;  %v2374_v16 = vmul.f32 2.0, %v1903_v15  ;;  %v2016_v54 = vpop.f32.mrf.mxu3  ;;  %v5957_v15 = vadd.f32 %v5819_v53, %v2158_v22  ;;  %vm1009_vm6 = vcmp.eq.f32.partialorder %v5887_v20, inf }
  0xcc   :  { %v443_v61 = vpop.f32.mrf.mxu1  ;;  %v2375_v44 = vmul.f32 2.0, %v2016_v54  ;;  %v800_v60 = vmul.f32 2.0, %v330_v57  ;;  %v5960_v54 = vadd.f32 %v5821_v55, %v2158_v22  ;;  %v2178_v57 = vpop.permute.xlu2 %2177  ;;  %vm1011_vm7 = vcmp.eq.f32.partialorder %v5887_v20, 0.0 }
  0xcd   :  { %v801_v59 = vmul.f32 2.0, %v443_v61  ;;  %v5969_v30 = vadd.f32 %v5819_v53, %v2178_v57  ;;  %v5972_v13 = vadd.f32 %v5821_v55, %v2178_v57  ;;  %v2438_v22 = vsub.f32 %v5867_v10, %v2374_v16 }
  0xce   :  { %4386 = vmatmul.msk.f32.gmra.mxu0 %vm117_vm0, %v70_v50  ;;  %v864_v31 = vsub.f32 %v5748_v32, %v800_v60  ;;  %v2439_v49 = vsub.f32 %v5870_v6, %v2375_v44  ;;  %v8511_v57 = vmov -1.0   ;;  %v71_v44 = vld [vmem:[%s8503_s1 + $0x90] sm:$0xff]  ;;  %v1012_v48 = vand.u32 2147483648, %v5887_v20 }
  0xcf   :  { %4434 = vmatmul.msk.f32.gmra.mxu1 %vm117_vm0, %v70_v50  ;;  %4482 = vmatmul.msk.f32.gmra.mxu2 %vm117_vm0, %v1775_v62  ;;  %v865_v41 = vsub.f32 %v5767_v38, %v801_v59  ;;  %v2642_v38 = vsub.s32 %v5944_v8, %v5813_v51  ;;  %v2168_v59 = vpop.permute.xlu0 %2167  ;;  %v5989_v10 = vsel %vm5950_vm2, 0.0, %v8511_v57  ;;  %v2502_v14 = vmax.f32 %v2438_v22, 0.0 }
  0xd0   :  { %v4566_v37 = vpop.eup %4565  ;;  %4530 = vmatmul.msk.f32.gmra.mxu3 %vm117_vm0, %v1775_v62  ;;  %v5977_v32 = vmax.f32 %v864_v31, 0.0  ;;  %v8513_v62 = vmov 1.0   ;;  %v5997_v16 = vadd.f32 %v5819_v53, %v2168_v59  ;;  %v6000_v21 = vadd.f32 %v5821_v55, %v2168_v59 }
  0xd1   :  { %v4568_v61 = vpop.eup %4567  ;;  %v991_v50 = vmul.f32 %v4566_v37, %v5872_v11  ;;  %v5984_v46 = vsel %vm5946_vm1, 0.0, %v8513_v62  ;;  %v5991_v6 = vmax.f32 %v865_v41, 0.0  ;;  %v1776_v41 = vld [vmem:[%s8505_s3 + $0x90] sm:$0xff]  ;;  %v2503_v59 = vmax.f32 %v2439_v49, 0.0 }
  0xd2   :  { %v1003_v12 = vmul.f32 %v4568_v61, %v5887_v20  ;;  %4569 = vrsqrt.f32 %v5977_v32  ;;  %v1906_v17 = vpop.f32.mrf.mxu2  ;;  %vm6012_vm3 = vcmp.eq.s32.totalorder %v2642_v38, 0  ;;  %v6026_v49 = vstv %s5962_s14 }
  0xd3   :  { %v992_v60 = vmul.f32 %v4566_v37, %v991_v50  ;;  %v2173_v50 = vpop.permute.xlu1 %2172  ;;  %v2376_v63 = vmul.f32 2.0, %v1906_v17  ;;  %4571 = vrsqrt.f32 %v5991_v6  ;;  %v3317_v38 = vmul.f32 %v5925_v56, %v5887_v20  ;;  %v2019_v19 = vpop.f32.mrf.mxu3 }
  0xd4   :  { %v1004_v31 = vmul.f32 %v4568_v61, %v1003_v12  ;;  %v6007_v62 = vadd.f32 %v5819_v53, %v2173_v50  ;;  %v6018_v40 = vadd.f32 %v5821_v55, %v2173_v50  ;;  %v3984_v50 = vmul.f32 %v6010_v0, %v2502_v14  ;;  %v333_v36 = vpop.f32.mrf.mxu0 }
  0xd5   :  { %v993_v57 = vmul.f32 0.5, %v992_v60  ;;  %v3316_v60 = vmul.f32 %v5925_v56, %v5872_v11  ;;  %v2440_v17 = vsub.f32 %v5931_v3, %v2376_v63  ;;  %v72_v3 = vld [vmem:[%s8503_s1 + $0x98] sm:$0xff]  ;;  %v3382_v12 = vmul.f32 1.442695, %v3317_v38 }
  0xd6   :  { %v1005_v4 = vmul.f32 0.5, %v1004_v31  ;;  %4387 = vmatmul.msk.f32.gmra.mxu0 %vm117_vm0, %v71_v44  ;;  %v2643_v31 = vsub.s32 %v5944_v8, %v5860_v9  ;;  %v3985_v8 = vmul.f32 %v6010_v0, %v2503_v59  ;;  %v1777_v59 = vld [vmem:[%s8505_s3 + $0x98] sm:$0xff]  ;;  %v2377_v38 = vmul.f32 2.0, %v2019_v19 }
  0xd7   :  { %v994_v35 = vsub.f32 1.5, %v993_v57  ;;  %4435 = vmatmul.msk.f32.gmra.mxu1 %vm117_vm0, %v71_v44  ;;  %4483 = vmatmul.msk.f32.gmra.mxu2 %vm117_vm0, %v1776_v41  ;;  %v6038_v44 = vsel %vm6012_vm3, 0.0, %v8552_v2  ;;  %v3380_v14 = vmul.f32 1.442695, %v3316_v60  ;;  %v2504_v52 = vmax.f32 %v2440_v17, 0.0 }
  0xd8   :  { %v1006_v22 = vsub.f32 1.5, %v1005_v4  ;;  %4531 = vmatmul.msk.f32.gmra.mxu3 %vm117_vm0, %v1776_v41  ;;  %v4570_v1 = vpop.eup %4569  ;;  %vm1021_vm8 = vcmp.eq.f32.partialorder %v5977_v32, inf  ;;  %vm6076_vm9 = vcmp.eq.s32.totalorder %v2643_v31, 4294967168  ;;  %vm1023_vm10 = vcmp.eq.f32.partialorder %v5977_v32, 0.0 }
  0xd9   :  { %v995_v57 = vmul.f32 %v4566_v37, %v994_v35  ;;  %v1000_v35 = vand.u32 2147483648, %v5872_v11  ;;  %v1015_v63 = vmul.f32 %v4570_v1, %v5977_v32  ;;  %4573 = vpow2.f32 %v3380_v14 }
  0xda   :  { %v1007_v4 = vmul.f32 %v4568_v61, %v1006_v22  ;;  %v3318_v61 = vmul.f32 %v5925_v56, %v5977_v32  ;;  %v4572_v22 = vpop.eup %4571  ;;  %4575 = vpow2.f32 %v3382_v12  ;;  %v802_v14 = vmul.f32 2.0, %v333_v36 }
  0xdb   :  { %v996_v41 = vmul.f32 %v995_v57, %v5872_v11  ;;  %v4048_v57 = vmul.f32 1.442695, %v3984_v50  ;;  %v1016_v58 = vmul.f32 %v4570_v1, %v1015_v63  ;;  %v1027_v18 = vmul.f32 %v4572_v22, %v5991_v6 }
  0xdc   :  { %v1008_v37 = vmul.f32 %v1007_v4, %v5887_v20  ;;  %v4050_v4 = vmul.f32 1.442695, %v3985_v8  ;;  %v3384_v17 = vmul.f32 1.442695, %v3318_v61  ;;  %v446_v8 = vpop.f32.mrf.mxu1  ;;  %vm1033_vm11 = vcmp.eq.f32.partialorder %v5991_v6, inf }
  0xdd   :  { %v998_v60 = vsel %vm997_vm4, %v5872_v11, %v996_v41  ;;  %v1017_v41 = vmul.f32 0.5, %v1016_v58  ;;  %v1028_v19 = vmul.f32 %v4572_v22, %v1027_v18  ;;  %4577 = vpow2.f32 %v4048_v57 }
  0xde   :  { %4388 = vmatmul.msk.f32.gmra.mxu0 %vm117_vm0, %v72_v3  ;;  %v1001_v29 = vsel %vm999_vm5, %v1000_v35, %v998_v60  ;;  %v1010_v50 = vsel %vm1009_vm6, %v5887_v20, %v1008_v37  ;;  %v3986_v35 = vmul.f32 %v6010_v0, %v2504_v52  ;;  %4579 = vpow2.f32 %v4050_v4  ;;  %v2183_v60 = vpop.permute.xlu0 %2182 }
  0xdf   :  { %4436 = vmatmul.msk.f32.gmra.mxu1 %vm117_vm0, %v72_v3  ;;  %4484 = vmatmul.msk.f32.gmra.mxu2 %vm117_vm0, %v1777_v59  ;;  %v1018_v11 = vsub.f32 1.5, %v1017_v41  ;;  %v3650_v58 = vmul.f32 %v6026_v49, %v1001_v29  ;;  %v1029_v63 = vmul.f32 0.5, %v1028_v19  ;;  %v2441_v3 = vsub.f32 %v5934_v5, %v2377_v38  ;;  %v4574_v29 = vpop.eup %4573 }
  0xe0   :  { %4532 = vmatmul.msk.f32.gmra.mxu3 %vm117_vm0, %v1777_v59  ;;  %v1013_v37 = vsel %vm1011_vm7, %v1012_v48, %v1010_v50  ;;  %v866_v18 = vsub.f32 %v5752_v34, %v802_v14  ;;  %v803_v61 = vmul.f32 2.0, %v446_v8  ;;  %4581 = vpow2.f32 %v3384_v17 }
  0xe1   :  { %v1019_v12 = vmul.f32 %v4570_v1, %v1018_v11  ;;  %v1030_v59 = vsub.f32 1.5, %v1029_v63  ;;  %v4052_v5 = vmul.f32 1.442695, %v3986_v35  ;;  %v4576_v1 = vpop.eup %4575  ;;  %v3651_v34 = vmul.f32 %v6026_v49, %v1013_v37 }
  0xe2   :  { %v6081_v57 = vmax.f32 %v866_v18, 0.0  ;;  %v867_v48 = vsub.f32 %v5756_v33, %v803_v61  ;;  %v1024_v20 = vand.u32 2147483648, %v5977_v32  ;;  %v2505_v38 = vmax.f32 %v2441_v3, 0.0  ;;  %v1909_v61 = vpop.f32.mrf.mxu2 }
  0xe3   :  { %v1020_v52 = vmul.f32 %v1019_v12, %v5977_v32  ;;  %v1031_v4 = vmul.f32 %v4572_v22, %v1030_v59  ;;  %v4578_v41 = vpop.eup %4577  ;;  %v3714_v31 = vmul.f32 1.442695, %v3650_v58  ;;  %v8555_v8 = vmov -1.0  }
  0xe4   :  { %4583 = vrsqrt.f32 %v6081_v57  ;;  %v4580_v19 = vpop.eup %4579  ;;  %v6095_v11 = vsel %vm6076_vm9, 0.0, %v8555_v8  ;;  %v6097_v22 = vmax.f32 %v867_v48, 0.0  ;;  %v6100_v35 = vadd.f32 %v5819_v53, %v2183_v60 }
  0xe5   :  { %v1022_v50 = vsel %vm1021_vm8, %v5977_v32, %v1020_v52  ;;  %v1032_v33 = vmul.f32 %v1031_v4, %v5991_v6  ;;  %4585 = vpow2.f32 %v4052_v5  ;;  %v3319_v32 = vmul.f32 %v5925_v56, %v5991_v6  ;;  %v73_v4 = vld [vmem:[%s8503_s1 + $0xa0] sm:$0xff] }
  0xe6   :  { %v1025_v17 = vsel %vm1023_vm10, %v1024_v20, %v1022_v50  ;;  %v4582_v14 = vpop.eup %4581  ;;  %v3716_v58 = vmul.f32 1.442695, %v3651_v34  ;;  %v3987_v3 = vmul.f32 %v6010_v0, %v2505_v38  ;;  %4587 = vrsqrt.f32 %v6097_v22  ;;  %v1778_v38 = vld [vmem:[%s8505_s3 + $0xa0] sm:$0xff]  ;;  %4389 = vmatmul.msk.f32.gmra.mxu0 %vm117_vm0, %v73_v4 }
  0xe7   :  { %v1034_v63 = vsel %vm1033_vm11, %v5991_v6, %v1032_v33  ;;  %v3508_v37 = vmul.f32 %v4574_v29, %v5984_v46  ;;  %4589 = vpow2.f32 %v3714_v31  ;;  %v3652_v12 = vmul.f32 %v6026_v49, %v1025_v17  ;;  %4437 = vmatmul.msk.f32.gmra.mxu1 %vm117_vm0, %v73_v4  ;;  %4485 = vmatmul.msk.f32.gmra.mxu2 %vm117_vm0, %v1778_v38 }
  0xe8   :  { %v1036_v18 = vand.u32 2147483648, %v5991_v6  ;;  %v4176_v59 = vmul.f32 %v4578_v41, %v5984_v46  ;;  %v3509_v36 = vmul.f32 %v4576_v1, %v5989_v10  ;;  %vm1035_vm12 = vcmp.eq.f32.partialorder %v5991_v6, 0.0  ;;  %v6122_v1 = vpop.permute.xlu0 %2197  ;;  %4533 = vmatmul.msk.f32.gmra.mxu3 %vm117_vm0, %v1778_v38 }
  0xe9   :  { %v2378_v52 = vmul.f32 2.0, %v1909_v61  ;;  %v4177_v48 = vmul.f32 %v4580_v19, %v5989_v10  ;;  %v3510_v34 = vmul.f32 %v4582_v14, %v6038_v44  ;;  %v3386_v29 = vmul.f32 1.442695, %v3319_v32 }
  0xea   :  { %v4584_v5 = vpop.eup %4583  ;;  %v1037_v20 = vsel %vm1035_vm12, %v1036_v18, %v1034_v63  ;;  %4591 = vpow2.f32 %v3716_v58  ;;  %v4054_v6 = vmul.f32 1.442695, %v3987_v3  ;;  %v6129_v19 = vadd.f32 %v5821_v55, %v2183_v60 }
  0xeb   :  { %v1039_v41 = vmul.f32 %v4584_v5, %v6081_v57  ;;  %v2442_v31 = vsub.f32 %v5957_v15, %v2378_v52  ;;  %v4586_v50 = vpop.eup %4585  ;;  %v6133_v17 = vadd.f32 %v5819_v53, %v6122_v1  ;;  %v3718_v33 = vmul.f32 1.442695, %v3652_v12  ;;  %v2022_v52 = vpop.f32.mrf.mxu3 }
  0xec   :  { %8556 = vst [vmem:[#allocation36_spill] sm:$0xff] %v6129_v19  ;;  %v6136_v32 = vadd.s32 16, %v5857_v7  ;;  %v4588_v15 = vpop.eup %4587  ;;  %v3572_v14 = vadd.f32 %v3509_v36, %v3508_v37  ;;  %v3653_v58 = vmul.f32 %v6026_v49, %v1037_v20  ;;  %v4240_v18 = vadd.f32 %v4177_v48, %v4176_v59  ;;  %v336_v19 = vpop.f32.mrf.mxu0 }
  0xed   :  { %8557 = vst [vmem:[#allocation37_spill] sm:$0xff] %v6133_v17  ;;  %v1040_v63 = vmul.f32 %v4584_v5, %v1039_v41  ;;  %v2506_v3 = vmax.f32 %v2442_v31, 0.0  ;;  %v4590_v60 = vpop.eup %4589  ;;  %4593 = vpow2.f32 %v3386_v29  ;;  %v1051_v61 = vmul.f32 %v4588_v15, %v6097_v22  ;;  %v449_v59 = vpop.f32.mrf.mxu1 }
  0xee   :  { %v3320_v12 = vmul.f32 %v5925_v56, %v6081_v57  ;;  %v6144_v4 = vadd.f32 %v3572_v14, %v3510_v34  ;;  %4595 = vpow2.f32 %v4054_v6  ;;  %v2379_v38 = vmul.f32 2.0, %v2022_v52 }
  0xef   :  { %v1041_v17 = vmul.f32 0.5, %v1040_v63  ;;  %4597 = vpow2.f32 %v3718_v33  ;;  %v4178_v37 = vmul.f32 %v4586_v50, %v6038_v44  ;;  %v1052_v36 = vmul.f32 %v4588_v15, %v1051_v61 }
  0xf0   :  { %v3988_v20 = vmul.f32 %v6010_v0, %v2506_v3  ;;  %v4592_v48 = vpop.eup %4591  ;;  %v3842_v29 = vmul.f32 %v4590_v60, %v5984_v46  ;;  %v3720_v41 = vmul.f32 1.442695, %v3653_v58  ;;  %vm1045_vm13 = vcmp.eq.f32.partialorder %v6081_v57, inf }
  0xf1   :  { %v1042_v31 = vsub.f32 1.5, %v1041_v17  ;;  %v1053_v34 = vmul.f32 0.5, %v1052_v36  ;;  %v2644_v6 = vsub.s32 %v6136_v32, %v5813_v51  ;;  %v3388_v14 = vmul.f32 1.442695, %v3320_v12 }
  0xf2   :  { %v804_v63 = vmul.f32 2.0, %v336_v19  ;;  %vm1047_vm14 = vcmp.eq.f32.partialorder %v6081_v57, 0.0  ;;  %v2443_v50 = vsub.f32 %v5960_v54, %v2379_v38  ;;  %v805_v3 = vmul.f32 2.0, %v449_v59 }
  0xf3   :  { %v1043_v33 = vmul.f32 %v4584_v5, %v1042_v31  ;;  %v4594_v61 = vpop.eup %4593  ;;  %v3843_v52 = vmul.f32 %v4592_v48, %v5989_v10  ;;  %v4056_v46 = vmul.f32 1.442695, %v3988_v20  ;;  %v1054_v58 = vsub.f32 1.5, %v1053_v34 }
  0xf4   :  { %v3321_v17 = vmul.f32 %v5925_v56, %v6097_v22  ;;  %v4596_v60 = vpop.eup %4595  ;;  %4599 = vpow2.f32 %v3720_v41  ;;  %v868_v19 = vsub.f32 %v5771_v39, %v804_v63  ;;  %v869_v5 = vsub.f32 %v5794_v45, %v805_v3 }
  0xf5   :  { %v1044_v36 = vmul.f32 %v1043_v33, %v6081_v57  ;;  %v4598_v12 = vpop.eup %4597  ;;  %v1048_v54 = vand.u32 2147483648, %v6081_v57  ;;  %vm6161_vm15 = vcmp.eq.s32.totalorder %v2644_v6, 0  ;;  %4601 = vpow2.f32 %v3388_v14 }
  0xf6   :  { %v1055_v10 = vmul.f32 %v4588_v15, %v1054_v58  ;;  %v2507_v59 = vmax.f32 %v2443_v50, 0.0  ;;  %v6168_v48 = vmax.f32 %v868_v19, 0.0  ;;  %v6170_v41 = vmax.f32 %v869_v5, 0.0 }
  0xf7   :  { %v1046_v20 = vsel %vm1045_vm13, %v6081_v57, %v1044_v36  ;;  %4603 = vpow2.f32 %v4056_v46  ;;  %v3390_v31 = vmul.f32 1.442695, %v3321_v17  ;;  %v3844_v34 = vmul.f32 %v4598_v12, %v6038_v44  ;;  %v6202_v17 = vpop.permute.xlu1 %2187 }
  0xf8   :  { %v1049_v39 = vsel %vm1047_vm14, %v1048_v54, %v1046_v20  ;;  %v1056_v45 = vmul.f32 %v1055_v10, %v6097_v22  ;;  %v4241_v6 = vadd.f32 %v4240_v18, %v4178_v37  ;;  %v2645_v15 = vsub.s32 %v6136_v32, %v5860_v9  ;;  %v1912_v18 = vpop.f32.mrf.mxu2 }
  0xf9   :  { %4605 = vrsqrt.f32 %v6168_v48  ;;  %v3511_v14 = vmul.f32 %v4594_v61, %v6095_v11  ;;  %v3654_v63 = vmul.f32 %v6026_v49, %v1049_v39  ;;  %vm1057_vm1 = vcmp.eq.f32.partialorder %v6097_v22, inf }
  0xfa   :  { %4607 = vrsqrt.f32 %v6170_v41  ;;  %v4600_v57 = vpop.eup %4599  ;;  %v3906_v33 = vadd.f32 %v3843_v52, %v3842_v29  ;;  %v4179_v50 = vmul.f32 %v4596_v60, %v6095_v11  ;;  %v6187_v44 = vsel %vm6161_vm15, 0.0, %v8552_v2  ;;  %v74_v29 = vld [vmem:[%s8503_s1 + $0xa8] sm:$0xff] }
  0xfb   :  { %v1058_v32 = vsel %vm1057_vm1, %v6097_v22, %v1056_v45  ;;  %v4602_v37 = vpop.eup %4601  ;;  %v1060_v3 = vand.u32 2147483648, %v6097_v22  ;;  %4609 = vpow2.f32 %v3390_v31  ;;  %v3989_v61 = vmul.f32 %v6010_v0, %v2507_v59  ;;  %v1779_v52 = vld [vmem:[%s8505_s3 + $0xa8] sm:$0xff]  ;;  %4390 = vmatmul.msk.f32.gmra.mxu0 %vm117_vm0, %v74_v29  ;;  %4438 = vmatmul.msk.f32.gmra.mxu1 %vm117_vm0, %v74_v29 }
  0xfc   :  { %v2380_v46 = vmul.f32 2.0, %v1912_v18  ;;  %v6200_v58 = vadd.f32 %v5821_v55, %v6122_v1  ;;  %v3907_v60 = vadd.f32 %v3906_v33, %v3844_v34  ;;  %vm1059_vm2 = vcmp.eq.f32.partialorder %v6097_v22, 0.0  ;;  %4486 = vmatmul.msk.f32.gmra.mxu2 %vm117_vm0, %v1779_v52  ;;  %4534 = vmatmul.msk.f32.gmra.mxu3 %vm117_vm0, %v1779_v52 }
  0xfd   :  { %vm6205_vm3 = vcmp.eq.s32.totalorder %v2645_v15, 4294967168  ;;  %v4604_v19 = vpop.eup %4603  ;;  %v6213_v5 = vadd.f32 %v5819_v53, %v6202_v17  ;;  %v3722_v1 = vmul.f32 1.442695, %v3654_v63  ;;  %v1061_v12 = vsel %vm1059_vm2, %v1060_v3, %v1058_v32 }
  0xfe   :  { %v2444_v54 = vsub.f32 %v5894_v27, %v2380_v46  ;;  %v3574_v38 = vadd.f32 %v6144_v4, %v3511_v14  ;;  %v3845_v10 = vmul.f32 %v4600_v57, %v6095_v11  ;;  %v3512_v20 = vmul.f32 %v4602_v37, %v6187_v44 }
  0xff   :  { %v4606_v22 = vpop.eup %4605  ;;  %v3322_v59 = vmul.f32 %v5925_v56, %v6168_v48  ;;  %v4242_v45 = vadd.f32 %v4241_v6, %v4179_v50  ;;  %v6226_v27 = vsel %vm6205_vm3, 0.0, %v8555_v8  ;;  %v4058_v31 = vmul.f32 1.442695, %v3989_v61  ;;  %v2025_v50 = vpop.f32.mrf.mxu3 }
 0x100   :  { %v4608_v39 = vpop.eup %4607  ;;  %v1063_v34 = vmul.f32 %v4606_v22, %v6168_v48  ;;  %v6229_v15 = vadd.f32 %v3907_v60, %v3845_v10  ;;  %v3655_v4 = vmul.f32 %v6026_v49, %v1061_v12  ;;  %v2508_v14 = vmax.f32 %v2444_v54, 0.0 }
 0x101   :  { %v1075_v11 = vmul.f32 %v4608_v39, %v6170_v41  ;;  %v4610_v63 = vpop.eup %4609  ;;  %4611 = vpow2.f32 %v3722_v1  ;;  %v4180_v57 = vmul.f32 %v4604_v19, %v6187_v44  ;;  %v2571_v33 = vadd.s32 24, %v5857_v7  ;;  %v339_v19 = vpop.f32.mrf.mxu0 }
 0x102   :  { %v1064_v6 = vmul.f32 %v4606_v22, %v1063_v34  ;;  %v6235_v32 = vadd.f32 %v3574_v38, %v3512_v20  ;;  %v3392_v37 = vmul.f32 1.442695, %v3322_v59  ;;  %v2381_v3 = vmul.f32 2.0, %v2025_v50  ;;  %v452_v1 = vpop.f32.mrf.mxu1 }
 0x103   :  { %v1076_v18 = vmul.f32 %v4608_v39, %v1075_v11  ;;  %4613 = vpow2.f32 %v4058_v31  ;;  %vm1069_vm4 = vcmp.eq.f32.partialorder %v6168_v48, inf  ;;  %v3323_v46 = vmul.f32 %v5925_v56, %v6170_v41 }
 0x104   :  { %v1065_v61 = vmul.f32 0.5, %v1064_v6  ;;  %v6241_v29 = vmul.f32 %v4610_v63, %v6226_v27  ;;  %v3724_v52 = vmul.f32 1.442695, %v3655_v4  ;;  %v3990_v36 = vmul.f32 %v6010_v0, %v2508_v14 }
 0x105   :  { %v1077_v60 = vmul.f32 0.5, %v1076_v18  ;;  %v4243_v12 = vadd.f32 %v4242_v45, %v4180_v57  ;;  %vm1071_vm5 = vcmp.eq.f32.partialorder %v6168_v48, 0.0  ;;  %v2646_v38 = vsub.s32 %v2571_v33, %v5813_v51 }
 0x106   :  { %v1066_v54 = vsub.f32 1.5, %v1065_v61  ;;  %v1072_v10 = vand.u32 2147483648, %v6168_v48  ;;  %4615 = vpow2.f32 %v3392_v37  ;;  %v2445_v59 = vsub.f32 %v5897_v28, %v2381_v3  ;;  %v1915_v37 = vpop.f32.mrf.mxu2 }
 0x107   :  { %v1078_v20 = vsub.f32 1.5, %v1077_v60  ;;  %v4612_v31 = vpop.eup %4611  ;;  %v3394_v4 = vmul.f32 1.442695, %v3323_v46  ;;  %v806_v11 = vmul.f32 2.0, %v339_v19  ;;  %v807_v63 = vmul.f32 2.0, %v452_v1 }
 0x108   :  { %v1067_v34 = vmul.f32 %v4606_v22, %v1066_v54  ;;  %4617 = vpow2.f32 %v3724_v52  ;;  %v4060_v14 = vmul.f32 1.442695, %v3990_v36  ;;  %vm1081_vm6 = vcmp.eq.f32.partialorder %v6170_v41, inf }
 0x109   :  { %v1079_v6 = vmul.f32 %v4608_v39, %v1078_v20  ;;  %v4614_v45 = vpop.eup %4613  ;;  %vm2936_vm7 = vcmp.eq.s32.totalorder %v2646_v38, 0  ;;  %v870_v50 = vsub.f32 %v5719_v23, %v806_v11  ;;  %v871_v18 = vsub.f32 %v5723_v24, %v807_v63 }
 0x10a   :  { %v1068_v57 = vmul.f32 %v1067_v34, %v6168_v48  ;;  %v3846_v28 = vmul.f32 %v4612_v31, %v6187_v44  ;;  %v2509_v3 = vmax.f32 %v2445_v59, 0.0  ;;  %v2647_v61 = vsub.s32 %v2571_v33, %v5860_v9  ;;  %v75_v31 = vld [vmem:[%s8503_s1 + $0xb0] sm:$0xff] }
 0x10b   :  { %v1080_v22 = vmul.f32 %v1079_v6, %v6170_v41  ;;  %4619 = vpow2.f32 %v3394_v4  ;;  %v6258_v46 = vmax.f32 %v870_v50, 0.0  ;;  %v6260_v52 = vmax.f32 %v871_v18, 0.0  ;;  %v1780_v34 = vld [vmem:[%s8505_s3 + $0xb0] sm:$0xff]  ;;  %4391 = vmatmul.msk.f32.gmra.mxu0 %vm117_vm0, %v75_v31  ;;  %4439 = vmatmul.msk.f32.gmra.mxu1 %vm117_vm0, %v75_v31 }
 0x10c   :  { %v1070_v39 = vsel %vm1069_vm4, %v6168_v48, %v1068_v57  ;;  %v4616_v23 = vpop.eup %4615  ;;  %v6265_v44 = vsel %vm2936_vm7, 0.0, %v8552_v2  ;;  %4621 = vpow2.f32 %v4060_v14  ;;  %v2382_v60 = vmul.f32 2.0, %v1915_v37  ;;  %4487 = vmatmul.msk.f32.gmra.mxu2 %vm117_vm0, %v1780_v34  ;;  %4535 = vmatmul.msk.f32.gmra.mxu3 %vm117_vm0, %v1780_v34 }
 0x10d   :  { %v1073_v24 = vsel %vm1071_vm5, %v1072_v10, %v1070_v39  ;;  %v4181_v33 = vmul.f32 %v4614_v45, %v6226_v27  ;;  %v1082_v19 = vsel %vm1081_vm6, %v6170_v41, %v1080_v22  ;;  %4623 = vrsqrt.f32 %v6258_v46 }
 0x10e   :  { %v3656_v36 = vmul.f32 %v6026_v49, %v1073_v24  ;;  %v4618_v1 = vpop.eup %4617  ;;  %v1084_v54 = vand.u32 2147483648, %v6170_v41  ;;  %vm6274_vm8 = vcmp.eq.s32.totalorder %v2647_v61, 4294967168  ;;  %v3991_v38 = vmul.f32 %v6010_v0, %v2509_v3 }
 0x10f   :  { %4625 = vrsqrt.f32 %v6260_v52  ;;  %v3909_v10 = vadd.f32 %v6229_v15, %v3846_v28  ;;  %v3514_v20 = vmul.f32 %v4616_v23, %v6265_v44  ;;  %vm1083_vm9 = vcmp.eq.f32.partialorder %v6170_v41, 0.0 }
 0x110   :  { %v3726_v59 = vmul.f32 1.442695, %v3656_v36  ;;  %v1085_v4 = vsel %vm1083_vm9, %v1084_v54, %v1082_v19  ;;  %v2446_v11 = vsub.f32 %v5997_v16, %v2382_v60  ;;  %v2572_v63 = vadd.s32 32, %v5857_v7  ;;  %v342_v54 = vpop.f32.mrf.mxu0 }
 0x111   :  { %v3324_v15 = vmul.f32 %v5925_v56, %v6258_v46  ;;  %v4620_v41 = vpop.eup %4619  ;;  %v3576_v14 = vadd.f32 %v6235_v32, %v6241_v29  ;;  %v3847_v6 = vmul.f32 %v4618_v1, %v6226_v27  ;;  %v6298_v45 = vadd.f32 %v4243_v12, %v4181_v33  ;;  %v2028_v32 = vpop.f32.mrf.mxu3 }
 0x112   :  { %v6303_v16 = vsel %vm6274_vm8, 0.0, %v8555_v8  ;;  %v4622_v57 = vpop.eup %4621  ;;  %v4062_v50 = vmul.f32 1.442695, %v3991_v38  ;;  %v2510_v18 = vmax.f32 %v2446_v11, 0.0  ;;  %v2648_v37 = vsub.s32 %v2572_v63, %v5813_v51 }
 0x113   :  { %v3396_v28 = vmul.f32 1.442695, %v3324_v15  ;;  %v4624_v29 = vpop.eup %4623  ;;  %v6308_v27 = vadd.f32 %v3909_v10, %v3847_v6  ;;  %4627 = vpow2.f32 %v3726_v59  ;;  %v3657_v12 = vmul.f32 %v6026_v49, %v1085_v4 }
 0x114   :  { %v2383_v22 = vmul.f32 2.0, %v2028_v32  ;;  %v3577_v61 = vadd.f32 %v3576_v14, %v3514_v20  ;;  %v3515_v39 = vmul.f32 %v4620_v41, %v6303_v16  ;;  %v1087_v23 = vmul.f32 %v4624_v29, %v6258_v46  ;;  %v455_v20 = vpop.f32.mrf.mxu1 }
 0x115   :  { %v4626_v3 = vpop.eup %4625  ;;  %4629 = vpow2.f32 %v3396_v28  ;;  %vm2938_vm10 = vcmp.eq.s32.totalorder %v2648_v37, 0  ;;  %v2649_v33 = vsub.s32 %v2572_v63, %v5860_v9  ;;  %v3992_v19 = vmul.f32 %v6010_v0, %v2510_v18 }
 0x116   :  { %v1099_v24 = vmul.f32 %v4626_v3, %v6260_v52  ;;  %v2447_v60 = vsub.f32 %v6000_v21, %v2383_v22  ;;  %4631 = vpow2.f32 %v4062_v50  ;;  %v1088_v36 = vmul.f32 %v4624_v29, %v1087_v23 }
 0x117   :  { %v3325_v1 = vmul.f32 %v5925_v56, %v6260_v52  ;;  %v4182_v48 = vmul.f32 %v4622_v57, %v6265_v44  ;;  %v3728_v38 = vmul.f32 1.442695, %v3657_v12  ;;  %vm1093_vm11 = vcmp.eq.f32.partialorder %v6258_v46, inf }
 0x118   :  { %v1100_v10 = vmul.f32 %v4626_v3, %v1099_v24  ;;  %v3578_v59 = vadd.f32 %v3577_v61, %v3515_v39  ;;  %v1089_v31 = vmul.f32 0.5, %v1088_v36  ;;  %v6322_v21 = vsel %vm2938_vm10, 0.0, %v8552_v2 }
 0x119   :  { %v3398_v34 = vmul.f32 1.442695, %v3325_v1  ;;  %v4628_v4 = vpop.eup %4627  ;;  %v2511_v63 = vmax.f32 %v2447_v60, 0.0  ;;  %vm3131_vm12 = vcmp.eq.s32.totalorder %v2649_v33, 4294967168  ;;  %v808_v15 = vmul.f32 2.0, %v342_v54 }
 0x11a   :  { %v1101_v11 = vmul.f32 0.5, %v1100_v10  ;;  %v1090_v14 = vsub.f32 1.5, %v1089_v31  ;;  %v4064_v6 = vmul.f32 1.442695, %v3992_v19  ;;  %v809_v57 = vmul.f32 2.0, %v455_v20 }
 0x11b   :  { %v4630_v41 = vpop.eup %4629  ;;  %4633 = vpow2.f32 %v3398_v34  ;;  %v872_v37 = vsub.f32 %v5727_v25, %v808_v15  ;;  %vm1095_vm13 = vcmp.eq.f32.partialorder %v6258_v46, 0.0  ;;  %v6328_v12 = vsel %vm3131_vm12, 0.0, %v8555_v8 }
 0x11c   :  { %4635 = vpow2.f32 %v3728_v38  ;;  %v3516_v50 = vmul.f32 %v4630_v41, %v6322_v21  ;;  %v1102_v18 = vsub.f32 1.5, %v1101_v11  ;;  %v4632_v28 = vpop.eup %4631  ;;  %v1091_v32 = vmul.f32 %v4624_v29, %v1090_v14 }
 0x11d   :  { %v873_v22 = vsub.f32 %v5731_v26, %v809_v57  ;;  %v3993_v23 = vmul.f32 %v6010_v0, %v2511_v63  ;;  %v6332_v24 = vmax.f32 %v872_v37, 0.0  ;;  %v3848_v60 = vmul.f32 %v4628_v4, %v6265_v44  ;;  %v1918_v26 = vpop.f32.mrf.mxu2 }
 0x11e   :  { %v3579_v61 = vadd.f32 %v3578_v59, %v3516_v50  ;;  %v1103_v39 = vmul.f32 %v4626_v3, %v1102_v18  ;;  %v1092_v33 = vmul.f32 %v1091_v32, %v6258_v46  ;;  %4637 = vpow2.f32 %v4064_v6  ;;  %v76_v32 = vld [vmem:[%s8503_s1 + $0xb8] sm:$0xff] }
 0x11f   :  { %v6336_v25 = vmax.f32 %v873_v22, 0.0  ;;  %v1096_v29 = vand.u32 2147483648, %v6258_v46  ;;  %vm1105_vm14 = vcmp.eq.f32.partialorder %v6260_v52, inf  ;;  %4639 = vrsqrt.f32 %v6332_v24  ;;  %4392 = vmatmul.msk.f32.gmra.mxu0 %vm117_vm0, %v76_v32  ;;  %4440 = vmatmul.msk.f32.gmra.mxu1 %vm117_vm0, %v76_v32 }
 0x120   :  { %v1104_v36 = vmul.f32 %v1103_v39, %v6260_v52  ;;  %v1094_v19 = vsel %vm1093_vm11, %v6258_v46, %v1092_v33  ;;  %vm1107_vm15 = vcmp.eq.f32.partialorder %v6260_v52, 0.0  ;;  %v1108_v44 = vand.u32 2147483648, %v6260_v52 }
 0x121   :  { %v4634_v3 = vpop.eup %4633  ;;  %4641 = vrsqrt.f32 %v6336_v25  ;;  %v1097_v54 = vsel %vm1095_vm13, %v1096_v29, %v1094_v19  ;;  %v4066_v20 = vmul.f32 1.442695, %v3993_v23  ;;  %v3911_v59 = vadd.f32 %v6308_v27, %v3848_v60  ;;  %v2031_v29 = vpop.f32.mrf.mxu3 }
 0x122   :  { %v4636_v1 = vpop.eup %4635  ;;  %v1106_v38 = vsel %vm1105_vm14, %v6260_v52, %v1104_v36  ;;  %v3517_v10 = vmul.f32 %v4634_v3, %v6328_v12  ;;  %v3658_v31 = vmul.f32 %v6026_v49, %v1097_v54  ;;  %v2384_v4 = vmul.f32 2.0, %v1918_v26 }
 0x123   :  { %v1109_v34 = vsel %vm1107_vm15, %v1108_v44, %v1106_v38  ;;  %v2573_v15 = vadd.s32 40, %v5857_v7  ;;  %v3326_v46 = vmul.f32 %v5925_v56, %v6332_v24  ;;  %v6361_v52 = vadd.f32 %v6298_v45, %v4182_v48  ;;  %v345_v44 = vpop.f32.mrf.mxu0 }
 0x124   :  { %v6354_v11 = vadd.f32 %v3579_v61, %v3517_v10  ;;  %v3659_v63 = vmul.f32 %v6026_v49, %v1109_v34  ;;  %v4638_v41 = vpop.eup %4637  ;;  %v3849_v14 = vmul.f32 %v4636_v1, %v6303_v16  ;;  %v3730_v27 = vmul.f32 1.442695, %v3658_v31  ;;  %v458_v31 = vpop.f32.mrf.mxu1 }
 0x125   :  { %v2448_v6 = vsub.f32 %v6007_v62, %v2384_v4  ;;  %v4640_v57 = vpop.eup %4639  ;;  %4643 = vpow2.f32 %v4066_v20  ;;  %v2650_v18 = vsub.s32 %v2573_v15, %v5813_v51  ;;  %v3400_v37 = vmul.f32 1.442695, %v3326_v46  ;;  %v1781_v62 = vld [vmem:[%s8505_s3 + $0xb8] sm:$0xff] }
 0x126   :  { %v3732_v50 = vmul.f32 1.442695, %v3659_v63  ;;  %v6370_v61 = vmul.f32 %v4632_v28, %v6303_v16  ;;  %4645 = vpow2.f32 %v3730_v27  ;;  %v1111_v45 = vmul.f32 %v4640_v57, %v6332_v24  ;;  %4488 = vmatmul.msk.f32.gmra.mxu2 %vm117_vm0, %v1781_v62  ;;  %4536 = vmatmul.msk.f32.gmra.mxu3 %vm117_vm0, %v1781_v62 }
 0x127   :  { %v4642_v22 = vpop.eup %4641  ;;  %v2512_v48 = vmax.f32 %v2448_v6, 0.0  ;;  %v3912_v39 = vadd.f32 %v3911_v59, %v3849_v14  ;;  %v6379_v23 = vmul.f32 %v4638_v41, %v6322_v21  ;;  %vm6384_vm1 = vcmp.eq.s32.totalorder %v2650_v18, 0 }
 0x128   :  { %4647 = vpow2.f32 %v3732_v50  ;;  %v1123_v16 = vmul.f32 %v4642_v22, %v6336_v25  ;;  %v1112_v28 = vmul.f32 %v4640_v57, %v1111_v45  ;;  %v2385_v26 = vmul.f32 2.0, %v2031_v29 }
 0x129   :  { %4649 = vpow2.f32 %v3400_v37  ;;  %v3994_v33 = vmul.f32 %v6010_v0, %v2512_v48  ;;  %v2651_v3 = vsub.s32 %v2573_v15, %v5860_v9  ;;  %v3327_v19 = vmul.f32 %v5925_v56, %v6336_v25 }
 0x12a   :  { %v1124_v36 = vmul.f32 %v4642_v22, %v1123_v16  ;;  %v1113_v1 = vmul.f32 0.5, %v1112_v28  ;;  %vm1117_vm2 = vcmp.eq.f32.partialorder %v6332_v24, inf  ;;  %vm1119_vm3 = vcmp.eq.f32.partialorder %v6332_v24, 0.0  ;;  %v2193_v28 = vpop.permute.xlu2 %2192 }
 0x12b   :  { %v1120_v54 = vand.u32 2147483648, %v6332_v24  ;;  %v6395_v38 = vpop.eup %4643  ;;  %vm1129_vm4 = vcmp.eq.f32.partialorder %v6336_v25, inf  ;;  %v2449_v20 = vsub.f32 %v6018_v40, %v2385_v26  ;;  %v3402_v59 = vmul.f32 1.442695, %v3327_v19 }
 0x12c   :  { %v1125_v10 = vmul.f32 0.5, %v1124_v36  ;;  %v4646_v34 = vpop.eup %4645  ;;  %v1114_v4 = vsub.f32 1.5, %v1113_v1  ;;  %v6402_v63 = vsel %vm6384_vm1, 0.0, %v8552_v2  ;;  %v4068_v15 = vmul.f32 1.442695, %v3994_v33 }
 0x12d   :  { %v810_v46 = vmul.f32 2.0, %v345_v44  ;;  %v3850_v14 = vmul.f32 %v4646_v34, %v6322_v21  ;;  %vm6405_vm5 = vcmp.eq.s32.totalorder %v2651_v3, 4294967168  ;;  %4651 = vpow2.f32 %v3402_v59  ;;  %v2213_v59 = vpop.permute.xlu0 %2212 }
 0x12e   :  { %v4648_v41 = vpop.eup %4647  ;;  %v1126_v27 = vsub.f32 1.5, %v1125_v10  ;;  %v1115_v50 = vmul.f32 %v4640_v57, %v1114_v4  ;;  %v2513_v18 = vmax.f32 %v2449_v20, 0.0  ;;  %v811_v32 = vmul.f32 2.0, %v458_v31  ;;  %v1921_v20 = vpop.f32.mrf.mxu2 }
 0x12f   :  { %v4650_v40 = vpop.eup %4649  ;;  %v874_v37 = vsub.f32 %v5786_v42, %v810_v46  ;;  %v3913_v45 = vadd.f32 %v3912_v39, %v3850_v14  ;;  %v3851_v48 = vmul.f32 %v4648_v41, %v6328_v12  ;;  %vm1131_vm6 = vcmp.eq.f32.partialorder %v6336_v25, 0.0 }
 0x130   :  { %v3518_v62 = vmul.f32 %v4650_v40, %v6402_v63  ;;  %v1127_v16 = vmul.f32 %v4642_v22, %v1126_v27  ;;  %v1116_v21 = vmul.f32 %v1115_v50, %v6332_v24  ;;  %v875_v33 = vsub.f32 %v5790_v43, %v811_v32 }
 0x131   :  { %v6414_v60 = vmax.f32 %v874_v37, 0.0  ;;  %v6417_v57 = vadd.f32 %v3913_v45, %v3851_v48  ;;  %v6424_v29 = vsel %vm6405_vm5, 0.0, %v8555_v8  ;;  %v1132_v36 = vand.u32 2147483648, %v6336_v25  ;;  %v2203_v37 = vpop.permute.xlu1 %2202 }
 0x132   :  { %v3581_v42 = vadd.f32 %v6354_v11, %v3518_v62  ;;  %v1128_v39 = vmul.f32 %v1127_v16, %v6336_v25  ;;  %v1118_v22 = vsel %vm1117_vm2, %v6332_v24, %v1116_v21  ;;  %v6431_v43 = vmax.f32 %v875_v33, 0.0 }
 0x133   :  { %4653 = vrsqrt.f32 %v6414_v60  ;;  %v4652_v26 = vpop.eup %4651  ;;  %v1121_v11 = vsel %vm1119_vm3, %v1120_v54, %v1118_v22  ;;  %v3995_v19 = vmul.f32 %v6010_v0, %v2513_v18  ;;  %v6446_v24 = vadd.f32 %v5821_v55, %v6202_v17  ;;  %v2034_v22 = vpop.f32.mrf.mxu3 }
 0x134   :  { %4655 = vpow2.f32 %v4068_v15  ;;  %v1130_v3 = vsel %vm1129_vm4, %v6336_v25, %v1128_v39  ;;  %v3660_v44 = vmul.f32 %v6026_v49, %v1121_v11  ;;  %v3519_v10 = vmul.f32 %v4652_v26, %v6424_v29 }
 0x135   :  { %v1133_v1 = vsel %vm1131_vm6, %v1132_v36, %v1130_v3  ;;  %4657 = vrsqrt.f32 %v6431_v43  ;;  %v6449_v54 = vadd.f32 %v5819_v53, %v2193_v28  ;;  %v4246_v31 = vadd.f32 %v6361_v52, %v6370_v61  ;;  %v77_v52 = vld [vmem:[%s8503_s1 + $0xc0] sm:$0xff] }
 0x136   :  { %v3661_v34 = vmul.f32 %v6026_v49, %v1133_v1  ;;  %v6455_v25 = vadd.f32 %v5821_v55, %v2193_v28  ;;  %v6458_v4 = vadd.f32 %v5819_v53, %v2213_v59  ;;  %v3734_v15 = vmul.f32 1.442695, %v3660_v44  ;;  %4393 = vmatmul.msk.f32.gmra.mxu0 %vm117_vm0, %v77_v52  ;;  %4441 = vmatmul.msk.f32.gmra.mxu1 %vm117_vm0, %v77_v52  ;;  %v6490_v28 = vpop.permute.xlu2 %2207 }
 0x137   :  { %v6460_v46 = vadd.f32 %v3581_v42, %v3519_v10  ;;  %v4247_v17 = vadd.f32 %v4246_v31, %v6379_v23  ;;  %v2386_v14 = vmul.f32 2.0, %v1921_v20  ;;  %v2574_v27 = vadd.s32 48, %v5857_v7  ;;  %v1782_v23 = vld [vmem:[%s8505_s3 + $0xc0] sm:$0xff] }
 0x138   :  { %v3736_v41 = vmul.f32 1.442695, %v3661_v34  ;;  %v4185_v6 = vmul.f32 %v6395_v38, %v6328_v12  ;;  %4659 = vpow2.f32 %v3734_v15  ;;  %v4070_v40 = vmul.f32 1.442695, %v3995_v19  ;;  %4489 = vmatmul.msk.f32.gmra.mxu2 %vm117_vm0, %v1782_v23  ;;  %4537 = vmatmul.msk.f32.gmra.mxu3 %vm117_vm0, %v1782_v23 }
 0x139   :  { %v4654_v61 = vpop.eup %4653  ;;  %v3328_v50 = vmul.f32 %v5925_v56, %v6414_v60  ;;  %v2450_v12 = vsub.f32 %v5969_v30, %v2386_v14  ;;  %v2652_v38 = vsub.s32 %v2574_v27, %v5813_v51  ;;  %v6482_v48 = vadd.f32 %v5821_v55, %v2213_v59 }
 0x13a   :  { %v4656_v18 = vpop.eup %4655  ;;  %4661 = vpow2.f32 %v3736_v41  ;;  %v1135_v32 = vmul.f32 %v4654_v61, %v6414_v60  ;;  %v6485_v62 = vadd.f32 %v5819_v53, %v2203_v37  ;;  %v6488_v16 = vadd.f32 %v5821_v55, %v2203_v37 }
 0x13b   :  { %v4658_v45 = vpop.eup %4657  ;;  %v3404_v21 = vmul.f32 1.442695, %v3328_v50  ;;  %v6494_v30 = vadd.f32 %v5819_v53, %v6490_v28  ;;  %v2514_v39 = vmax.f32 %v2450_v12, 0.0  ;;  %v6497_v36 = vadd.f32 %v4247_v17, %v4185_v6  ;;  %v348_v17 = vpop.f32.mrf.mxu0 }
 0x13c   :  { %v1136_v33 = vmul.f32 %v4654_v61, %v1135_v32  ;;  %v1147_v42 = vmul.f32 %v4658_v45, %v6431_v43  ;;  %v6500_v26 = vmul.f32 %v4656_v18, %v6402_v63  ;;  %v2387_v11 = vmul.f32 2.0, %v2034_v22 }
 0x13d   :  { %4663 = vpow2.f32 %v3404_v21  ;;  %vm2942_vm7 = vcmp.eq.s32.totalorder %v2652_v38, 0  ;;  %vm1141_vm8 = vcmp.eq.f32.partialorder %v6414_v60, inf  ;;  %v3996_v1 = vmul.f32 %v6010_v0, %v2514_v39 }
 0x13e   :  { %4665 = vpow2.f32 %v4070_v40  ;;  %v1137_v3 = vmul.f32 0.5, %v1136_v33  ;;  %v1148_v19 = vmul.f32 %v4658_v45, %v1147_v42  ;;  %v4660_v44 = vpop.eup %4659  ;;  %v2653_v10 = vsub.s32 %v2574_v27, %v5860_v9 }
 0x13f   :  { %v3329_v20 = vmul.f32 %v5925_v56, %v6431_v43  ;;  %v3852_v31 = vmul.f32 %v4660_v44, %v6402_v63  ;;  %vm1143_vm9 = vcmp.eq.f32.partialorder %v6414_v60, 0.0  ;;  %v1144_v41 = vand.u32 2147483648, %v6414_v60  ;;  %v461_v63 = vpop.f32.mrf.mxu1  ;;  %v1924_v44 = vpop.f32.mrf.mxu2 }
 0x140   :  { %v4662_v59 = vpop.eup %4661  ;;  %v1149_v34 = vmul.f32 0.5, %v1148_v19  ;;  %v1138_v15 = vsub.f32 1.5, %v1137_v3  ;;  %v6511_v14 = vsel %vm2942_vm7, 0.0, %v8552_v2  ;;  %v2451_v52 = vsub.f32 %v5972_v13, %v2387_v11 }
 0x141   :  { %v3406_v6 = vmul.f32 1.442695, %v3329_v20  ;;  %v3915_v27 = vadd.f32 %v6417_v57, %v3852_v31  ;;  %v3853_v40 = vmul.f32 %v4662_v59, %v6424_v29  ;;  %v4072_v37 = vmul.f32 1.442695, %v3996_v1 }
 0x142   :  { %v1139_v50 = vmul.f32 %v4654_v61, %v1138_v15  ;;  %v1150_v23 = vsub.f32 1.5, %v1149_v34  ;;  %vm6516_vm10 = vcmp.eq.s32.totalorder %v2653_v10, 4294967168  ;;  %v812_v12 = vmul.f32 2.0, %v348_v17  ;;  %v8570_v10 = vld [vmem:[#allocation16_spill] sm:$0xff]  ;;  %v2223_v17 = vpop.permute.xlu0 %2222 }
 0x143   :  { %v4664_v18 = vpop.eup %4663  ;;  %4667 = vpow2.f32 %v3406_v6  ;;  %v6520_v21 = vadd.f32 %v3915_v27, %v3853_v40  ;;  %vm1153_vm11 = vcmp.eq.f32.partialorder %v6431_v43, inf  ;;  %v1156_v61 = vand.u32 2147483648, %v6431_v43 }
 0x144   :  { %v4666_v38 = vpop.eup %4665  ;;  %v1140_v13 = vmul.f32 %v1139_v50, %v6414_v60  ;;  %v3520_v57 = vmul.f32 %v4664_v18, %v6511_v14  ;;  %v1151_v33 = vmul.f32 %v4658_v45, %v1150_v23  ;;  %v876_v42 = vsub.f32 %v5801_v47, %v812_v12 }
 0x145   :  { %v813_v39 = vmul.f32 2.0, %v461_v63  ;;  %v2515_v19 = vmax.f32 %v2451_v52, 0.0  ;;  %v6537_v1 = vsel %vm6516_vm10, 0.0, %v8555_v8  ;;  %4669 = vpow2.f32 %v4072_v37  ;;  %v78_v37 = vld [vmem:[%s8503_s1 + $0xc8] sm:$0xff] }
 0x146   :  { %v1142_v22 = vsel %vm1141_vm8, %v6414_v60, %v1140_v13  ;;  %v3583_v11 = vadd.f32 %v6460_v46, %v3520_v57  ;;  %v1152_v3 = vmul.f32 %v1151_v33, %v6431_v43  ;;  %v6539_v47 = vmax.f32 %v876_v42, 0.0  ;;  %4394 = vmatmul.msk.f32.gmra.mxu0 %vm117_vm0, %v78_v37  ;;  %4442 = vmatmul.msk.f32.gmra.mxu1 %vm117_vm0, %v78_v37 }
 0x147   :  { %v1145_v45 = vsel %vm1143_vm9, %v1144_v41, %v1142_v22  ;;  %v877_v20 = vsub.f32 %v8570_v10, %v813_v39  ;;  %vm1155_vm12 = vcmp.eq.f32.partialorder %v6431_v43, 0.0  ;;  %v2388_v15 = vmul.f32 2.0, %v1924_v44 }
 0x148   :  { %v3662_v59 = vmul.f32 %v6026_v49, %v1145_v45  ;;  %v1154_v46 = vsel %vm1153_vm11, %v6431_v43, %v1152_v3  ;;  %4671 = vrsqrt.f32 %v6539_v47  ;;  %v3997_v27 = vmul.f32 %v6010_v0, %v2515_v19 }
 0x149   :  { %v4668_v31 = vpop.eup %4667  ;;  %v1157_v34 = vsel %vm1155_vm12, %v1156_v61, %v1154_v46  ;;  %v6546_v60 = vmax.f32 %v877_v20, 0.0  ;;  %v6553_v40 = vadd.f32 %v5821_v55, %v6490_v28  ;;  %v6556_v43 = vadd.f32 %v5819_v53, %v2223_v17  ;;  %v1783_v28 = vld [vmem:[%s8505_s3 + $0xc8] sm:$0xff]  ;;  %v2037_v61 = vpop.f32.mrf.mxu3 }
 0x14a   :  { %v3738_v41 = vmul.f32 1.442695, %v3662_v59  ;;  %v3521_v52 = vmul.f32 %v4668_v31, %v6537_v1  ;;  %v3663_v6 = vmul.f32 %v6026_v49, %v1157_v34  ;;  %v4249_v50 = vadd.f32 %v6497_v36, %v6500_v26  ;;  %v2218_v36 = vpop.permute.xlu1 %2217  ;;  %4490 = vmatmul.msk.f32.gmra.mxu2 %vm117_vm0, %v1783_v28  ;;  %4538 = vmatmul.msk.f32.gmra.mxu3 %vm117_vm0, %v1783_v28  ;;  %v8571_v59 = vld [vmem:[#allocation36_spill] sm:$0xff] }
 0x14b   :  { %4673 = vrsqrt.f32 %v6546_v60  ;;  %v4187_v23 = vmul.f32 %v4666_v38, %v6424_v29  ;;  %v6571_v32 = vadd.f32 %v5821_v55, %v2223_v17  ;;  %v2452_v26 = vsub.f32 %v6100_v35, %v2388_v15  ;;  %v4670_v38 = vpop.eup %4669 }
 0x14c   :  { %4675 = vpow2.f32 %v3738_v41  ;;  %v6562_v63 = vadd.f32 %v3583_v11, %v3521_v52  ;;  %v3740_v18 = vmul.f32 1.442695, %v3663_v6  ;;  %v2575_v29 = vadd.s32 56, %v5857_v7 }
 0x14d   :  { %v3330_v12 = vmul.f32 %v5925_v56, %v6539_v47  ;;  %v6580_v13 = vadd.f32 %v5819_v53, %v2218_v36  ;;  %v6583_v57 = vadd.f32 %v5821_v55, %v2218_v36  ;;  %v4074_v33 = vmul.f32 1.442695, %v3997_v27 }
 0x14e   :  { %4677 = vpow2.f32 %v3740_v18  ;;  %v4672_v35 = vpop.eup %4671  ;;  %v2516_v42 = vmax.f32 %v2452_v26, 0.0  ;;  %v2654_v39 = vsub.s32 %v2575_v29, %v5813_v51  ;;  %v2389_v11 = vmul.f32 2.0, %v2037_v61  ;;  %v464_v26 = vpop.f32.mrf.mxu1 }
 0x14f   :  { %v3408_v22 = vmul.f32 1.442695, %v3330_v12  ;;  %v4250_v3 = vadd.f32 %v4249_v50, %v4187_v23  ;;  %v1159_v19 = vmul.f32 %v4672_v35, %v6539_v47  ;;  %v2655_v44 = vsub.s32 %v2575_v29, %v5860_v9  ;;  %v351_v50 = vpop.f32.mrf.mxu0 }
 0x150   :  { %v3331_v45 = vmul.f32 %v5925_v56, %v6546_v60  ;;  %vm2944_vm13 = vcmp.eq.s32.totalorder %v2654_v39, 0  ;;  %v3998_v20 = vmul.f32 %v6010_v0, %v2516_v42  ;;  %v2453_v46 = vsub.f32 %v8571_v59, %v2389_v11 }
 0x151   :  { %v4674_v10 = vpop.eup %4673  ;;  %4679 = vpow2.f32 %v3408_v22  ;;  %v4188_v34 = vmul.f32 %v4670_v38, %v6511_v14  ;;  %v1160_v15 = vmul.f32 %v4672_v35, %v1159_v19  ;;  %vm1165_vm14 = vcmp.eq.f32.partialorder %v6539_v47, inf }
 0x152   :  { %v4676_v31 = vpop.eup %4675  ;;  %4681 = vpow2.f32 %v4074_v33  ;;  %v1171_v17 = vmul.f32 %v4674_v10, %v6546_v60  ;;  %v6599_v52 = vsel %vm2944_vm13, 0.0, %v8552_v2  ;;  %v4076_v6 = vmul.f32 1.442695, %v3998_v20  ;;  %v8574_v20 = vld [vmem:[#allocation11_spill] sm:$0xff] }
 0x153   :  { %v3854_v41 = vmul.f32 %v4676_v31, %v6511_v14  ;;  %v2517_v27 = vmax.f32 %v2453_v46, 0.0  ;;  %v1161_v18 = vmul.f32 0.5, %v1160_v15  ;;  %vm6601_vm15 = vcmp.eq.s32.totalorder %v2655_v44, 4294967168  ;;  %v1927_v46 = vpop.f32.mrf.mxu2 }
 0x154   :  { %v4678_v23 = vpop.eup %4677  ;;  %v1172_v37 = vmul.f32 %v4674_v10, %v1171_v17  ;;  %v3410_v36 = vmul.f32 1.442695, %v3331_v45  ;;  %4683 = vpow2.f32 %v4076_v6  ;;  %v814_v61 = vmul.f32 2.0, %v351_v50 }
 0x155   :  { %v3917_v29 = vadd.f32 %v6520_v21, %v3854_v41  ;;  %v3855_v14 = vmul.f32 %v4678_v23, %v6537_v1  ;;  %v3999_v12 = vmul.f32 %v6010_v0, %v2517_v27  ;;  %v1162_v33 = vsub.f32 1.5, %v1161_v18 }
 0x156   :  { %v1173_v38 = vmul.f32 0.5, %v1172_v37  ;;  %4685 = vpow2.f32 %v3410_v36  ;;  %v4251_v39 = vadd.f32 %v4250_v3, %v4188_v34  ;;  %vm1167_vm1 = vcmp.eq.f32.partialorder %v6539_v47, 0.0  ;;  %v8575_v34 = vld [vmem:[#allocation12_spill] sm:$0xff] }
 0x157   :  { %v4680_v42 = vpop.eup %4679  ;;  %v6608_v22 = vadd.f32 %v3917_v29, %v3855_v14  ;;  %v815_v11 = vmul.f32 2.0, %v464_v26  ;;  %v1163_v44 = vmul.f32 %v4672_v35, %v1162_v33  ;;  %v878_v59 = vsub.f32 %v8574_v20, %v814_v61 }
 0x158   :  { %v4682_v19 = vpop.eup %4681  ;;  %v3522_v21 = vmul.f32 %v4680_v42, %v6599_v52  ;;  %v1174_v45 = vsub.f32 1.5, %v1173_v38  ;;  %v1168_v31 = vand.u32 2147483648, %v6539_v47  ;;  %v6617_v15 = vsel %vm6601_vm15, 0.0, %v8555_v8  ;;  %v672_v38 = vpop.permute.xlu2 %671 }
 0x159   :  { %v4078_v3 = vmul.f32 1.442695, %v3999_v12  ;;  %v879_v17 = vsub.f32 %v8575_v34, %v815_v11  ;;  %v1164_v41 = vmul.f32 %v1163_v44, %v6539_v47  ;;  %v6622_v27 = vmax.f32 %v878_v59, 0.0  ;;  %v8576_v11 = vld [vmem:[#allocation9_spill] sm:$0xff]  ;;  %v8577_v44 = vld [vmem:[#allocation10_spill] sm:$0xff] }
 0x15a   :  { %v3585_v35 = vadd.f32 %v6562_v63, %v3522_v21  ;;  %v1175_v6 = vmul.f32 %v4674_v10, %v1174_v45  ;;  %v4684_v50 = vpop.eup %4683  ;;  %v4189_v23 = vmul.f32 %v4682_v19, %v6537_v1  ;;  %vm1177_vm2 = vcmp.eq.f32.partialorder %v6546_v60, inf  ;;  %v1784_v59 = vld [vmem:[%s8505_s3 + $0xd0] sm:$0xff] }
 0x15b   :  { %v6626_v18 = vmax.f32 %v879_v17, 0.0  ;;  %v2390_v37 = vmul.f32 2.0, %v1927_v46  ;;  %v1166_v36 = vsel %vm1165_vm14, %v6539_v47, %v1164_v41  ;;  %v1180_v63 = vand.u32 2147483648, %v6546_v60  ;;  %v682_v46 = vpop.permute.xlu0 %681  ;;  %4491 = vmatmul.msk.f32.gmra.mxu2 %vm117_vm0, %v1784_v59  ;;  %4539 = vmatmul.msk.f32.gmra.mxu3 %vm117_vm0, %v1784_v59 }
 0x15c   :  { %v4686_v28 = vpop.eup %4685  ;;  %v1176_v26 = vmul.f32 %v1175_v6, %v6546_v60  ;;  %4687 = vrsqrt.f32 %v6622_v27  ;;  %v1169_v10 = vsel %vm1167_vm1, %v1168_v31, %v1166_v36  ;;  %v6639_v29 = vadd.s32 64, %v5857_v7  ;;  %v2040_v36 = vpop.f32.mrf.mxu3 }
 0x15d   :  { %v3523_v1 = vmul.f32 %v4686_v28, %v6617_v15  ;;  %4689 = vrsqrt.f32 %v6626_v18  ;;  %v3664_v14 = vmul.f32 %v6026_v49, %v1169_v10  ;;  %vm1179_vm3 = vcmp.eq.f32.partialorder %v6546_v60, 0.0 }
 0x15e   :  { %v1178_v12 = vsel %vm1177_vm2, %v6546_v60, %v1176_v26  ;;  %4691 = vpow2.f32 %v4078_v3  ;;  %v4190_v33 = vmul.f32 %v4684_v50, %v6599_v52  ;;  %v2454_v42 = vsub.f32 %v6213_v5, %v2390_v37  ;;  %v79_v60 = vld [vmem:[%s8503_s1 + $0xd0] sm:$0xff] }
 0x15f   :  { %v1181_v61 = vsel %vm1179_vm3, %v1180_v63, %v1178_v12  ;;  %v6645_v47 = vadd.f32 %v3585_v35, %v3523_v1  ;;  %v6649_v19 = vadd.f32 %v8576_v11, %v672_v38  ;;  %v6652_v21 = vadd.f32 %v8577_v44, %v672_v38  ;;  %4395 = vmatmul.msk.f32.gmra.mxu0 %vm117_vm0, %v79_v60 }
 0x160   :  { %v3742_v45 = vmul.f32 1.442695, %v3664_v14  ;;  %v3665_v20 = vmul.f32 %v6026_v49, %v1181_v61  ;;  %v4252_v31 = vadd.f32 %v4251_v39, %v4189_v23  ;;  %v2518_v5 = vmax.f32 %v2454_v42, 0.0  ;;  %4443 = vmatmul.msk.f32.gmra.mxu1 %vm117_vm0, %v79_v60  ;;  %v467_v60 = vpop.f32.mrf.mxu1 }
 0x161   :  { %v2656_v3 = vsub.s32 %v6639_v29, %v5813_v51  ;;  %v3332_v34 = vmul.f32 %v5925_v56, %v6622_v27  ;;  %v6668_v41 = vadd.f32 %v8576_v11, %v682_v46  ;;  %v6671_v35 = vadd.f32 %v8577_v44, %v682_v46 }
 0x162   :  { %v4688_v17 = vpop.eup %4687  ;;  %4693 = vpow2.f32 %v3742_v45  ;;  %v3744_v39 = vmul.f32 1.442695, %v3665_v20  ;;  %v6675_v50 = vadd.f32 %v4252_v31, %v4190_v33  ;;  %v4000_v28 = vmul.f32 %v6010_v0, %v2518_v5  ;;  %v354_v20 = vpop.f32.mrf.mxu0 }
 0x163   :  { %8578 = vst [vmem:[#allocation16_spill] sm:$0xff] %v6668_v41  ;;  %v4690_v6 = vpop.eup %4689  ;;  %v1183_v23 = vmul.f32 %v4688_v17, %v6622_v27  ;;  %v3412_v37 = vmul.f32 1.442695, %v3332_v34  ;;  %v1192_v10 = vand.u32 2147483648, %v6622_v27  ;;  %v2391_v1 = vmul.f32 2.0, %v2040_v36 }
 0x164   :  { %8579 = vst [vmem:[#allocation36_spill] sm:$0xff] %v6671_v35  ;;  %v4692_v26 = vpop.eup %4691  ;;  %4695 = vpow2.f32 %v3744_v39  ;;  %v1195_v63 = vmul.f32 %v4690_v6, %v6626_v18  ;;  %vm6681_vm4 = vcmp.eq.s32.totalorder %v2656_v3, 0  ;;  %v4080_v38 = vmul.f32 1.442695, %v4000_v28 }
 0x165   :  { %v1184_v14 = vmul.f32 %v4688_v17, %v1183_v23  ;;  %4697 = vpow2.f32 %v3412_v37  ;;  %vm1189_vm5 = vcmp.eq.f32.partialorder %v6622_v27, inf  ;;  %v2455_v61 = vsub.f32 %v6446_v24, %v2391_v1 }
 0x166   :  { %v1196_v33 = vmul.f32 %v4690_v6, %v1195_v63  ;;  %v2657_v42 = vsub.s32 %v6639_v29, %v5860_v9  ;;  %v3333_v45 = vmul.f32 %v5925_v56, %v6626_v18  ;;  %v4191_v59 = vmul.f32 %v4692_v26, %v6617_v15 }
 0x167   :  { %v1185_v46 = vmul.f32 0.5, %v1184_v14  ;;  %vm1191_vm6 = vcmp.eq.f32.partialorder %v6622_v27, 0.0  ;;  %4699 = vpow2.f32 %v4080_v38  ;;  %vm1201_vm7 = vcmp.eq.f32.partialorder %v6626_v18, inf  ;;  %v8582_v38 = vld [vmem:[#allocation18_spill] sm:$0xff] }
 0x168   :  { %v4694_v31 = vpop.eup %4693  ;;  %v1197_v5 = vmul.f32 0.5, %v1196_v33  ;;  %v6697_v24 = vsel %vm6681_vm4, 0.0, %v8552_v2  ;;  %v2519_v29 = vmax.f32 %v2455_v61, 0.0  ;;  %v3414_v3 = vmul.f32 1.442695, %v3333_v45 }
 0x169   :  { %v3856_v34 = vmul.f32 %v4694_v31, %v6599_v52  ;;  %v1186_v39 = vsub.f32 1.5, %v1185_v46  ;;  %v816_v23 = vmul.f32 2.0, %v354_v20  ;;  %v817_v37 = vmul.f32 2.0, %v467_v60  ;;  %v8583_v20 = vld [vmem:[#allocation19_spill] sm:$0xff] }
 0x16a   :  { %v4696_v28 = vpop.eup %4695  ;;  %v1198_v36 = vsub.f32 1.5, %v1197_v5  ;;  %vm3139_vm8 = vcmp.eq.s32.totalorder %v2657_v42, 4294967168  ;;  %4701 = vpow2.f32 %v3414_v3  ;;  %v4001_v26 = vmul.f32 %v6010_v0, %v2519_v29 }
 0x16b   :  { %v4698_v63 = vpop.eup %4697  ;;  %v3919_v1 = vadd.f32 %v6608_v22, %v3856_v34  ;;  %v3857_v14 = vmul.f32 %v4696_v28, %v6617_v15  ;;  %v1187_v12 = vmul.f32 %v4688_v17, %v1186_v39  ;;  %v880_v33 = vsub.f32 %v8582_v38, %v816_v23  ;;  %v1930_v28 = vpop.f32.mrf.mxu2 }
 0x16c   :  { %v3524_v61 = vmul.f32 %v4698_v63, %v6697_v24  ;;  %v1199_v52 = vmul.f32 %v4690_v6, %v1198_v36  ;;  %v4082_v45 = vmul.f32 1.442695, %v4001_v26  ;;  %v881_v60 = vsub.f32 %v8583_v20, %v817_v37  ;;  %v677_v36 = vpop.permute.xlu1 %676 }
 0x16d   :  { %v4700_v46 = vpop.eup %4699  ;;  %v6706_v31 = vadd.f32 %v3919_v1, %v3857_v14  ;;  %v1188_v42 = vmul.f32 %v1187_v12, %v6622_v27  ;;  %v6710_v5 = vsel %vm3139_vm8, 0.0, %v8555_v8  ;;  %v6712_v22 = vmax.f32 %v880_v33, 0.0  ;;  %v2228_v14 = vpop.permute.xlu2 %2227 }
 0x16e   :  { %v3587_v15 = vadd.f32 %v6645_v47, %v3524_v61  ;;  %v4192_v17 = vmul.f32 %v4700_v46, %v6697_v24  ;;  %v1200_v29 = vmul.f32 %v1199_v52, %v6626_v18  ;;  %4703 = vpow2.f32 %v4082_v45  ;;  %v80_v46 = vld [vmem:[%s8503_s1 + $0xd8] sm:$0xff] }
 0x16f   :  { %v1190_v6 = vsel %vm1189_vm5, %v6622_v27, %v1188_v42  ;;  %v1204_v3 = vand.u32 2147483648, %v6626_v18  ;;  %4705 = vrsqrt.f32 %v6712_v22  ;;  %v6722_v34 = vmax.f32 %v881_v60, 0.0  ;;  %v1785_v42 = vld [vmem:[%s8505_s3 + $0xd8] sm:$0xff]  ;;  %4396 = vmatmul.msk.f32.gmra.mxu0 %vm117_vm0, %v80_v46  ;;  %4444 = vmatmul.msk.f32.gmra.mxu1 %vm117_vm0, %v80_v46 }
 0x170   :  { %v4702_v39 = vpop.eup %4701  ;;  %v4254_v23 = vadd.f32 %v6675_v50, %v4191_v59  ;;  %v1193_v47 = vsel %vm1191_vm6, %v1192_v10, %v1190_v6  ;;  %v1202_v37 = vsel %vm1201_vm7, %v6626_v18, %v1200_v29  ;;  %vm1203_vm9 = vcmp.eq.f32.partialorder %v6626_v18, 0.0  ;;  %4492 = vmatmul.msk.f32.gmra.mxu2 %vm117_vm0, %v1785_v42  ;;  %4540 = vmatmul.msk.f32.gmra.mxu3 %vm117_vm0, %v1785_v42 }
 0x171   :  { %v3666_v26 = vmul.f32 %v6026_v49, %v1193_v47  ;;  %v1205_v63 = vsel %vm1203_vm9, %v1204_v3, %v1202_v37  ;;  %v3525_v1 = vmul.f32 %v4702_v39, %v6710_v5  ;;  %4707 = vrsqrt.f32 %v6722_v34  ;;  %v2043_v37 = vpop.f32.mrf.mxu3 }
 0x172   :  { %v6735_v50 = vadd.f32 %v8576_v11, %v677_v36  ;;  %v6738_v27 = vadd.f32 %v8577_v44, %v677_v36  ;;  %v4255_v10 = vadd.f32 %v4254_v23, %v4192_v17  ;;  %v3667_v59 = vmul.f32 %v6026_v49, %v1205_v63  ;;  %v2238_v17 = vpop.permute.xlu0 %2237 }
 0x173   :  { %v3746_v18 = vmul.f32 1.442695, %v3666_v26  ;;  %v6741_v12 = vadd.f32 %v3587_v15, %v3525_v1  ;;  %v2392_v38 = vmul.f32 2.0, %v1930_v28  ;;  %v2577_v33 = vadd.s32 72, %v5857_v7 }
 0x174   :  { %8584 = vst [vmem:[#allocation11_spill] sm:$0xff] %v6735_v50  ;;  %v4704_v61 = vpop.eup %4703  ;;  %v6745_v52 = vadd.f32 %v5819_v53, %v2228_v14  ;;  %v6748_v45 = vadd.f32 %v5821_v55, %v2228_v14  ;;  %v3748_v20 = vmul.f32 1.442695, %v3667_v59  ;;  %v3334_v60 = vmul.f32 %v5925_v56, %v6712_v22 }
 0x175   :  { %8585 = vst [vmem:[#allocation12_spill] sm:$0xff] %v6738_v27  ;;  %v4706_v15 = vpop.eup %4705  ;;  %4709 = vpow2.f32 %v3746_v18  ;;  %v4193_v29 = vmul.f32 %v4704_v61, %v6710_v5  ;;  %v2456_v6 = vsub.f32 %v6449_v54, %v2392_v38  ;;  %v2658_v3 = vsub.s32 %v2577_v33, %v5813_v51 }
 0x176   :  { %v6764_v39 = vadd.f32 %v5819_v53, %v2238_v17  ;;  %4711 = vpow2.f32 %v3748_v20  ;;  %v1207_v23 = vmul.f32 %v4706_v15, %v6712_v22  ;;  %v3416_v47 = vmul.f32 1.442695, %v3334_v60 }
 0x177   :  { %v4708_v28 = vpop.eup %4707  ;;  %v6770_v54 = vadd.f32 %v5821_v55, %v2238_v17  ;;  %v6772_v36 = vadd.f32 %v4255_v10, %v4193_v29  ;;  %v2520_v26 = vmax.f32 %v2456_v6, 0.0  ;;  %v2393_v63 = vmul.f32 2.0, %v2043_v37  ;;  %v357_v10 = vpop.f32.mrf.mxu0 }
 0x178   :  { %v1208_v1 = vmul.f32 %v4706_v15, %v1207_v23  ;;  %v1219_v59 = vmul.f32 %v4708_v28, %v6722_v34  ;;  %vm2948_vm10 = vcmp.eq.s32.totalorder %v2658_v3, 0  ;;  %4713 = vpow2.f32 %v3416_v47  ;;  %v470_v37 = vpop.f32.mrf.mxu1  ;;  %v1933_v47 = vpop.f32.mrf.mxu2 }
 0x179   :  { %v4002_v14 = vmul.f32 %v6010_v0, %v2520_v26  ;;  %v2457_v18 = vsub.f32 %v6455_v25, %v2393_v63  ;;  %v2659_v38 = vsub.s32 %v2577_v33, %v5860_v9  ;;  %v3335_v61 = vmul.f32 %v5925_v56, %v6722_v34 }
 0x17a   :  { %v1209_v20 = vmul.f32 0.5, %v1208_v1  ;;  %v1220_v60 = vmul.f32 %v4708_v28, %v1219_v59  ;;  %vm1213_vm11 = vcmp.eq.f32.partialorder %v6712_v22, inf  ;;  %vm1215_vm12 = vcmp.eq.f32.partialorder %v6712_v22, 0.0 }
 0x17b   :  { %v4710_v46 = vpop.eup %4709  ;;  %v6783_v42 = vsel %vm2948_vm10, 0.0, %v8552_v2  ;;  %v4084_v17 = vmul.f32 1.442695, %v4002_v14  ;;  %v2521_v29 = vmax.f32 %v2457_v18, 0.0  ;;  %v3418_v6 = vmul.f32 1.442695, %v3335_v61 }
 0x17c   :  { %v4712_v25 = vpop.eup %4711  ;;  %v3858_v33 = vmul.f32 %v4710_v46, %v6697_v24  ;;  %v1221_v3 = vmul.f32 0.5, %v1220_v60  ;;  %v1210_v23 = vsub.f32 1.5, %v1209_v20  ;;  %vm6786_vm13 = vcmp.eq.s32.totalorder %v2659_v38, 4294967168  ;;  %v8588_v38 = vld [vmem:[#allocation23_spill] sm:$0xff] }
 0x17d   :  { %v3859_v26 = vmul.f32 %v4712_v25, %v6710_v5  ;;  %4715 = vpow2.f32 %v4084_v17  ;;  %v4003_v63 = vmul.f32 %v6010_v0, %v2521_v29  ;;  %v818_v1 = vmul.f32 2.0, %v357_v10  ;;  %v2233_v25 = vpop.permute.xlu1 %2232 }
 0x17e   :  { %v4714_v59 = vpop.eup %4713  ;;  %v3921_v14 = vadd.f32 %v6706_v31, %v3858_v33  ;;  %v1211_v18 = vmul.f32 %v4706_v15, %v1210_v23  ;;  %v1222_v61 = vsub.f32 1.5, %v1221_v3  ;;  %4717 = vpow2.f32 %v3418_v6  ;;  %v8589_v15 = vld [vmem:[#allocation24_spill] sm:$0xff] }
 0x17f   :  { %v3526_v24 = vmul.f32 %v4714_v59, %v6783_v42  ;;  %v4086_v20 = vmul.f32 1.442695, %v4003_v63  ;;  %v882_v60 = vsub.f32 %v8588_v38, %v818_v1  ;;  %v819_v46 = vmul.f32 2.0, %v470_v37 }
 0x180   :  { %v6795_v35 = vadd.f32 %v3921_v14, %v3859_v26  ;;  %v1212_v5 = vmul.f32 %v1211_v18, %v6712_v22  ;;  %v1216_v17 = vand.u32 2147483648, %v6712_v22  ;;  %v1223_v29 = vmul.f32 %v4708_v28, %v1222_v61 }
 0x181   :  { %v3589_v10 = vadd.f32 %v6741_v12, %v3526_v24  ;;  %4719 = vpow2.f32 %v4086_v20  ;;  %v6800_v31 = vmax.f32 %v882_v60, 0.0  ;;  %v883_v6 = vsub.f32 %v8589_v15, %v819_v46 }
 0x182   :  { %v1214_v33 = vsel %vm1213_vm11, %v6712_v22, %v1212_v5  ;;  %v1224_v3 = vmul.f32 %v1223_v29, %v6722_v34  ;;  %vm1225_vm14 = vcmp.eq.f32.partialorder %v6722_v34, inf  ;;  %v6811_v28 = vsel %vm6786_vm13, 0.0, %v8555_v8  ;;  %v687_v5 = vpop.permute.xlu2 %686 }
 0x183   :  { %v4716_v12 = vpop.eup %4715  ;;  %v1217_v23 = vsel %vm1215_vm12, %v1216_v17, %v1214_v33  ;;  %v1228_v37 = vand.u32 2147483648, %v6722_v34  ;;  %4721 = vrsqrt.f32 %v6800_v31  ;;  %v6817_v26 = vmax.f32 %v883_v6, 0.0 }
 0x184   :  { %v4718_v63 = vpop.eup %4717  ;;  %v3668_v1 = vmul.f32 %v6026_v49, %v1217_v23  ;;  %v4194_v59 = vmul.f32 %v4716_v12, %v6783_v42  ;;  %v1226_v14 = vsel %vm1225_vm14, %v6722_v34, %v1224_v3  ;;  %vm1227_vm15 = vcmp.eq.f32.partialorder %v6722_v34, 0.0  ;;  %v697_v23 = vpop.permute.xlu0 %696 }
 0x185   :  { %v6824_v18 = vadd.f32 %v5819_v53, %v2233_v25  ;;  %v1229_v22 = vsel %vm1227_vm15, %v1228_v37, %v1226_v14  ;;  %v3527_v61 = vmul.f32 %v4718_v63, %v6811_v28  ;;  %4723 = vrsqrt.f32 %v6817_v26  ;;  %v8592_v37 = vld [vmem:[#allocation37_spill] sm:$0xff] }
 0x186   :  { %v6829_v24 = vadd.f32 %v5821_v55, %v2233_v25  ;;  %v3750_v20 = vmul.f32 1.442695, %v3668_v1  ;;  %v4257_v38 = vadd.f32 %v6772_v36, %v4194_v59  ;;  %v3669_v60 = vmul.f32 %v6026_v49, %v1229_v22  ;;  %v81_v36 = vld [vmem:[%s8503_s1 + $0xe0] sm:$0xff] }
 0x187   :  { %v4720_v46 = vpop.eup %4719  ;;  %v6833_v34 = vadd.f32 %v3589_v10, %v3527_v61  ;;  %v2394_v17 = vmul.f32 2.0, %v1933_v47  ;;  %v2578_v29 = vadd.s32 80, %v5857_v7  ;;  %v3336_v15 = vmul.f32 %v5925_v56, %v6800_v31  ;;  %v1786_v10 = vld [vmem:[%s8505_s3 + $0xe0] sm:$0xff]  ;;  %4397 = vmatmul.msk.f32.gmra.mxu0 %vm117_vm0, %v81_v36  ;;  %4445 = vmatmul.msk.f32.gmra.mxu1 %vm117_vm0, %v81_v36  ;;  %v2046_v61 = vpop.f32.mrf.mxu3 }
 0x188   :  { %v6839_v6 = vadd.f32 %v8576_v11, %v687_v5  ;;  %4725 = vpow2.f32 %v3750_v20  ;;  %v3752_v25 = vmul.f32 1.442695, %v3669_v60  ;;  %v4195_v33 = vmul.f32 %v4720_v46, %v6811_v28  ;;  %4493 = vmatmul.msk.f32.gmra.mxu2 %vm117_vm0, %v1786_v10  ;;  %4541 = vmatmul.msk.f32.gmra.mxu3 %vm117_vm0, %v1786_v10 }
 0x189   :  { %v4722_v3 = vpop.eup %4721  ;;  %v6849_v12 = vadd.f32 %v8577_v44, %v687_v5  ;;  %v2458_v63 = vsub.f32 %v8592_v37, %v2394_v17  ;;  %v2660_v1 = vsub.s32 %v2578_v29, %v5813_v51  ;;  %v3420_v59 = vmul.f32 1.442695, %v3336_v15 }
 0x18a   :  { %8590 = vst [vmem:[#allocation9_spill] sm:$0xff] %v6839_v6  ;;  %v6856_v14 = vadd.f32 %v8576_v11, %v697_v23  ;;  %4727 = vpow2.f32 %v3752_v25  ;;  %v6858_v47 = vadd.f32 %v4257_v38, %v4195_v33  ;;  %v1231_v22 = vmul.f32 %v4722_v3, %v6800_v31  ;;  %v692_v38 = vpop.permute.xlu1 %691 }
 0x18b   :  { %8591 = vst [vmem:[#allocation10_spill] sm:$0xff] %v6849_v12  ;;  %v4724_v20 = vpop.eup %4723  ;;  %v2522_v60 = vmax.f32 %v2458_v63, 0.0  ;;  %vm6863_vm1 = vcmp.eq.s32.totalorder %v2660_v1, 0  ;;  %4729 = vpow2.f32 %v3420_v59  ;;  %v2395_v5 = vmul.f32 2.0, %v2046_v61  ;;  %v360_v1 = vpop.f32.mrf.mxu0 }
 0x18c   :  { %8593 = vst [vmem:[#allocation18_spill] sm:$0xff] %v6856_v14  ;;  %v6868_v17 = vadd.f32 %v8577_v44, %v697_v23  ;;  %v1232_v15 = vmul.f32 %v4722_v3, %v1231_v22  ;;  %v1243_v25 = vmul.f32 %v4724_v20, %v6817_v26  ;;  %v2661_v33 = vsub.s32 %v2578_v29, %v5860_v9  ;;  %v473_v12 = vpop.f32.mrf.mxu1 }
 0x18d   :  { %v6873_v36 = vadd.f32 %v8576_v11, %v692_v38  ;;  %v4004_v10 = vmul.f32 %v6010_v0, %v2522_v60  ;;  %v2459_v37 = vsub.f32 %v6200_v58, %v2395_v5  ;;  %v3337_v63 = vmul.f32 %v5925_v56, %v6817_v26 }
 0x18e   :  { %8596 = vst [vmem:[#allocation19_spill] sm:$0xff] %v6868_v17  ;;  %v4726_v59 = vpop.eup %4725  ;;  %v1233_v23 = vmul.f32 0.5, %v1232_v15  ;;  %v1244_v61 = vmul.f32 %v4724_v20, %v1243_v25  ;;  %vm1237_vm2 = vcmp.eq.f32.partialorder %v6800_v31, inf  ;;  %v6883_v29 = vsel %vm6863_vm1, 0.0, %v8552_v2 }
 0x18f   :  { %8597 = vst [vmem:[#allocation23_spill] sm:$0xff] %v6873_v36  ;;  %v3860_v22 = vmul.f32 %v4726_v59, %v6783_v42  ;;  %v4088_v17 = vmul.f32 1.442695, %v4004_v10  ;;  %v2523_v60 = vmax.f32 %v2459_v37, 0.0  ;;  %vm6886_vm3 = vcmp.eq.s32.totalorder %v2661_v33, 4294967168 }
 0x190   :  { %v4728_v5 = vpop.eup %4727  ;;  %v1245_v14 = vmul.f32 0.5, %v1244_v61  ;;  %v1234_v36 = vsub.f32 1.5, %v1233_v23  ;;  %v3422_v15 = vmul.f32 1.442695, %v3337_v63  ;;  %v820_v25 = vmul.f32 2.0, %v360_v1  ;;  %v8600_v23 = vld [vmem:[#allocation13_spill] sm:$0xff] }
 0x191   :  { %v4730_v6 = vpop.eup %4729  ;;  %v3923_v41 = vadd.f32 %v6795_v35, %v3860_v22  ;;  %v3861_v46 = vmul.f32 %v4728_v5, %v6811_v28  ;;  %4731 = vpow2.f32 %v4088_v17  ;;  %v4005_v42 = vmul.f32 %v6010_v0, %v2523_v60  ;;  %v1936_v5 = vpop.f32.mrf.mxu2 }
 0x192   :  { %v1235_v10 = vmul.f32 %v4722_v3, %v1234_v36  ;;  %v3528_v33 = vmul.f32 %v4730_v6, %v6883_v29  ;;  %v1246_v37 = vsub.f32 1.5, %v1245_v14  ;;  %4733 = vpow2.f32 %v3422_v15  ;;  %v8601_v6 = vld [vmem:[#allocation14_spill] sm:$0xff] }
 0x193   :  { %v6894_v59 = vadd.f32 %v3923_v41, %v3861_v46  ;;  %v4090_v61 = vmul.f32 1.442695, %v4005_v42  ;;  %v884_v63 = vsub.f32 %v8600_v23, %v820_v25  ;;  %v821_v1 = vmul.f32 2.0, %v473_v12 }
 0x194   :  { %v1236_v27 = vmul.f32 %v1235_v10, %v6800_v31  ;;  %vm1239_vm4 = vcmp.eq.f32.partialorder %v6800_v31, 0.0  ;;  %v3591_v35 = vadd.f32 %v6833_v34, %v3528_v33  ;;  %v1247_v28 = vmul.f32 %v4724_v20, %v1246_v37  ;;  %v2243_v10 = vpop.permute.xlu2 %2242 }
 0x195   :  { %v1240_v17 = vand.u32 2147483648, %v6800_v31  ;;  %4735 = vpow2.f32 %v4090_v61  ;;  %v6901_v3 = vmax.f32 %v884_v63, 0.0  ;;  %v885_v14 = vsub.f32 %v8601_v6, %v821_v1  ;;  %v82_v63 = vld [vmem:[%s8503_s1 + $0xe8] sm:$0xff]  ;;  %v2253_v6 = vpop.permute.xlu0 %2252 }
 0x196   :  { %v1238_v41 = vsel %vm1237_vm2, %v6800_v31, %v1236_v27  ;;  %v1248_v12 = vmul.f32 %v1247_v28, %v6817_v26  ;;  %vm1249_vm5 = vcmp.eq.f32.partialorder %v6817_v26, inf  ;;  %v6912_v34 = vsel %vm6886_vm3, 0.0, %v8555_v8  ;;  %4398 = vmatmul.msk.f32.gmra.mxu0 %vm117_vm0, %v82_v63  ;;  %4446 = vmatmul.msk.f32.gmra.mxu1 %vm117_vm0, %v82_v63 }
 0x197   :  { %v4732_v20 = vpop.eup %4731  ;;  %v1241_v36 = vsel %vm1239_vm4, %v1240_v17, %v1238_v41  ;;  %v1252_v22 = vand.u32 2147483648, %v6817_v26  ;;  %4737 = vrsqrt.f32 %v6901_v3  ;;  %v6916_v60 = vmax.f32 %v885_v14, 0.0 }
 0x198   :  { %v4734_v15 = vpop.eup %4733  ;;  %v3670_v27 = vmul.f32 %v6026_v49, %v1241_v36  ;;  %v4196_v31 = vmul.f32 %v4732_v20, %v6883_v29  ;;  %v1250_v25 = vsel %vm1249_vm5, %v6817_v26, %v1248_v12  ;;  %vm1251_vm6 = vcmp.eq.f32.partialorder %v6817_v26, 0.0  ;;  %v1787_v26 = vld [vmem:[%s8505_s3 + $0xe8] sm:$0xff] }
 0x199   :  { %v6923_v58 = vadd.f32 %v8577_v44, %v692_v38  ;;  %v1253_v46 = vsel %vm1251_vm6, %v1252_v22, %v1250_v25  ;;  %v3529_v42 = vmul.f32 %v4734_v15, %v6912_v34  ;;  %4739 = vrsqrt.f32 %v6916_v60  ;;  %4494 = vmatmul.msk.f32.gmra.mxu2 %vm117_vm0, %v1787_v26  ;;  %4542 = vmatmul.msk.f32.gmra.mxu3 %vm117_vm0, %v1787_v26 }
 0x19a   :  { %v3754_v33 = vmul.f32 1.442695, %v3670_v27  ;;  %v4259_v37 = vadd.f32 %v6858_v47, %v4196_v31  ;;  %v3671_v61 = vmul.f32 %v6026_v49, %v1253_v46  ;;  %v2396_v23 = vmul.f32 2.0, %v1936_v5  ;;  %v2049_v31 = vpop.f32.mrf.mxu3 }
 0x19b   :  { %8602 = vst [vmem:[#allocation24_spill] sm:$0xff] %v6923_v58  ;;  %v4736_v38 = vpop.eup %4735  ;;  %v6936_v1 = vadd.f32 %v5819_v53, %v2243_v10  ;;  %v6938_v28 = vadd.f32 %v3591_v35, %v3529_v42  ;;  %v2579_v17 = vadd.s32 88, %v5857_v7  ;;  %v3338_v47 = vmul.f32 %v5925_v56, %v6901_v3 }
 0x19c   :  { %4741 = vpow2.f32 %v3754_v33  ;;  %v3756_v14 = vmul.f32 1.442695, %v3671_v61  ;;  %v4197_v41 = vmul.f32 %v4736_v38, %v6912_v34  ;;  %v2460_v12 = vsub.f32 %v6485_v62, %v2396_v23  ;;  %v2248_v61 = vpop.permute.xlu1 %2247 }
 0x19d   :  { %v4738_v35 = vpop.eup %4737  ;;  %v6950_v20 = vadd.f32 %v5821_v55, %v2243_v10  ;;  %v6953_v36 = vadd.f32 %v5819_v53, %v2253_v6  ;;  %v2662_v22 = vsub.s32 %v2579_v17, %v5813_v51  ;;  %v3424_v5 = vmul.f32 1.442695, %v3338_v47 }
 0x19e   :  { %4743 = vpow2.f32 %v3756_v14  ;;  %v6956_v15 = vadd.f32 %v4259_v37, %v4197_v41  ;;  %v1255_v27 = vmul.f32 %v4738_v35, %v6901_v3  ;;  %v2524_v62 = vmax.f32 %v2460_v12, 0.0 }
 0x19f   :  { %8603 = vst [vmem:[#allocation37_spill] sm:$0xff] %v6953_v36  ;;  %v4740_v25 = vpop.eup %4739  ;;  %vm6959_vm7 = vcmp.eq.s32.totalorder %v2662_v22, 0  ;;  %4745 = vpow2.f32 %v3424_v5  ;;  %v2397_v42 = vmul.f32 2.0, %v2049_v31  ;;  %v2663_v10 = vsub.s32 %v2579_v17, %v5860_v9  ;;  %v363_v17 = vpop.f32.mrf.mxu0 }
 0x1a0   :  { %v6965_v33 = vadd.f32 %v5821_v55, %v2253_v6  ;;  %v1256_v23 = vmul.f32 %v4738_v35, %v1255_v27  ;;  %v1267_v37 = vmul.f32 %v4740_v25, %v6916_v60  ;;  %v4006_v63 = vmul.f32 %v6010_v0, %v2524_v62 }
 0x1a1   :  { %v6970_v26 = vadd.f32 %v5819_v53, %v2248_v61  ;;  %vm1261_vm8 = vcmp.eq.f32.partialorder %v6901_v3, inf  ;;  %v2461_v38 = vsub.f32 %v6488_v16, %v2397_v42  ;;  %v3339_v47 = vmul.f32 %v5925_v56, %v6916_v60 }
 0x1a2   :  { %8606 = vst [vmem:[#allocation13_spill] sm:$0xff] %v6965_v33  ;;  %v4742_v14 = vpop.eup %4741  ;;  %v1257_v6 = vmul.f32 0.5, %v1256_v23  ;;  %v1268_v41 = vmul.f32 %v4740_v25, %v1267_v37  ;;  %v6979_v12 = vsel %vm6959_vm7, 0.0, %v8552_v2  ;;  %v4092_v22 = vmul.f32 1.442695, %v4006_v63  ;;  %v476_v37 = vpop.f32.mrf.mxu1 }
 0x1a3   :  { %v3862_v5 = vmul.f32 %v4742_v14, %v6883_v29  ;;  %v2525_v27 = vmax.f32 %v2461_v38, 0.0  ;;  %vm6982_vm9 = vcmp.eq.s32.totalorder %v2663_v10, 4294967168  ;;  %v3426_v16 = vmul.f32 1.442695, %v3339_v47  ;;  %v8609_v14 = vld [vmem:[#allocation22_spill] sm:$0xff] }
 0x1a4   :  { %v4744_v31 = vpop.eup %4743  ;;  %v1269_v42 = vmul.f32 0.5, %v1268_v41  ;;  %v1258_v58 = vsub.f32 1.5, %v1257_v6  ;;  %4747 = vpow2.f32 %v4092_v22  ;;  %v822_v23 = vmul.f32 2.0, %v363_v17 }
 0x1a5   :  { %v4746_v33 = vpop.eup %4745  ;;  %v3925_v46 = vadd.f32 %v6894_v59, %v3862_v5  ;;  %v3863_v36 = vmul.f32 %v4744_v31, %v6912_v34  ;;  %4749 = vpow2.f32 %v3426_v16  ;;  %v4007_v29 = vmul.f32 %v6010_v0, %v2525_v27 }
 0x1a6   :  { %v1259_v63 = vmul.f32 %v4738_v35, %v1258_v58  ;;  %v3530_v10 = vmul.f32 %v4746_v33, %v6979_v12  ;;  %v1270_v38 = vsub.f32 1.5, %v1269_v42  ;;  %v886_v47 = vsub.f32 %v8609_v14, %v822_v23  ;;  %v1939_v23 = vpop.f32.mrf.mxu2 }
 0x1a7   :  { %v6991_v50 = vadd.f32 %v3925_v46, %v3863_v36  ;;  %vm1263_vm10 = vcmp.eq.f32.partialorder %v6901_v3, 0.0  ;;  %v4094_v17 = vmul.f32 1.442695, %v4007_v29  ;;  %v823_v6 = vmul.f32 2.0, %v476_v37  ;;  %v8610_v36 = vld [vmem:[#allocation25_spill] sm:$0xff] }
 0x1a8   :  { %v1260_v41 = vmul.f32 %v1259_v63, %v6901_v3  ;;  %v3593_v59 = vadd.f32 %v6938_v28, %v3530_v10  ;;  %v1271_v34 = vmul.f32 %v4740_v25, %v1270_v38  ;;  %v6996_v22 = vmax.f32 %v886_v47, 0.0  ;;  %v1788_v63 = vld [vmem:[%s8505_s3 + $0xf0] sm:$0xff] }
 0x1a9   :  { %v1264_v58 = vand.u32 2147483648, %v6901_v3  ;;  %v7002_v35 = vsel %vm6982_vm9, 0.0, %v8555_v8  ;;  %4751 = vpow2.f32 %v4094_v17  ;;  %v887_v33 = vsub.f32 %v8610_v36, %v823_v6  ;;  %4495 = vmatmul.msk.f32.gmra.mxu2 %vm117_vm0, %v1788_v63  ;;  %4543 = vmatmul.msk.f32.gmra.mxu3 %vm117_vm0, %v1788_v63  ;;  %v2052_v36 = vpop.f32.mrf.mxu3 }
 0x1aa   :  { %v4748_v5 = vpop.eup %4747  ;;  %v1262_v27 = vsel %vm1261_vm8, %v6901_v3, %v1260_v41  ;;  %v1272_v28 = vmul.f32 %v1271_v34, %v6916_v60  ;;  %vm1273_vm11 = vcmp.eq.f32.partialorder %v6916_v60, inf  ;;  %4753 = vrsqrt.f32 %v6996_v22  ;;  %v83_v3 = vld [vmem:[%s8503_s1 + $0xf0] sm:$0xff] }
 0x1ab   :  { %v4750_v25 = vpop.eup %4749  ;;  %v1265_v62 = vsel %vm1263_vm10, %v1264_v58, %v1262_v27  ;;  %v4198_v16 = vmul.f32 %v4748_v5, %v6979_v12  ;;  %v1276_v31 = vand.u32 2147483648, %v6916_v60  ;;  %v7015_v42 = vmax.f32 %v887_v33, 0.0  ;;  %4399 = vmatmul.msk.f32.gmra.mxu0 %vm117_vm0, %v83_v3  ;;  %4447 = vmatmul.msk.f32.gmra.mxu1 %vm117_vm0, %v83_v3  ;;  %v7048_v5 = vpop.permute.xlu0 %711 }
 0x1ac   :  { %v3672_v37 = vmul.f32 %v6026_v49, %v1265_v62  ;;  %v1274_v46 = vsel %vm1273_vm11, %v6916_v60, %v1272_v28  ;;  %vm1275_vm12 = vcmp.eq.f32.partialorder %v6916_v60, 0.0  ;;  %v3531_v29 = vmul.f32 %v4750_v25, %v7002_v35  ;;  %v702_v60 = vpop.permute.xlu2 %701  ;;  %v366_v3 = vpop.f32.mrf.mxu0 }
 0x1ad   :  { %v7028_v10 = vadd.f32 %v5821_v55, %v2248_v61  ;;  %v4261_v38 = vadd.f32 %v6956_v15, %v4198_v16  ;;  %v1277_v14 = vsel %vm1275_vm12, %v1276_v31, %v1274_v46  ;;  %4755 = vrsqrt.f32 %v7015_v42 }
 0x1ae   :  { %v3758_v47 = vmul.f32 1.442695, %v3672_v37  ;;  %v7034_v17 = vadd.f32 %v3593_v59, %v3531_v29  ;;  %v3673_v6 = vmul.f32 %v6026_v49, %v1277_v14  ;;  %v2398_v41 = vmul.f32 2.0, %v1939_v23 }
 0x1af   :  { %8611 = vst [vmem:[#allocation14_spill] sm:$0xff] %v7028_v10  ;;  %v4752_v61 = vpop.eup %4751  ;;  %v7040_v15 = vadd.f32 %v8576_v11, %v702_v60  ;;  %v7043_v34 = vadd.f32 %v8577_v44, %v702_v60  ;;  %v2580_v58 = vadd.s32 96, %v5857_v7  ;;  %v3340_v59 = vmul.f32 %v5925_v56, %v6996_v22 }
 0x1b0   :  { %v4754_v33 = vpop.eup %4753  ;;  %4757 = vpow2.f32 %v3758_v47  ;;  %v3760_v27 = vmul.f32 1.442695, %v3673_v6  ;;  %v4199_v28 = vmul.f32 %v4752_v61, %v7002_v35  ;;  %v2462_v25 = vsub.f32 %v6494_v30, %v2398_v41 }
 0x1b1   :  { %8612 = vst [vmem:[#allocation22_spill] sm:$0xff] %v7040_v15  ;;  %v7054_v62 = vadd.f32 %v8576_v11, %v7048_v5  ;;  %v1279_v16 = vmul.f32 %v4754_v33, %v6996_v22  ;;  %v2664_v31 = vsub.s32 %v2580_v58, %v5813_v51  ;;  %v3428_v23 = vmul.f32 1.442695, %v3340_v59 }
 0x1b2   :  { %8613 = vst [vmem:[#allocation25_spill] sm:$0xff] %v7043_v34  ;;  %4759 = vpow2.f32 %v3760_v27  ;;  %v7058_v37 = vadd.f32 %v4261_v38, %v4199_v28  ;;  %v2526_v46 = vmax.f32 %v2462_v25, 0.0  ;;  %v2399_v29 = vmul.f32 2.0, %v2052_v36  ;;  %v479_v36 = vpop.f32.mrf.mxu1 }
 0x1b3   :  { %8614 = vst [vmem:[#allocation38_spill] sm:$0xff] %v7054_v62  ;;  %v4756_v63 = vpop.eup %4755  ;;  %v1280_v14 = vmul.f32 %v4754_v33, %v1279_v16  ;;  %vm2954_vm13 = vcmp.eq.s32.totalorder %v2664_v31, 0  ;;  %4761 = vpow2.f32 %v3428_v23  ;;  %v2665_v30 = vsub.s32 %v2580_v58, %v5860_v9 }
 0x1b4   :  { %v1291_v60 = vmul.f32 %v4756_v63, %v7015_v42  ;;  %vm1285_vm14 = vcmp.eq.f32.partialorder %v6996_v22, inf  ;;  %v1288_v47 = vand.u32 2147483648, %v6996_v22  ;;  %v4008_v6 = vmul.f32 %v6010_v0, %v2526_v46 }
 0x1b5   :  { %v2463_v38 = vsub.f32 %v6553_v40, %v2399_v29  ;;  %v1281_v41 = vmul.f32 0.5, %v1280_v14  ;;  %vm1287_vm15 = vcmp.eq.f32.partialorder %v6996_v22, 0.0  ;;  %v7068_v61 = vsel %vm2954_vm13, 0.0, %v8552_v2  ;;  %v8617_v29 = vld [vmem:[#allocation26_spill] sm:$0xff] }
 0x1b6   :  { %v3341_v59 = vmul.f32 %v5925_v56, %v7015_v42  ;;  %v824_v58 = vmul.f32 2.0, %v366_v3  ;;  %v4758_v27 = vpop.eup %4757  ;;  %v1292_v28 = vmul.f32 %v4756_v63, %v1291_v60  ;;  %v4096_v25 = vmul.f32 1.442695, %v4008_v6  ;;  %v1942_v6 = vpop.f32.mrf.mxu2 }
 0x1b7   :  { %v2527_v16 = vmax.f32 %v2463_v38, 0.0  ;;  %vm7072_vm1 = vcmp.eq.s32.totalorder %v2665_v30, 4294967168  ;;  %v3864_v40 = vmul.f32 %v4758_v27, %v6979_v12  ;;  %v1282_v23 = vsub.f32 1.5, %v1281_v41 }
 0x1b8   :  { %vm1297_vm2 = vcmp.eq.f32.partialorder %v7015_v42, inf  ;;  %v3430_v46 = vmul.f32 1.442695, %v3341_v59  ;;  %v888_v14 = vsub.f32 %v8617_v29, %v824_v58  ;;  %v4760_v62 = vpop.eup %4759  ;;  %v1293_v34 = vmul.f32 0.5, %v1292_v28 }
 0x1b9   :  { %4763 = vpow2.f32 %v4096_v25  ;;  %v4009_v3 = vmul.f32 %v6010_v0, %v2527_v16  ;;  %v825_v60 = vmul.f32 2.0, %v479_v36  ;;  %v4762_v38 = vpop.eup %4761  ;;  %v3927_v30 = vadd.f32 %v6991_v50, %v3864_v40  ;;  %v8618_v25 = vld [vmem:[#allocation29_spill] sm:$0xff] }
 0x1ba   :  { %v3865_v15 = vmul.f32 %v4760_v62, %v7002_v35  ;;  %v1283_v10 = vmul.f32 %v4754_v33, %v1282_v23  ;;  %4765 = vpow2.f32 %v3430_v46  ;;  %v3532_v12 = vmul.f32 %v4762_v38, %v7068_v61 }
 0x1bb   :  { %v1294_v41 = vsub.f32 1.5, %v1293_v34  ;;  %v4098_v59 = vmul.f32 1.442695, %v4009_v3  ;;  %v7083_v27 = vmax.f32 %v888_v14, 0.0  ;;  %v889_v36 = vsub.f32 %v8618_v25, %v825_v60 }
 0x1bc   :  { %v7085_v58 = vadd.f32 %v3927_v30, %v3865_v15  ;;  %v1284_v28 = vmul.f32 %v1283_v10, %v6996_v22  ;;  %v2400_v16 = vmul.f32 2.0, %v1942_v6  ;;  %v3595_v29 = vadd.f32 %v7034_v17, %v3532_v12 }
 0x1bd   :  { %v1295_v50 = vmul.f32 %v4756_v63, %v1294_v41  ;;  %vm1299_vm3 = vcmp.eq.f32.partialorder %v7015_v42, 0.0  ;;  %4767 = vpow2.f32 %v4098_v59  ;;  %v7097_v15 = vsel %vm7072_vm1, 0.0, %v8555_v8  ;;  %v707_v59 = vpop.permute.xlu1 %706 }
 0x1be   :  { %v1286_v35 = vsel %vm1285_vm14, %v6996_v22, %v1284_v28  ;;  %4769 = vrsqrt.f32 %v7083_v27  ;;  %v7100_v10 = vmax.f32 %v889_v36, 0.0  ;;  %v1300_v62 = vand.u32 2147483648, %v7015_v42  ;;  %v84_v22 = vld [vmem:[%s8503_s1 + $0xf8] sm:$0xff] }
 0x1bf   :  { %v4764_v34 = vpop.eup %4763  ;;  %v1289_v17 = vsel %vm1287_vm15, %v1288_v47, %v1286_v35  ;;  %v1296_v33 = vmul.f32 %v1295_v50, %v7015_v42  ;;  %v2464_v63 = vsub.f32 %v6458_v4, %v2400_v16  ;;  %v2581_v46 = vadd.s32 104, %v5857_v7  ;;  %v1789_v47 = vld [vmem:[%s8505_s3 + $0xf8] sm:$0xff]  ;;  %4400 = vmatmul.msk.f32.gmra.mxu0 %vm117_vm0, %v84_v22  ;;  %4448 = vmatmul.msk.f32.gmra.mxu1 %vm117_vm0, %v84_v22  ;;  %s5121_s3 = smov [#allocation6]  }
 0x1c0   :  { %v4766_v40 = vpop.eup %4765  ;;  %v3674_v23 = vmul.f32 %v6026_v49, %v1289_v17  ;;  %v4200_v31 = vmul.f32 %v4764_v34, %v7068_v61  ;;  %4771 = vrsqrt.f32 %v7100_v10  ;;  %v3342_v60 = vmul.f32 %v5925_v56, %v7083_v27  ;;  %4496 = vmatmul.msk.f32.gmra.mxu2 %vm117_vm0, %v1789_v47  ;;  %4544 = vmatmul.msk.f32.gmra.mxu3 %vm117_vm0, %v1789_v47  ;;  %v2055_v34 = vpop.f32.mrf.mxu3  ;;  %s4341_s0 = sshll.u32 %s5121_s3, 4  ;;  %s4342_s0 = int_to_ptr.vmem [resolvable:$true] %s4341_s0 }
 0x1c1   :  { %v1298_v4 = vsel %vm1297_vm2, %v7015_v42, %v1296_v33  ;;  %v3533_v14 = vmul.f32 %v4766_v40, %v7097_v15  ;;  %v2528_v3 = vmax.f32 %v2464_v63, 0.0  ;;  %v2666_v12 = vsub.s32 %v2581_v46, %v5813_v51 }
 0x1c2   :  { %v3762_v6 = vmul.f32 1.442695, %v3674_v23  ;;  %v4263_v38 = vadd.f32 %v7058_v37, %v4200_v31  ;;  %v1301_v30 = vsel %vm1299_vm3, %v1300_v62, %v1298_v4  ;;  %v3432_v36 = vmul.f32 1.442695, %v3342_v60  ;;  %v369_v62 = vpop.f32.mrf.mxu0  ;;  %v482_v4 = vpop.f32.mrf.mxu1 }
 0x1c3   :  { %v4768_v41 = vpop.eup %4767  ;;  %v3596_v28 = vadd.f32 %v3595_v29, %v3533_v14  ;;  %v3675_v25 = vmul.f32 %v6026_v49, %v1301_v30  ;;  %v4010_v16 = vmul.f32 %v6010_v0, %v2528_v3  ;;  %v7135_v37 = vadd.f32 %v8577_v44, %v7048_v5 }
 0x1c4   :  { %v4770_v50 = vpop.eup %4769  ;;  %v7138_v42 = vadd.f32 %v8576_v11, %v707_v59  ;;  %4773 = vpow2.f32 %v3762_v6  ;;  %v4201_v35 = vmul.f32 %v4768_v41, %v7097_v15  ;;  %v7142_v17 = vadd.f32 %v8577_v44, %v707_v59  ;;  %v1945_v41 = vpop.f32.mrf.mxu2 }
 0x1c5   :  { %8619 = vst [vmem:[#allocation26_spill] sm:$0xff] %v7135_v37  ;;  %v3764_v29 = vmul.f32 1.442695, %v3675_v25  ;;  %v1303_v33 = vmul.f32 %v4770_v50, %v7083_v27  ;;  %4775 = vpow2.f32 %v3432_v36  ;;  %v1312_v5 = vand.u32 2147483648, %v7083_v27  ;;  %v8624_v36 = vld [vmem:[#allocation15_spill] sm:$0xff] }
 0x1c6   :  { %8620 = vst [vmem:[#allocation29_spill] sm:$0xff] %v7138_v42  ;;  %v4772_v63 = vpop.eup %4771  ;;  %v4264_v40 = vadd.f32 %v4263_v38, %v4201_v35  ;;  %vm2956_vm0 = vcmp.eq.s32.totalorder %v2666_v12, 0  ;;  %v4100_v23 = vmul.f32 1.442695, %v4010_v16  ;;  %v2401_v47 = vmul.f32 2.0, %v2055_v34 }
 0x1c7   :  { %8621 = vst [vmem:[#allocation39_spill] sm:$0xff] %v7142_v17  ;;  %4777 = vpow2.f32 %v3764_v29  ;;  %v1304_v31 = vmul.f32 %v4770_v50, %v1303_v33  ;;  %v1315_v22 = vmul.f32 %v4772_v63, %v7100_v10  ;;  %vm1309_vm4 = vcmp.eq.f32.partialorder %v7083_v27, inf }
 0x1c8   :  { %4779 = vpow2.f32 %v4100_v23  ;;  %v2667_v14 = vsub.s32 %v2581_v46, %v5860_v9  ;;  %v3343_v3 = vmul.f32 %v5925_v56, %v7100_v10  ;;  %v826_v60 = vmul.f32 2.0, %v369_v62 }
 0x1c9   :  { %v1305_v6 = vmul.f32 0.5, %v1304_v31  ;;  %v1316_v38 = vmul.f32 %v4772_v63, %v1315_v22  ;;  %vm1311_vm5 = vcmp.eq.f32.partialorder %v7083_v27, 0.0  ;;  %v7153_v30 = vsel %vm2956_vm0, 0.0, %v8552_v2 }
 0x1ca   :  { %v2465_v12 = vsub.f32 %v6482_v48, %v2401_v47  ;;  %v4774_v59 = vpop.eup %4773  ;;  %vm1321_vm6 = vcmp.eq.f32.partialorder %v7100_v10, inf  ;;  %vm7157_vm7 = vcmp.eq.s32.totalorder %v2667_v14, 4294967168  ;;  %v3434_v46 = vmul.f32 1.442695, %v3343_v3 }
 0x1cb   :  { %v890_v16 = vsub.f32 %v8624_v36, %v826_v60  ;;  %v827_v35 = vmul.f32 2.0, %v482_v4  ;;  %v4776_v34 = vpop.eup %4775  ;;  %v3866_v29 = vmul.f32 %v4774_v59, %v7068_v61  ;;  %v1317_v33 = vmul.f32 0.5, %v1316_v38 }
 0x1cc   :  { %v1306_v62 = vsub.f32 1.5, %v1305_v6  ;;  %v2529_v23 = vmax.f32 %v2465_v12, 0.0  ;;  %v3534_v48 = vmul.f32 %v4776_v34, %v7153_v30  ;;  %4781 = vpow2.f32 %v3434_v46  ;;  %v8625_v6 = vld [vmem:[#allocation17_spill] sm:$0xff] }
 0x1cd   :  { %v7164_v31 = vmax.f32 %v890_v16, 0.0  ;;  %v2402_v22 = vmul.f32 2.0, %v1945_v41  ;;  %v4778_v47 = vpop.eup %4777  ;;  %v3929_v14 = vadd.f32 %v7085_v58, %v3866_v29  ;;  %v1318_v3 = vsub.f32 1.5, %v1317_v33  ;;  %v2258_v29 = vpop.permute.xlu2 %2257 }
 0x1ce   :  { %v1307_v37 = vmul.f32 %v4770_v50, %v1306_v62  ;;  %v4011_v60 = vmul.f32 %v6010_v0, %v2529_v23  ;;  %v4780_v4 = vpop.eup %4779  ;;  %v3867_v36 = vmul.f32 %v4778_v47, %v7097_v15  ;;  %v3597_v61 = vadd.f32 %v3596_v28, %v3534_v48 }
 0x1cf   :  { %4783 = vrsqrt.f32 %v7164_v31  ;;  %v891_v38 = vsub.f32 %v8625_v6, %v827_v35  ;;  %v4202_v59 = vmul.f32 %v4780_v4, %v7153_v30  ;;  %v1319_v41 = vmul.f32 %v4772_v63, %v1318_v3 }
 0x1d0   :  { %v1308_v12 = vmul.f32 %v1307_v37, %v7083_v27  ;;  %v4102_v46 = vmul.f32 1.442695, %v4011_v60  ;;  %v7173_v16 = vadd.f32 %v3929_v14, %v3867_v36  ;;  %vm1323_vm8 = vcmp.eq.f32.partialorder %v7100_v10, 0.0 }
 0x1d1   :  { %v7179_v58 = vsel %vm7157_vm7, 0.0, %v8555_v8  ;;  %v7181_v15 = vmax.f32 %v891_v38, 0.0  ;;  %v4265_v50 = vadd.f32 %v4264_v40, %v4202_v59  ;;  %v1320_v37 = vmul.f32 %v1319_v41, %v7100_v10 }
 0x1d2   :  { %v1310_v28 = vsel %vm1309_vm4, %v7083_v27, %v1308_v12  ;;  %4785 = vpow2.f32 %v4102_v46  ;;  %v4782_v63 = vpop.eup %4781  ;;  %v1324_v34 = vand.u32 2147483648, %v7100_v10  ;;  %v2466_v25 = vsub.f32 %v6580_v13, %v2402_v22  ;;  %v2058_v46 = vpop.f32.mrf.mxu3 }
 0x1d3   :  { %v1313_v35 = vsel %vm1311_vm5, %v1312_v5, %v1310_v28  ;;  %4787 = vrsqrt.f32 %v7181_v15  ;;  %v1322_v40 = vsel %vm1321_vm6, %v7100_v10, %v1320_v37  ;;  %v3535_v62 = vmul.f32 %v4782_v63, %v7179_v58  ;;  %v372_v63 = vpop.f32.mrf.mxu0 }
 0x1d4   :  { %v3676_v33 = vmul.f32 %v6026_v49, %v1313_v35  ;;  %v2582_v23 = vadd.s32 112, %v5857_v7  ;;  %v7199_v27 = vadd.f32 %v5819_v53, %v2258_v29  ;;  %v1325_v5 = vsel %vm1323_vm8, %v1324_v34, %v1322_v40 }
 0x1d5   :  { %v4784_v48 = vpop.eup %4783  ;;  %v2530_v47 = vmax.f32 %v2466_v25, 0.0  ;;  %v3344_v13 = vmul.f32 %v5925_v56, %v7164_v31  ;;  %v3598_v14 = vadd.f32 %v3597_v61, %v3535_v62  ;;  %v3677_v3 = vmul.f32 %v6026_v49, %v1325_v5 }
 0x1d6   :  { %v3766_v22 = vmul.f32 1.442695, %v3676_v33  ;;  %v1327_v60 = vmul.f32 %v4784_v48, %v7164_v31  ;;  %v7208_v4 = vadd.f32 %v5821_v55, %v2258_v29  ;;  %v2668_v36 = vsub.s32 %v2582_v23, %v5813_v51  ;;  %v485_v29 = vpop.f32.mrf.mxu1  ;;  %v1948_v33 = vpop.f32.mrf.mxu2 }
 0x1d7   :  { %v3436_v6 = vmul.f32 1.442695, %v3344_v13  ;;  %v4012_v38 = vmul.f32 %v6010_v0, %v2530_v47  ;;  %v3768_v12 = vmul.f32 1.442695, %v3677_v3  ;;  %v1336_v41 = vand.u32 2147483648, %v7164_v31 }
 0x1d8   :  { %v4786_v10 = vpop.eup %4785  ;;  %4789 = vpow2.f32 %v3766_v22  ;;  %v1328_v59 = vmul.f32 %v4784_v48, %v1327_v60  ;;  %vm1333_vm9 = vcmp.eq.f32.partialorder %v7164_v31, inf  ;;  %vm2958_vm10 = vcmp.eq.s32.totalorder %v2668_v36, 0 }
 0x1d9   :  { %v4788_v61 = vpop.eup %4787  ;;  %v4203_v28 = vmul.f32 %v4786_v10, %v7179_v58  ;;  %4791 = vpow2.f32 %v3436_v6  ;;  %v4104_v37 = vmul.f32 1.442695, %v4012_v38  ;;  %vm1335_vm11 = vcmp.eq.f32.partialorder %v7164_v31, 0.0 }
 0x1da   :  { %4793 = vpow2.f32 %v3768_v12  ;;  %v1329_v35 = vmul.f32 0.5, %v1328_v59  ;;  %v1339_v34 = vmul.f32 %v4788_v61, %v7181_v15  ;;  %v7218_v25 = vsel %vm2958_vm10, 0.0, %v8552_v2 }
 0x1db   :  { %v4266_v40 = vadd.f32 %v4265_v50, %v4203_v28  ;;  %4795 = vpow2.f32 %v4104_v37  ;;  %v2403_v62 = vmul.f32 2.0, %v2058_v46  ;;  %v2669_v5 = vsub.s32 %v2582_v23, %v5860_v9  ;;  %v8626_v37 = vld [vmem:[#allocation27_spill] sm:$0xff] }
 0x1dc   :  { %v1340_v47 = vmul.f32 %v4788_v61, %v1339_v34  ;;  %v1330_v13 = vsub.f32 1.5, %v1329_v35  ;;  %v3345_v22 = vmul.f32 %v5925_v56, %v7181_v15  ;;  %v828_v3 = vmul.f32 2.0, %v372_v63  ;;  %v8627_v34 = vld [vmem:[#allocation28_spill] sm:$0xff] }
 0x1dd   :  { %v2467_v60 = vsub.f32 %v6583_v57, %v2403_v62  ;;  %vm3151_vm12 = vcmp.eq.s32.totalorder %v2669_v5, 4294967168  ;;  %v829_v36 = vmul.f32 2.0, %v485_v29  ;;  %v2404_v6 = vmul.f32 2.0, %v1948_v33 }
 0x1de   :  { %v4790_v38 = vpop.eup %4789  ;;  %v1341_v10 = vmul.f32 0.5, %v1340_v47  ;;  %v1331_v12 = vmul.f32 %v4784_v48, %v1330_v13  ;;  %v7225_v50 = vsel %vm3151_vm12, 0.0, %v8555_v8  ;;  %v3438_v59 = vmul.f32 1.442695, %v3345_v22 }
 0x1df   :  { %v4792_v46 = vpop.eup %4791  ;;  %v3868_v23 = vmul.f32 %v4790_v38, %v7153_v30  ;;  %v2531_v28 = vmax.f32 %v2467_v60, 0.0  ;;  %v892_v35 = vsub.f32 %v8626_v37, %v828_v3  ;;  %v893_v63 = vsub.f32 %v8627_v34, %v829_v36 }
 0x1e0   :  { %v4794_v17 = vpop.eup %4793  ;;  %v1332_v57 = vmul.f32 %v1331_v12, %v7164_v31  ;;  %v3536_v29 = vmul.f32 %v4792_v46, %v7218_v25  ;;  %v1342_v33 = vsub.f32 1.5, %v1341_v10  ;;  %4797 = vpow2.f32 %v3438_v59 }
 0x1e1   :  { %v4796_v48 = vpop.eup %4795  ;;  %v3931_v62 = vadd.f32 %v7173_v16, %v3868_v23  ;;  %v3869_v5 = vmul.f32 %v4794_v17, %v7179_v58  ;;  %v4013_v47 = vmul.f32 %v6010_v0, %v2531_v28  ;;  %v7235_v30 = vmax.f32 %v892_v35, 0.0 }
 0x1e2   :  { %v1334_v13 = vsel %vm1333_vm9, %v7164_v31, %v1332_v57  ;;  %v3599_v22 = vadd.f32 %v3598_v14, %v3536_v29  ;;  %v4204_v3 = vmul.f32 %v4796_v48, %v7218_v25  ;;  %v1343_v60 = vmul.f32 %v4788_v61, %v1342_v33 }
 0x1e3   :  { %v7241_v36 = vadd.f32 %v3931_v62, %v3869_v5  ;;  %v1337_v38 = vsel %vm1335_vm11, %v1336_v41, %v1334_v13  ;;  %v4106_v16 = vmul.f32 1.442695, %v4013_v47  ;;  %4799 = vrsqrt.f32 %v7235_v30 }
 0x1e4   :  { %v3678_v17 = vmul.f32 %v6026_v49, %v1337_v38  ;;  %v4267_v58 = vadd.f32 %v4266_v40, %v4204_v3  ;;  %v1344_v10 = vmul.f32 %v1343_v60, %v7181_v15  ;;  %v7248_v12 = vmax.f32 %v893_v63, 0.0  ;;  %v2268_v40 = vpop.permute.xlu0 %2267  ;;  %v2061_v63 = vpop.f32.mrf.mxu3 }
 0x1e5   :  { %vm1345_vm13 = vcmp.eq.f32.partialorder %v7181_v15, inf  ;;  %vm1347_vm14 = vcmp.eq.f32.partialorder %v7181_v15, 0.0  ;;  %v1348_v14 = vand.u32 2147483648, %v7181_v15  ;;  %4801 = vpow2.f32 %v4106_v16 }
 0x1e6   :  { %v4798_v61 = vpop.eup %4797  ;;  %v3770_v31 = vmul.f32 1.442695, %v3678_v17  ;;  %v1346_v41 = vsel %vm1345_vm13, %v7181_v15, %v1344_v10  ;;  %4803 = vrsqrt.f32 %v7248_v12  ;;  %v2468_v59 = vsub.f32 %v6556_v43, %v2404_v6  ;;  %v7267_v6 = vpop.permute.xlu1 %2262 }
 0x1e7   :  { %v1349_v46 = vsel %vm1347_vm14, %v1348_v14, %v1346_v41  ;;  %v3537_v23 = vmul.f32 %v4798_v61, %v7225_v50  ;;  %v2583_v28 = vadd.s32 120, %v5857_v7  ;;  %v3346_v37 = vmul.f32 %v5925_v56, %v7235_v30 }
 0x1e8   :  { %v7261_v35 = vadd.f32 %v5819_v53, %v2268_v40  ;;  %4805 = vpow2.f32 %v3770_v31  ;;  %v3679_v34 = vmul.f32 %v6026_v49, %v1349_v46  ;;  %v2532_v15 = vmax.f32 %v2468_v59, 0.0  ;;  %v375_v59 = vpop.f32.mrf.mxu0 }
 0x1e9   :  { %v4800_v57 = vpop.eup %4799  ;;  %v7265_v43 = vadd.f32 %v5821_v55, %v2268_v40  ;;  %v3600_v29 = vadd.f32 %v3599_v22, %v3537_v23  ;;  %v2670_v33 = vsub.s32 %v2583_v28, %v5813_v51  ;;  %v3440_v48 = vmul.f32 1.442695, %v3346_v37  ;;  %v488_v40 = vpop.f32.mrf.mxu1 }
 0x1ea   :  { %v7272_v62 = vadd.f32 %v5819_v53, %v7267_v6  ;;  %v3772_v5 = vmul.f32 1.442695, %v3679_v34  ;;  %v1351_v47 = vmul.f32 %v4800_v57, %v7235_v30  ;;  %v4014_v13 = vmul.f32 %v6010_v0, %v2532_v15  ;;  %v1951_v15 = vpop.f32.mrf.mxu2 }
 0x1eb   :  { %v4802_v3 = vpop.eup %4801  ;;  %vm2960_vm15 = vcmp.eq.s32.totalorder %v2670_v33, 0  ;;  %4807 = vpow2.f32 %v3440_v48  ;;  %v2405_v60 = vmul.f32 2.0, %v2061_v63  ;;  %v2671_v38 = vsub.s32 %v2583_v28, %v5860_v9 }
 0x1ec   :  { %v4804_v16 = vpop.eup %4803  ;;  %4809 = vpow2.f32 %v3772_v5  ;;  %v4205_v22 = vmul.f32 %v4802_v3, %v7225_v50  ;;  %v1352_v17 = vmul.f32 %v4800_v57, %v1351_v47  ;;  %v1360_v10 = vand.u32 2147483648, %v7235_v30 }
 0x1ed   :  { %v1363_v14 = vmul.f32 %v4804_v16, %v7248_v12  ;;  %vm1357_vm1 = vcmp.eq.f32.partialorder %v7235_v30, inf  ;;  %v7282_v61 = vsel %vm2960_vm15, 0.0, %v8552_v2  ;;  %v4108_v31 = vmul.f32 1.442695, %v4014_v13 }
 0x1ee   :  { %v2469_v41 = vsub.f32 %v6571_v32, %v2405_v60  ;;  %v4806_v46 = vpop.eup %4805  ;;  %v4268_v23 = vadd.f32 %v4267_v58, %v4205_v22  ;;  %v1353_v28 = vmul.f32 0.5, %v1352_v17  ;;  %vm1359_vm2 = vcmp.eq.f32.partialorder %v7235_v30, 0.0 }
 0x1ef   :  { %vm7286_vm3 = vcmp.eq.s32.totalorder %v2671_v38, 4294967168  ;;  %v3347_v34 = vmul.f32 %v5925_v56, %v7248_v12  ;;  %v3870_v63 = vmul.f32 %v4806_v46, %v7218_v25  ;;  %v1364_v33 = vmul.f32 %v4804_v16, %v1363_v14  ;;  %v8630_v14 = vld [vmem:[#allocation30_spill] sm:$0xff] }
 0x1f0   :  { %4811 = vpow2.f32 %v4108_v31  ;;  %v2533_v32 = vmax.f32 %v2469_v41, 0.0  ;;  %v1354_v48 = vsub.f32 1.5, %v1353_v28  ;;  %vm1369_vm0 = vcmp.eq.f32.partialorder %v7248_v12, inf }
 0x1f1   :  { %v3442_v58 = vmul.f32 1.442695, %v3347_v34  ;;  %v830_v5 = vmul.f32 2.0, %v375_v59  ;;  %v831_v47 = vmul.f32 2.0, %v488_v40  ;;  %v4808_v13 = vpop.eup %4807  ;;  %v3933_v3 = vadd.f32 %v7241_v36, %v3870_v63  ;;  %v8631_v59 = vld [vmem:[#allocation31_spill] sm:$0xff] }
 0x1f2   :  { %v1365_v60 = vmul.f32 0.5, %v1364_v33  ;;  %v4015_v38 = vmul.f32 %v6010_v0, %v2533_v32  ;;  %v2406_v22 = vmul.f32 2.0, %v1951_v15  ;;  %v4810_v17 = vpop.eup %4809  ;;  %v1355_v42 = vmul.f32 %v4800_v57, %v1354_v48 }
 0x1f3   :  { %v3538_v25 = vmul.f32 %v4808_v13, %v7282_v61  ;;  %4813 = vpow2.f32 %v3442_v58  ;;  %v894_v31 = vsub.f32 %v8630_v14, %v830_v5  ;;  %v3871_v41 = vmul.f32 %v4810_v17, %v7225_v50  ;;  %v717_v14 = vpop.permute.xlu2 %716 }
 0x1f4   :  { %v1366_v46 = vsub.f32 1.5, %v1365_v60  ;;  %v4110_v28 = vmul.f32 1.442695, %v4015_v38  ;;  %v895_v40 = vsub.f32 %v8631_v59, %v831_v47  ;;  %v1356_v34 = vmul.f32 %v1355_v42, %v7235_v30 }
 0x1f5   :  { %v3601_v36 = vadd.f32 %v3600_v29, %v3538_v25  ;;  %v7301_v63 = vmax.f32 %v894_v31, 0.0  ;;  %v2470_v15 = vsub.f32 %v6745_v52, %v2406_v22  ;;  %v7304_v57 = vadd.f32 %v3933_v3, %v3871_v41 }
 0x1f6   :  { %v4812_v33 = vpop.eup %4811  ;;  %v1367_v32 = vmul.f32 %v4804_v16, %v1366_v46  ;;  %4815 = vpow2.f32 %v4110_v28  ;;  %v7306_v48 = vmax.f32 %v895_v40, 0.0  ;;  %v1358_v50 = vsel %vm1357_vm1, %v7235_v30, %v1356_v34 }
 0x1f7   :  { %v4206_v58 = vmul.f32 %v4812_v33, %v7282_v61  ;;  %v7315_v42 = vsel %vm7286_vm3, 0.0, %v8555_v8  ;;  %4817 = vrsqrt.f32 %v7301_v63  ;;  %v1361_v52 = vsel %vm1359_vm2, %v1360_v10, %v1358_v50 }
 0x1f8   :  { %v1368_v29 = vmul.f32 %v1367_v32, %v7248_v12  ;;  %vm1371_vm4 = vcmp.eq.f32.partialorder %v7248_v12, 0.0  ;;  %4819 = vrsqrt.f32 %v7306_v48  ;;  %v3680_v5 = vmul.f32 %v6026_v49, %v1361_v52 }
 0x1f9   :  { %v4814_v16 = vpop.eup %4813  ;;  %v4269_v47 = vadd.f32 %v4268_v23, %v4206_v58  ;;  %v1372_v13 = vand.u32 2147483648, %v7248_v12  ;;  %v2534_v37 = vmax.f32 %v2470_v15, 0.0  ;;  %v2584_v10 = vadd.s32 128, %v5857_v7  ;;  %v2064_v15 = vpop.f32.mrf.mxu3 }
 0x1fa   :  { %v1370_v3 = vsel %vm1369_vm0, %v7248_v12, %v1368_v29  ;;  %v3539_v30 = vmul.f32 %v4814_v16, %v7315_v42  ;;  %v3348_v60 = vmul.f32 %v5925_v56, %v7301_v63  ;;  %v7334_v38 = vadd.f32 %v5821_v55, %v7267_v6  ;;  %v727_v6 = vpop.permute.xlu0 %726  ;;  %v378_v58 = vpop.f32.mrf.mxu0 }
 0x1fb   :  { %v3774_v22 = vmul.f32 1.442695, %v3680_v5  ;;  %v1373_v23 = vsel %vm1371_vm4, %v1372_v13, %v1370_v3  ;;  %v4016_v17 = vmul.f32 %v6010_v0, %v2534_v37  ;;  %v2672_v41 = vsub.s32 %v2584_v10, %v5813_v51 }
 0x1fc   :  { %v4816_v25 = vpop.eup %4815  ;;  %v3602_v31 = vadd.f32 %v3601_v36, %v3539_v30  ;;  %v3681_v12 = vmul.f32 %v6026_v49, %v1373_v23  ;;  %v3444_v46 = vmul.f32 1.442695, %v3348_v60  ;;  %v7340_v59 = vadd.f32 %v8576_v11, %v717_v14 }
 0x1fd   :  { %v4818_v28 = vpop.eup %4817  ;;  %v7343_v40 = vadd.f32 %v8577_v44, %v717_v14  ;;  %4821 = vpow2.f32 %v3774_v22  ;;  %v4207_v34 = vmul.f32 %v4816_v25, %v7315_v42  ;;  %v7347_v36 = vadd.f32 %v8576_v11, %v727_v6  ;;  %v491_v22 = vpop.f32.mrf.mxu1 }
 0x1fe   :  { %v4820_v33 = vpop.eup %4819  ;;  %v3776_v32 = vmul.f32 1.442695, %v3681_v12  ;;  %v1375_v50 = vmul.f32 %v4818_v28, %v7301_v63  ;;  %4823 = vpow2.f32 %v3444_v46  ;;  %vm3026_vm5 = vcmp.eq.s32.totalorder %v2672_v41, 128 }
 0x1ff   :  { %8632 = vst [vmem:[#allocation15_spill] sm:$0xff] %v7347_v36  ;;  %v7350_v52 = vadd.f32 %v4269_v47, %v4207_v34  ;;  %v1387_v29 = vmul.f32 %v4820_v33, %v7306_v48  ;;  %v4112_v16 = vmul.f32 1.442695, %v4016_v17  ;;  %v7354_v5 = vadd.f32 %v8577_v44, %v727_v6  ;;  %v1954_v47 = vpop.f32.mrf.mxu2  ;;  %v8634_v6 = vld [vmem:[#allocation20_spill] sm:$0xff] }
 0x200   :  { %4825 = vpow2.f32 %v3776_v32  ;;  %v1376_v13 = vmul.f32 %v4818_v28, %v1375_v50  ;;  %v2407_v37 = vmul.f32 2.0, %v2064_v15  ;;  %vm1381_vm6 = vcmp.eq.f32.partialorder %v7301_v63, inf }
 0x201   :  { %8633 = vst [vmem:[#allocation17_spill] sm:$0xff] %v7354_v5  ;;  %v1388_v3 = vmul.f32 %v4820_v33, %v1387_v29  ;;  %v3349_v30 = vmul.f32 %v5925_v56, %v7306_v48  ;;  %v832_v60 = vmul.f32 2.0, %v378_v58  ;;  %vm1383_vm7 = vcmp.eq.f32.partialorder %v7301_v63, 0.0 }
 0x202   :  { %v1377_v23 = vmul.f32 0.5, %v1376_v13  ;;  %v7361_v17 = vsel %vm3026_vm5, 0.0, %v8555_v8  ;;  %v2471_v25 = vsub.f32 %v6748_v45, %v2407_v37  ;;  %v2673_v14 = vsub.s32 %v2584_v10, %v5860_v9 }
 0x203   :  { %v4822_v12 = vpop.eup %4821  ;;  %v1389_v41 = vmul.f32 0.5, %v1388_v3  ;;  %4827 = vpow2.f32 %v4112_v16  ;;  %v3446_v46 = vmul.f32 1.442695, %v3349_v30  ;;  %v896_v34 = vsub.f32 %v8634_v6, %v832_v60 }
 0x204   :  { %v4824_v15 = vpop.eup %4823  ;;  %v3872_v32 = vmul.f32 %v4822_v12, %v7282_v61  ;;  %v1378_v50 = vsub.f32 1.5, %v1377_v23  ;;  %v833_v58 = vmul.f32 2.0, %v491_v22  ;;  %v2408_v29 = vmul.f32 2.0, %v1954_v47  ;;  %v8635_v47 = vld [vmem:[#allocation21_spill] sm:$0xff] }
 0x205   :  { %v3540_v13 = vmul.f32 %v4824_v15, %v7361_v17  ;;  %v1390_v5 = vsub.f32 1.5, %v1389_v41  ;;  %4829 = vpow2.f32 %v3446_v46  ;;  %v7368_v36 = vmax.f32 %v896_v34, 0.0 }
 0x206   :  { %v4826_v45 = vpop.eup %4825  ;;  %v3935_v10 = vadd.f32 %v7304_v57, %v3872_v32  ;;  %v1379_v37 = vmul.f32 %v4818_v28, %v1378_v50  ;;  %v2535_v16 = vmax.f32 %v2471_v25, 0.0  ;;  %vm2963_vm8 = vcmp.eq.s32.totalorder %v2673_v14, 0 }
 0x207   :  { %v3873_v3 = vmul.f32 %v4826_v45, %v7315_v42  ;;  %v3603_v30 = vadd.f32 %v3602_v31, %v3540_v13  ;;  %v1391_v60 = vmul.f32 %v4820_v33, %v1390_v5  ;;  %4831 = vrsqrt.f32 %v7368_v36  ;;  %v722_v13 = vpop.permute.xlu1 %721 }
 0x208   :  { %v1380_v61 = vmul.f32 %v1379_v37, %v7301_v63  ;;  %v1384_v22 = vand.u32 2147483648, %v7301_v63  ;;  %vm1393_vm9 = vcmp.eq.f32.partialorder %v7306_v48, inf  ;;  %v897_v23 = vsub.f32 %v8635_v47, %v833_v58  ;;  %v2067_v47 = vpop.f32.mrf.mxu3 }
 0x209   :  { %v4828_v12 = vpop.eup %4827  ;;  %v7377_v41 = vadd.f32 %v3935_v10, %v3873_v3  ;;  %v1392_v57 = vmul.f32 %v1391_v60, %v7306_v48  ;;  %vm1395_vm10 = vcmp.eq.f32.partialorder %v7306_v48, 0.0  ;;  %v7382_v42 = vsel %vm2963_vm8, 0.0, %v8552_v2 }
 0x20a   :  { %v1382_v31 = vsel %vm1381_vm6, %v7301_v63, %v1380_v61  ;;  %v1396_v28 = vand.u32 2147483648, %v7306_v48  ;;  %v4017_v33 = vmul.f32 %v6010_v0, %v2535_v16  ;;  %v7389_v5 = vmax.f32 %v897_v23, 0.0 }
 0x20b   :  { %v4830_v25 = vpop.eup %4829  ;;  %v1385_v14 = vsel %vm1383_vm7, %v1384_v22, %v1382_v31  ;;  %v1394_v46 = vsel %vm1393_vm9, %v7306_v48, %v1392_v57  ;;  %v2472_v6 = vsub.f32 %v6824_v18, %v2408_v29  ;;  %v2585_v34 = vadd.s32 136, %v5857_v7 }
 0x20c   :  { %v3682_v15 = vmul.f32 %v6026_v49, %v1385_v14  ;;  %v1397_v32 = vsel %vm1395_vm10, %v1396_v28, %v1394_v46  ;;  %v3541_v50 = vmul.f32 %v4830_v25, %v7382_v42  ;;  %4833 = vrsqrt.f32 %v7389_v5 }
 0x20d   :  { %v4832_v58 = vpop.eup %4831  ;;  %v3683_v45 = vmul.f32 %v6026_v49, %v1397_v32  ;;  %v2536_v10 = vmax.f32 %v2472_v6, 0.0  ;;  %v2674_v63 = vsub.s32 %v2585_v34, %v5813_v51  ;;  %v3350_v48 = vmul.f32 %v5925_v56, %v7368_v36 }
 0x20e   :  { %v7404_v18 = vadd.f32 %v8576_v11, %v722_v13  ;;  %v3778_v29 = vmul.f32 1.442695, %v3682_v15  ;;  %v7406_v37 = vadd.f32 %v3603_v30, %v3541_v50  ;;  %v1399_v16 = vmul.f32 %v4832_v58, %v7368_v36  ;;  %v381_v30 = vpop.f32.mrf.mxu0 }
 0x20f   :  { %v3780_v3 = vmul.f32 1.442695, %v3683_v45  ;;  %v4114_v60 = vmul.f32 1.442695, %v4017_v33  ;;  %v3448_v61 = vmul.f32 1.442695, %v3350_v48  ;;  %v4018_v22 = vmul.f32 %v6010_v0, %v2536_v10 }
 0x210   :  { %v7411_v23 = vadd.f32 %v8577_v44, %v722_v13  ;;  %4835 = vpow2.f32 %v3778_v29  ;;  %v4208_v57 = vmul.f32 %v4828_v12, %v7361_v17  ;;  %v1400_v31 = vmul.f32 %v4832_v58, %v1399_v16  ;;  %v494_v44 = vpop.f32.mrf.mxu1 }
 0x211   :  { %4837 = vpow2.f32 %v3780_v3  ;;  %vm1405_vm11 = vcmp.eq.f32.partialorder %v7368_v36, inf  ;;  %vm3028_vm12 = vcmp.eq.s32.totalorder %v2674_v63, 128  ;;  %v4116_v11 = vmul.f32 1.442695, %v4018_v22  ;;  %v8638_v3 = vld [vmem:[#allocation32_spill] sm:$0xff] }
 0x212   :  { %v4834_v28 = vpop.eup %4833  ;;  %v1401_v25 = vmul.f32 0.5, %v1400_v31  ;;  %vm1407_vm13 = vcmp.eq.f32.partialorder %v7368_v36, 0.0  ;;  %4839 = vpow2.f32 %v3448_v61  ;;  %v2409_v33 = vmul.f32 2.0, %v2067_v47 }
 0x213   :  { %v2675_v14 = vsub.s32 %v2585_v34, %v5860_v9  ;;  %4841 = vpow2.f32 %v4114_v60  ;;  %v1411_v46 = vmul.f32 %v4834_v28, %v7389_v5  ;;  %v1408_v12 = vand.u32 2147483648, %v7368_v36 }
 0x214   :  { %v3351_v6 = vmul.f32 %v5925_v56, %v7389_v5  ;;  %v1402_v15 = vsub.f32 1.5, %v1401_v25  ;;  %v7422_v32 = vsel %vm3028_vm12, 0.0, %v8555_v8  ;;  %v2473_v50 = vsub.f32 %v6829_v24, %v2409_v33  ;;  %v8639_v24 = vld [vmem:[#allocation33_spill] sm:$0xff] }
 0x215   :  { %v834_v13 = vmul.f32 2.0, %v381_v30  ;;  %v1412_v45 = vmul.f32 %v4834_v28, %v1411_v46  ;;  %4843 = vpow2.f32 %v4116_v11  ;;  %v835_v34 = vmul.f32 2.0, %v494_v44  ;;  %v1957_v30 = vpop.f32.mrf.mxu2 }
 0x216   :  { %v3450_v10 = vmul.f32 1.442695, %v3351_v6  ;;  %v4836_v63 = vpop.eup %4835  ;;  %v1403_v48 = vmul.f32 %v4832_v58, %v1402_v15  ;;  %v2537_v29 = vmax.f32 %v2473_v50, 0.0  ;;  %vm7425_vm14 = vcmp.eq.s32.totalorder %v2675_v14, 0 }
 0x217   :  { %v898_v60 = vsub.f32 %v8638_v3, %v834_v13  ;;  %v4838_v61 = vpop.eup %4837  ;;  %v3874_v22 = vmul.f32 %v4836_v63, %v7361_v17  ;;  %v1413_v47 = vmul.f32 0.5, %v1412_v45  ;;  %v899_v31 = vsub.f32 %v8639_v24, %v835_v34  ;;  %v2273_v34 = vpop.permute.xlu2 %2272 }
 0x218   :  { %4845 = vpow2.f32 %v3450_v10  ;;  %v4840_v11 = vpop.eup %4839  ;;  %v3875_v25 = vmul.f32 %v4838_v61, %v7382_v42  ;;  %v1404_v58 = vmul.f32 %v1403_v48, %v7368_v36  ;;  %v4019_v33 = vmul.f32 %v6010_v0, %v2537_v29 }
 0x219   :  { %v7435_v14 = vmax.f32 %v898_v60, 0.0  ;;  %v4842_v44 = vpop.eup %4841  ;;  %v3937_v46 = vadd.f32 %v7377_v41, %v3874_v22  ;;  %v3542_v6 = vmul.f32 %v4840_v11, %v7422_v32  ;;  %v1414_v17 = vsub.f32 1.5, %v1413_v47 }
 0x21a   :  { %v7439_v15 = vmax.f32 %v899_v31, 0.0  ;;  %v1406_v50 = vsel %vm1405_vm11, %v7368_v36, %v1404_v58  ;;  %v7447_v13 = vsel %vm7425_vm14, 0.0, %v8552_v2  ;;  %v2410_v45 = vmul.f32 2.0, %v1957_v30  ;;  %v2070_v30 = vpop.f32.mrf.mxu3 }
 0x21b   :  { %4847 = vrsqrt.f32 %v7435_v14  ;;  %v4844_v10 = vpop.eup %4843  ;;  %v7450_v41 = vadd.f32 %v3937_v46, %v3875_v25  ;;  %v1409_v63 = vsel %vm1407_vm13, %v1408_v12, %v1406_v50  ;;  %v3605_v48 = vadd.f32 %v7406_v37, %v3542_v6 }
 0x21c   :  { %v1415_v29 = vmul.f32 %v4834_v28, %v1414_v17  ;;  %v7456_v3 = vadd.f32 %v5819_v53, %v2273_v34  ;;  %v4271_v16 = vadd.f32 %v7350_v52, %v4208_v57  ;;  %v3684_v60 = vmul.f32 %v6026_v49, %v1409_v63 }
 0x21d   :  { %vm1417_vm15 = vcmp.eq.f32.partialorder %v7389_v5, inf  ;;  %v1420_v47 = vand.u32 2147483648, %v7389_v5  ;;  %v4118_v24 = vmul.f32 1.442695, %v4019_v33  ;;  %4849 = vrsqrt.f32 %v7439_v15 }
 0x21e   :  { %v4846_v61 = vpop.eup %4845  ;;  %v1416_v22 = vmul.f32 %v1415_v29, %v7389_v5  ;;  %v3782_v36 = vmul.f32 1.442695, %v3684_v60  ;;  %v2474_v28 = vsub.f32 %v6764_v39, %v2410_v45  ;;  %v2586_v12 = vadd.s32 144, %v5857_v7 }
 0x21f   :  { %v3543_v37 = vmul.f32 %v4846_v61, %v7447_v13  ;;  %v4209_v52 = vmul.f32 %v4842_v44, %v7382_v42  ;;  %vm1419_vm1 = vcmp.eq.f32.partialorder %v7389_v5, 0.0  ;;  %v3352_v31 = vmul.f32 %v5925_v56, %v7435_v14 }
 0x220   :  { %v1418_v57 = vsel %vm1417_vm15, %v7389_v5, %v1416_v22  ;;  %4851 = vpow2.f32 %v3782_v36  ;;  %v2538_v33 = vmax.f32 %v2474_v28, 0.0  ;;  %v2676_v6 = vsub.s32 %v2586_v12, %v5813_v51 }
 0x221   :  { %v4848_v11 = vpop.eup %4847  ;;  %v1421_v25 = vsel %vm1419_vm1, %v1420_v47, %v1418_v57  ;;  %v3606_v58 = vadd.f32 %v3605_v48, %v3543_v37  ;;  %v3452_v42 = vmul.f32 1.442695, %v3352_v31  ;;  %v7476_v44 = vadd.f32 %v5821_v55, %v2273_v34  ;;  %v384_v47 = vpop.f32.mrf.mxu0 }
 0x222   :  { %v3685_v46 = vmul.f32 %v6026_v49, %v1421_v25  ;;  %v1423_v39 = vmul.f32 %v4848_v11, %v7435_v14  ;;  %v7478_v5 = vadd.f32 %v4271_v16, %v4209_v52  ;;  %4853 = vpow2.f32 %v4118_v24  ;;  %v497_v24 = vpop.f32.mrf.mxu1  ;;  %v1960_v57 = vpop.f32.mrf.mxu2 }
 0x223   :  { %v2411_v17 = vmul.f32 2.0, %v2070_v30  ;;  %v4850_v50 = vpop.eup %4849  ;;  %vm7480_vm2 = vcmp.eq.s32.totalorder %v2676_v6, 128  ;;  %v4020_v29 = vmul.f32 %v6010_v0, %v2538_v33  ;;  %v7486_v60 = vmul.f32 %v4844_v10, %v7422_v32 }
 0x224   :  { %v3784_v45 = vmul.f32 1.442695, %v3685_v46  ;;  %v1424_v63 = vmul.f32 %v4848_v11, %v1423_v39  ;;  %v1435_v61 = vmul.f32 %v4850_v50, %v7439_v15  ;;  %vm1429_vm3 = vcmp.eq.f32.partialorder %v7435_v14, inf }
 0x225   :  { %4855 = vpow2.f32 %v3452_v42  ;;  %vm1431_vm0 = vcmp.eq.f32.partialorder %v7435_v14, 0.0  ;;  %v2475_v16 = vsub.f32 %v6770_v54, %v2411_v17  ;;  %v2677_v22 = vsub.s32 %v2586_v12, %v5860_v9 }
 0x226   :  { %4857 = vpow2.f32 %v3784_v45  ;;  %v1425_v34 = vmul.f32 0.5, %v1424_v63  ;;  %v4852_v36 = vpop.eup %4851  ;;  %v1436_v37 = vmul.f32 %v4850_v50, %v1435_v61  ;;  %v1432_v10 = vand.u32 2147483648, %v7435_v14 }
 0x227   :  { %v7497_v28 = vsel %vm7480_vm2, 0.0, %v8555_v8  ;;  %v3353_v52 = vmul.f32 %v5925_v56, %v7439_v15  ;;  %v3876_v31 = vmul.f32 %v4852_v36, %v7422_v32  ;;  %v4120_v30 = vmul.f32 1.442695, %v4020_v29  ;;  %v8644_v32 = vld [vmem:[#allocation34_spill] sm:$0xff]  ;;  %v8645_v29 = vld [vmem:[#allocation35_spill] sm:$0xff] }
 0x228   :  { %v1426_v54 = vsub.f32 1.5, %v1425_v34  ;;  %v2539_v12 = vmax.f32 %v2475_v16, 0.0  ;;  %v4854_v25 = vpop.eup %4853  ;;  %v1437_v33 = vmul.f32 0.5, %v1436_v37  ;;  %v836_v39 = vmul.f32 2.0, %v384_v47 }
 0x229   :  { %v3454_v46 = vmul.f32 1.442695, %v3353_v52  ;;  %v837_v6 = vmul.f32 2.0, %v497_v24  ;;  %v3939_v42 = vadd.f32 %v7450_v41, %v3876_v31  ;;  %vm7503_vm4 = vcmp.eq.s32.totalorder %v2677_v22, 0 }
 0x22a   :  { %v1427_v17 = vmul.f32 %v4848_v11, %v1426_v54  ;;  %v2412_v63 = vmul.f32 2.0, %v1960_v57  ;;  %v1438_v61 = vsub.f32 1.5, %v1437_v33  ;;  %v900_v34 = vsub.f32 %v8644_v32, %v836_v39 }
 0x22b   :  { %v4856_v48 = vpop.eup %4855  ;;  %4859 = vpow2.f32 %v3454_v46  ;;  %v901_v16 = vsub.f32 %v8645_v29, %v837_v6  ;;  %v4021_v41 = vmul.f32 %v6010_v0, %v2539_v12  ;;  %v7524_v33 = vsel %vm7503_vm4, 0.0, %v8552_v2 }
 0x22c   :  { %v4858_v36 = vpop.eup %4857  ;;  %v1428_v37 = vmul.f32 %v1427_v17, %v7435_v14  ;;  %v3544_v47 = vmul.f32 %v4856_v48, %v7497_v28  ;;  %v2476_v11 = vsub.f32 %v6936_v1, %v2412_v63  ;;  %v1439_v24 = vmul.f32 %v4850_v50, %v1438_v61 }
 0x22d   :  { %v3877_v22 = vmul.f32 %v4858_v36, %v7447_v13  ;;  %v7514_v52 = vmax.f32 %v900_v34, 0.0  ;;  %v7516_v57 = vmax.f32 %v901_v16, 0.0  ;;  %4861 = vpow2.f32 %v4120_v30  ;;  %v2073_v34 = vpop.f32.mrf.mxu3  ;;  %v7551_v36 = vpop.permute.xlu1 %2277 }
 0x22e   :  { %v1430_v31 = vsel %vm1429_vm3, %v7435_v14, %v1428_v37  ;;  %v3607_v54 = vadd.f32 %v3606_v58, %v3544_v47  ;;  %v1440_v50 = vmul.f32 %v1439_v24, %v7439_v15  ;;  %vm1441_vm5 = vcmp.eq.f32.partialorder %v7439_v15, inf }
 0x22f   :  { %v7526_v12 = vadd.f32 %v3939_v42, %v3877_v22  ;;  %v1433_v1 = vsel %vm1431_vm0, %v1432_v10, %v1430_v31  ;;  %4863 = vrsqrt.f32 %v7514_v52  ;;  %v1444_v58 = vand.u32 2147483648, %v7439_v15  ;;  %v2288_v10 = vpop.permute.xlu0 %2287 }
 0x230   :  { %v3686_v46 = vmul.f32 %v6026_v49, %v1433_v1  ;;  %4865 = vrsqrt.f32 %v7516_v57  ;;  %v1442_v39 = vsel %vm1441_vm5, %v7439_v15, %v1440_v50  ;;  %vm1443_vm6 = vcmp.eq.f32.partialorder %v7439_v15, 0.0 }
 0x231   :  { %v4860_v30 = vpop.eup %4859  ;;  %v4122_v6 = vmul.f32 1.442695, %v4021_v41  ;;  %v2540_v14 = vmax.f32 %v2476_v11, 0.0  ;;  %v1445_v17 = vsel %vm1443_vm6, %v1444_v58, %v1442_v39  ;;  %v2587_v63 = vadd.s32 152, %v5857_v7  ;;  %v500_v39 = vpop.f32.mrf.mxu1 }
 0x232   :  { %v3786_v42 = vmul.f32 1.442695, %v3686_v46  ;;  %v3545_v45 = vmul.f32 %v4860_v30, %v7524_v33  ;;  %v7541_v48 = vadd.f32 %v5819_v53, %v2288_v10  ;;  %v4273_v61 = vadd.f32 %v7478_v5, %v7486_v60  ;;  %v387_v46 = vpop.f32.mrf.mxu0 }
 0x233   :  { %v3687_v32 = vmul.f32 %v6026_v49, %v1445_v17  ;;  %v3354_v15 = vmul.f32 %v5925_v56, %v7514_v52  ;;  %v4862_v29 = vpop.eup %4861  ;;  %v7549_v16 = vadd.f32 %v5821_v55, %v2288_v10  ;;  %v2678_v47 = vsub.s32 %v2587_v63, %v5813_v51 }
 0x234   :  { %4867 = vpow2.f32 %v3786_v42  ;;  %v3608_v37 = vadd.f32 %v3607_v54, %v3545_v45  ;;  %v7556_v5 = vadd.f32 %v5819_v53, %v7551_v36  ;;  %v4211_v60 = vmul.f32 %v4854_v25, %v7447_v13 }
 0x235   :  { %v4864_v41 = vpop.eup %4863  ;;  %v3788_v11 = vmul.f32 1.442695, %v3687_v32  ;;  %v3456_v22 = vmul.f32 1.442695, %v3354_v15  ;;  %4869 = vpow2.f32 %v4122_v6  ;;  %v4022_v1 = vmul.f32 %v6010_v0, %v2540_v14 }
 0x236   :  { %v4866_v24 = vpop.eup %4865  ;;  %v1447_v31 = vmul.f32 %v4864_v41, %v7514_v52  ;;  %v2413_v50 = vmul.f32 2.0, %v2073_v34  ;;  %v7561_v54 = vadd.f32 %v4273_v61, %v4211_v60  ;;  %v7564_v58 = vmul.f32 %v4862_v29, %v7497_v28  ;;  %v1963_v29 = vpop.f32.mrf.mxu2 }
 0x237   :  { %4871 = vpow2.f32 %v3788_v11  ;;  %v1459_v30 = vmul.f32 %v4866_v24, %v7516_v57  ;;  %vm7567_vm7 = vcmp.eq.s32.totalorder %v2678_v47, 128  ;;  %vm1453_vm8 = vcmp.eq.f32.partialorder %v7514_v52, inf }
 0x238   :  { %v1448_v13 = vmul.f32 %v4864_v41, %v1447_v31  ;;  %4873 = vpow2.f32 %v3456_v22  ;;  %v2477_v6 = vsub.f32 %v6950_v20, %v2413_v50  ;;  %v1456_v10 = vand.u32 2147483648, %v7514_v52 }
 0x239   :  { %v1460_v14 = vmul.f32 %v4866_v24, %v1459_v30  ;;  %v3355_v42 = vmul.f32 %v5925_v56, %v7516_v57  ;;  %v838_v17 = vmul.f32 2.0, %v387_v46  ;;  %vm1455_vm9 = vcmp.eq.f32.partialorder %v7514_v52, 0.0 }
 0x23a   :  { %v4868_v45 = vpop.eup %4867  ;;  %v1449_v61 = vmul.f32 0.5, %v1448_v13  ;;  %v4124_v32 = vmul.f32 1.442695, %v4022_v1  ;;  %v2679_v15 = vsub.s32 %v2587_v63, %v5860_v9  ;;  %v839_v34 = vmul.f32 2.0, %v500_v39 }
 0x23b   :  { %v3878_v20 = vmul.f32 %v4868_v45, %v7497_v28  ;;  %v1461_v47 = vmul.f32 0.5, %v1460_v14  ;;  %v7582_v60 = vsel %vm7567_vm7, 0.0, %v8555_v8  ;;  %v3458_v11 = vmul.f32 1.442695, %v3355_v42  ;;  %v4870_v22 = vpop.eup %4869 }
 0x23c   :  { %v1450_v31 = vsub.f32 1.5, %v1449_v61  ;;  %v2541_v50 = vmax.f32 %v2477_v6, 0.0  ;;  %v902_v46 = vsub.f32 %v6649_v19, %v838_v17  ;;  %v903_v1 = vsub.f32 %v6652_v21, %v839_v34 }
 0x23d   :  { %v4872_v30 = vpop.eup %4871  ;;  %v3941_v63 = vadd.f32 %v7526_v12, %v3878_v20  ;;  %v1462_v39 = vsub.f32 1.5, %v1461_v47  ;;  %4875 = vpow2.f32 %v3458_v11  ;;  %v2414_v28 = vmul.f32 2.0, %v1963_v29  ;;  %v2283_v11 = vpop.permute.xlu2 %2282 }
 0x23e   :  { %v4874_v13 = vpop.eup %4873  ;;  %v3879_v14 = vmul.f32 %v4872_v30, %v7524_v33  ;;  %v1451_v25 = vmul.f32 %v4864_v41, %v1450_v31  ;;  %vm2969_vm10 = vcmp.eq.s32.totalorder %v2679_v15, 0  ;;  %v7588_v45 = vmax.f32 %v902_v46, 0.0 }
 0x23f   :  { %v3546_v42 = vmul.f32 %v4874_v13, %v7582_v60  ;;  %v1463_v6 = vmul.f32 %v4866_v24, %v1462_v39  ;;  %v7591_v61 = vmax.f32 %v903_v1, 0.0  ;;  %v2478_v19 = vsub.f32 %v6970_v26, %v2414_v28 }
 0x240   :  { %v7594_v21 = vadd.f32 %v3941_v63, %v3879_v14  ;;  %v1452_v12 = vmul.f32 %v1451_v25, %v7514_v52  ;;  %4877 = vpow2.f32 %v4124_v32  ;;  %vm1465_vm11 = vcmp.eq.f32.partialorder %v7516_v57, inf }
 0x241   :  { %v3609_v17 = vadd.f32 %v3608_v37, %v3546_v42  ;;  %v1464_v41 = vmul.f32 %v1463_v6, %v7516_v57  ;;  %v7600_v15 = vsel %vm2969_vm10, 0.0, %v8552_v2  ;;  %4879 = vrsqrt.f32 %v7588_v45  ;;  %v2076_v6 = vpop.f32.mrf.mxu3 }
 0x242   :  { %v1454_v24 = vsel %vm1453_vm8, %v7514_v52, %v1452_v12  ;;  %vm1467_vm12 = vcmp.eq.f32.partialorder %v7516_v57, 0.0  ;;  %v1468_v26 = vand.u32 2147483648, %v7516_v57  ;;  %4881 = vrsqrt.f32 %v7591_v61  ;;  %v2303_v52 = vpop.permute.xlu0 %2302 }
 0x243   :  { %v4876_v32 = vpop.eup %4875  ;;  %v1457_v37 = vsel %vm1455_vm9, %v1456_v10, %v1454_v24  ;;  %v1466_v34 = vsel %vm1465_vm11, %v7516_v57, %v1464_v41  ;;  %v4023_v29 = vmul.f32 %v6010_v0, %v2541_v50  ;;  %v2542_v20 = vmax.f32 %v2478_v19, 0.0  ;;  %v390_v24 = vpop.f32.mrf.mxu0 }
 0x244   :  { %v7615_v47 = vadd.f32 %v5821_v55, %v7551_v36  ;;  %v3688_v31 = vmul.f32 %v6026_v49, %v1457_v37  ;;  %v1469_v46 = vsel %vm1467_vm12, %v1468_v26, %v1466_v34  ;;  %v3547_v1 = vmul.f32 %v4876_v32, %v7600_v15 }
 0x245   :  { %v7620_v30 = vadd.f32 %v5819_v53, %v2283_v11  ;;  %v4275_v57 = vadd.f32 %v7561_v54, %v7564_v58  ;;  %v3689_v10 = vmul.f32 %v6026_v49, %v1469_v46  ;;  %v3356_v50 = vmul.f32 %v5925_v56, %v7588_v45 }
 0x246   :  { %v4878_v36 = vpop.eup %4877  ;;  %v3790_v63 = vmul.f32 1.442695, %v3688_v31  ;;  %v7627_v39 = vadd.f32 %v3609_v17, %v3547_v1  ;;  %v7630_v28 = vadd.s32 160, %v5857_v7  ;;  %v4024_v13 = vmul.f32 %v6010_v0, %v2542_v20 }
 0x247   :  { %v4880_v14 = vpop.eup %4879  ;;  %v7634_v25 = vadd.f32 %v5821_v55, %v2283_v11  ;;  %v4213_v54 = vmul.f32 %v4870_v22, %v7524_v33  ;;  %v3792_v58 = vmul.f32 1.442695, %v3689_v10  ;;  %v4126_v42 = vmul.f32 1.442695, %v4023_v29  ;;  %v503_v33 = vpop.f32.mrf.mxu1 }
 0x248   :  { %v4882_v19 = vpop.eup %4881  ;;  %v7638_v12 = vadd.f32 %v5819_v53, %v2303_v52  ;;  %v7641_v17 = vadd.f32 %v5821_v55, %v2303_v52  ;;  %4883 = vpow2.f32 %v3790_v63  ;;  %v1471_v41 = vmul.f32 %v4880_v14, %v7588_v45  ;;  %v8650_v52 = vld [vmem:[#allocation14_spill] sm:$0xff] }
 0x249   :  { %v4276_v26 = vadd.f32 %v4275_v57, %v4213_v54  ;;  %4885 = vpow2.f32 %v3792_v58  ;;  %v1483_v32 = vmul.f32 %v4882_v19, %v7591_v61  ;;  %v3460_v37 = vmul.f32 1.442695, %v3356_v50  ;;  %v8651_v50 = vld [vmem:[#allocation11_spill] sm:$0xff]  ;;  %v1966_v58 = vpop.f32.mrf.mxu2 }
 0x24a   :  { %8648 = vst [vmem:[#allocation27_spill] sm:$0xff] %v7638_v12  ;;  %v1472_v22 = vmul.f32 %v4880_v14, %v1471_v41  ;;  %v2680_v34 = vsub.s32 %v7630_v28, %v5813_v51  ;;  %v4128_v29 = vmul.f32 1.442695, %v4024_v13  ;;  %v2415_v20 = vmul.f32 2.0, %v2076_v6 }
 0x24b   :  { %8649 = vst [vmem:[#allocation28_spill] sm:$0xff] %v7641_v17  ;;  %v4214_v11 = vmul.f32 %v4878_v36, %v7582_v60  ;;  %4887 = vpow2.f32 %v4126_v42  ;;  %v1484_v31 = vmul.f32 %v4882_v19, %v1483_v32  ;;  %v840_v46 = vmul.f32 2.0, %v390_v24  ;;  %v8654_v42 = vld [vmem:[#allocation12_spill] sm:$0xff] }
 0x24c   :  { %v1473_v1 = vmul.f32 0.5, %v1472_v22  ;;  %vm1477_vm13 = vcmp.eq.f32.partialorder %v7588_v45, inf  ;;  %v2479_v57 = vsub.f32 %v8650_v52, %v2415_v20  ;;  %v841_v10 = vmul.f32 2.0, %v503_v33 }
 0x24d   :  { %v1485_v63 = vmul.f32 0.5, %v1484_v31  ;;  %vm1479_vm14 = vcmp.eq.f32.partialorder %v7588_v45, 0.0  ;;  %4889 = vpow2.f32 %v3460_v37  ;;  %v904_v54 = vsub.f32 %v8651_v50, %v840_v46 }
 0x24e   :  { %v4884_v13 = vpop.eup %4883  ;;  %v1474_v6 = vsub.f32 1.5, %v1473_v1  ;;  %vm7652_vm15 = vcmp.eq.s32.totalorder %v2680_v34, 128  ;;  %4891 = vpow2.f32 %v4128_v29  ;;  %v905_v41 = vsub.f32 %v8654_v42, %v841_v10 }
 0x24f   :  { %v4886_v24 = vpop.eup %4885  ;;  %v3880_v32 = vmul.f32 %v4884_v13, %v7582_v60  ;;  %v1486_v33 = vsub.f32 1.5, %v1485_v63  ;;  %v3357_v22 = vmul.f32 %v5925_v56, %v7591_v61  ;;  %v7660_v37 = vmax.f32 %v904_v54, 0.0 }
 0x250   :  { %v1475_v20 = vmul.f32 %v4880_v14, %v1474_v6  ;;  %v2543_v31 = vmax.f32 %v2479_v57, 0.0  ;;  %v7662_v46 = vmax.f32 %v905_v41, 0.0  ;;  %v2416_v34 = vmul.f32 2.0, %v1966_v58 }
 0x251   :  { %v4888_v1 = vpop.eup %4887  ;;  %v3943_v52 = vadd.f32 %v7594_v21, %v3880_v32  ;;  %v3881_v29 = vmul.f32 %v4886_v24, %v7600_v15  ;;  %v1487_v10 = vmul.f32 %v4882_v19, %v1486_v33  ;;  %4893 = vrsqrt.f32 %v7660_v37  ;;  %v8655_v24 = vld [vmem:[#allocation37_spill] sm:$0xff] }
 0x252   :  { %v1476_v60 = vmul.f32 %v1475_v20, %v7588_v45  ;;  %v1480_v63 = vand.u32 2147483648, %v7588_v45  ;;  %vm1489_vm1 = vcmp.eq.f32.partialorder %v7591_v61, inf  ;;  %4895 = vrsqrt.f32 %v7662_v46 }
 0x253   :  { %v4890_v14 = vpop.eup %4889  ;;  %v7671_v57 = vadd.f32 %v3943_v52, %v3881_v29  ;;  %v1488_v50 = vmul.f32 %v1487_v10, %v7591_v61  ;;  %vm1491_vm2 = vcmp.eq.f32.partialorder %v7591_v61, 0.0  ;;  %v2681_v21 = vsub.s32 %v7630_v28, %v5860_v9 }
 0x254   :  { %v4892_v19 = vpop.eup %4891  ;;  %v1478_v54 = vsel %vm1477_vm13, %v7588_v45, %v1476_v60  ;;  %v7683_v58 = vsel %vm7652_vm15, 0.0, %v8555_v8  ;;  %v1492_v13 = vand.u32 2147483648, %v7591_v61  ;;  %v3462_v6 = vmul.f32 1.442695, %v3357_v22 }
 0x255   :  { %v1481_v42 = vsel %vm1479_vm14, %v1480_v63, %v1478_v54  ;;  %v1490_v41 = vsel %vm1489_vm1, %v7591_v61, %v1488_v50  ;;  %v4025_v28 = vmul.f32 %v6010_v0, %v2543_v31  ;;  %v2480_v32 = vsub.f32 %v8655_v24, %v2416_v34  ;;  %v2079_v54 = vpop.f32.mrf.mxu3 }
 0x256   :  { %v4277_v33 = vadd.f32 %v4276_v26, %v4214_v11  ;;  %v4215_v20 = vmul.f32 %v4888_v1, %v7600_v15  ;;  %v3690_v52 = vmul.f32 %v6026_v49, %v1481_v42  ;;  %v1493_v36 = vsel %vm1491_vm2, %v1492_v13, %v1490_v41  ;;  %v393_v41 = vpop.f32.mrf.mxu0 }
 0x257   :  { %v4894_v29 = vpop.eup %4893  ;;  %v3548_v10 = vmul.f32 %v4890_v14, %v7683_v58  ;;  %vm7694_vm3 = vcmp.eq.s32.totalorder %v2681_v21, 0  ;;  %v2544_v45 = vmax.f32 %v2480_v32, 0.0  ;;  %v3358_v61 = vmul.f32 %v5925_v56, %v7660_v37 }
 0x258   :  { %v4896_v31 = vpop.eup %4895  ;;  %v3794_v60 = vmul.f32 1.442695, %v3690_v52  ;;  %v4216_v26 = vmul.f32 %v4892_v19, %v7683_v58  ;;  %v3691_v15 = vmul.f32 %v6026_v49, %v1493_v36  ;;  %v1495_v11 = vmul.f32 %v4894_v29, %v7660_v37 }
 0x259   :  { %4897 = vpow2.f32 %v3462_v6  ;;  %v4130_v34 = vmul.f32 1.442695, %v4025_v28  ;;  %v1507_v1 = vmul.f32 %v4896_v31, %v7662_v46  ;;  %v4026_v63 = vmul.f32 %v6010_v0, %v2544_v45 }
 0x25a   :  { %v4278_v14 = vadd.f32 %v4277_v33, %v4215_v20  ;;  %4899 = vpow2.f32 %v3794_v60  ;;  %v1496_v50 = vmul.f32 %v4894_v29, %v1495_v11  ;;  %v7706_v21 = vadd.s32 168, %v5857_v7  ;;  %v506_v33 = vpop.f32.mrf.mxu1  ;;  %v8658_v60 = vld [vmem:[#allocation13_spill] sm:$0xff] }
 0x25b   :  { %v3611_v13 = vadd.f32 %v7627_v39, %v3548_v10  ;;  %v7712_v19 = vsel %vm7694_vm3, 0.0, %v8552_v2  ;;  %v1508_v6 = vmul.f32 %v4896_v31, %v1507_v1  ;;  %v3464_v42 = vmul.f32 1.442695, %v3358_v61 }
 0x25c   :  { %v7714_v28 = vadd.f32 %v4278_v14, %v4216_v26  ;;  %v3796_v24 = vmul.f32 1.442695, %v3691_v15  ;;  %v1497_v32 = vmul.f32 0.5, %v1496_v50  ;;  %vm1501_vm0 = vcmp.eq.f32.partialorder %v7660_v37, inf }
 0x25d   :  { %4901 = vpow2.f32 %v4130_v34  ;;  %v1509_v20 = vmul.f32 0.5, %v1508_v6  ;;  %v4132_v52 = vmul.f32 1.442695, %v4026_v63  ;;  %v2417_v36 = vmul.f32 2.0, %v2079_v54  ;;  %v8659_v63 = vld [vmem:[#allocation16_spill] sm:$0xff] }
 0x25e   :  { %v1498_v39 = vsub.f32 1.5, %v1497_v32  ;;  %vm1503_vm4 = vcmp.eq.f32.partialorder %v7660_v37, 0.0  ;;  %v2682_v10 = vsub.s32 %v7706_v21, %v5813_v51  ;;  %v842_v22 = vmul.f32 2.0, %v393_v41  ;;  %v8660_v6 = vld [vmem:[#allocation36_spill] sm:$0xff] }
 0x25f   :  { %v4898_v45 = vpop.eup %4897  ;;  %4903 = vpow2.f32 %v3464_v42  ;;  %v1510_v61 = vsub.f32 1.5, %v1509_v20  ;;  %v2481_v26 = vsub.f32 %v8658_v60, %v2417_v36  ;;  %v843_v15 = vmul.f32 2.0, %v506_v33  ;;  %v1969_v60 = vpop.f32.mrf.mxu2 }
 0x260   :  { %v4900_v11 = vpop.eup %4899  ;;  %4905 = vpow2.f32 %v3796_v24  ;;  %v1499_v1 = vmul.f32 %v4894_v29, %v1498_v39  ;;  %v1504_v34 = vand.u32 2147483648, %v7660_v37  ;;  %v906_v14 = vsub.f32 %v8659_v63, %v842_v22 }
 0x261   :  { %4907 = vpow2.f32 %v4132_v52  ;;  %v1511_v50 = vmul.f32 %v4896_v31, %v1510_v61  ;;  %v3359_v54 = vmul.f32 %v5925_v56, %v7662_v46  ;;  %v907_v41 = vsub.f32 %v8660_v6, %v843_v15 }
 0x262   :  { %v3549_v42 = vmul.f32 %v4898_v45, %v7712_v19  ;;  %v1500_v32 = vmul.f32 %v1499_v1, %v7660_v37  ;;  %vm3036_vm5 = vcmp.eq.s32.totalorder %v2682_v10, 128  ;;  %v7728_v33 = vmax.f32 %v906_v14, 0.0 }
 0x263   :  { %v4902_v24 = vpop.eup %4901  ;;  %v3882_v29 = vmul.f32 %v4900_v11, %v7683_v58  ;;  %v1512_v20 = vmul.f32 %v1511_v50, %v7662_v46  ;;  %vm1513_vm6 = vcmp.eq.f32.partialorder %v7662_v46, inf  ;;  %v2545_v31 = vmax.f32 %v2481_v26, 0.0 }
 0x264   :  { %v1502_v52 = vsel %vm1501_vm0, %v7660_v37, %v1500_v32  ;;  %v2683_v36 = vsub.s32 %v7706_v21, %v5860_v9  ;;  %4909 = vrsqrt.f32 %v7728_v33  ;;  %v7739_v39 = vmax.f32 %v907_v41, 0.0  ;;  %v2082_v32 = vpop.f32.mrf.mxu3 }
 0x265   :  { %v4904_v10 = vpop.eup %4903  ;;  %v1505_v58 = vsel %vm1503_vm4, %v1504_v34, %v1502_v52  ;;  %v7744_v22 = vsel %vm3036_vm5, 0.0, %v8555_v8  ;;  %v1516_v45 = vand.u32 2147483648, %v7662_v46  ;;  %v3466_v61 = vmul.f32 1.442695, %v3359_v54 }
 0x266   :  { %v4906_v26 = vpop.eup %4905  ;;  %v3692_v15 = vmul.f32 %v6026_v49, %v1505_v58  ;;  %v1514_v21 = vsel %vm1513_vm6, %v7662_v46, %v1512_v20  ;;  %vm1515_vm7 = vcmp.eq.f32.partialorder %v7662_v46, 0.0  ;;  %4911 = vrsqrt.f32 %v7739_v39 }
 0x267   :  { %v4908_v11 = vpop.eup %4907  ;;  %v3945_v37 = vadd.f32 %v7671_v57, %v3882_v29  ;;  %v3612_v1 = vadd.f32 %v3611_v13, %v3549_v42  ;;  %v1517_v34 = vsel %vm1515_vm7, %v1516_v45, %v1514_v21  ;;  %v4027_v63 = vmul.f32 %v6010_v0, %v2545_v31 }
 0x268   :  { %v4217_v14 = vmul.f32 %v4902_v24, %v7712_v19  ;;  %v3550_v50 = vmul.f32 %v4904_v10, %v7744_v22  ;;  %vm2973_vm8 = vcmp.eq.s32.totalorder %v2683_v36, 0  ;;  %v2418_v54 = vmul.f32 2.0, %v1969_v60 }
 0x269   :  { %v3883_v6 = vmul.f32 %v4906_v26, %v7712_v19  ;;  %v3798_v41 = vmul.f32 1.442695, %v3692_v15  ;;  %4913 = vpow2.f32 %v3466_v61  ;;  %v3693_v46 = vmul.f32 %v6026_v49, %v1517_v34  ;;  %v396_v26 = vpop.f32.mrf.mxu0 }
 0x26a   :  { %v4910_v20 = vpop.eup %4909  ;;  %v4280_v57 = vadd.f32 %v7714_v28, %v4217_v14  ;;  %v4218_v13 = vmul.f32 %v4908_v11, %v7744_v22  ;;  %v2482_v42 = vsub.f32 %v7199_v27, %v2418_v54  ;;  %v3360_v24 = vmul.f32 %v5925_v56, %v7728_v33 }
 0x26b   :  { %v7762_v29 = vadd.f32 %v3945_v37, %v3883_v6  ;;  %v7765_v31 = vsel %vm2973_vm8, 0.0, %v8552_v2  ;;  %v4134_v19 = vmul.f32 1.442695, %v4027_v63  ;;  %v1519_v52 = vmul.f32 %v4910_v20, %v7728_v33 }
 0x26c   :  { %v4912_v36 = vpop.eup %4911  ;;  %v7768_v10 = vadd.f32 %v3612_v1, %v3550_v50  ;;  %v2546_v58 = vmax.f32 %v2482_v42, 0.0  ;;  %v7771_v28 = vadd.s32 176, %v5857_v7  ;;  %v2419_v45 = vmul.f32 2.0, %v2082_v32  ;;  %v509_v42 = vpop.f32.mrf.mxu1 }
 0x26d   :  { %4915 = vpow2.f32 %v3798_v41  ;;  %v3800_v27 = vmul.f32 1.442695, %v3693_v46  ;;  %v1520_v61 = vmul.f32 %v4910_v20, %v1519_v52  ;;  %v1531_v60 = vmul.f32 %v4912_v36, %v7739_v39 }
 0x26e   :  { %v7774_v15 = vadd.f32 %v4280_v57, %v4218_v13  ;;  %vm1525_vm9 = vcmp.eq.f32.partialorder %v7728_v33, inf  ;;  %v3468_v21 = vmul.f32 1.442695, %v3360_v24  ;;  %v4028_v11 = vmul.f32 %v6010_v0, %v2546_v58 }
 0x26f   :  { %v2483_v37 = vsub.f32 %v7208_v4, %v2419_v45  ;;  %v4914_v1 = vpop.eup %4913  ;;  %4917 = vpow2.f32 %v4134_v19  ;;  %v1521_v34 = vmul.f32 0.5, %v1520_v61  ;;  %v1532_v63 = vmul.f32 %v4912_v36, %v1531_v60  ;;  %v1972_v45 = vpop.f32.mrf.mxu2  ;;  %v8663_v60 = vld [vmem:[#allocation9_spill] sm:$0xff] }
 0x270   :  { %vm1527_vm10 = vcmp.eq.f32.partialorder %v7728_v33, 0.0  ;;  %v3361_v14 = vmul.f32 %v5925_v56, %v7739_v39  ;;  %v2684_v50 = vsub.s32 %v7771_v28, %v5813_v51  ;;  %v4136_v54 = vmul.f32 1.442695, %v4028_v11 }
 0x271   :  { %v2547_v6 = vmax.f32 %v2483_v37, 0.0  ;;  %v844_v41 = vmul.f32 2.0, %v396_v26  ;;  %4919 = vpow2.f32 %v3800_v27  ;;  %v1533_v46 = vmul.f32 0.5, %v1532_v63 }
 0x272   :  { %v1522_v32 = vsub.f32 1.5, %v1521_v34  ;;  %v1528_v4 = vand.u32 2147483648, %v7728_v33  ;;  %v3551_v57 = vmul.f32 %v4914_v1, %v7765_v31  ;;  %4921 = vpow2.f32 %v3468_v21 }
 0x273   :  { %vm1537_vm11 = vcmp.eq.f32.partialorder %v7739_v39, inf  ;;  %v3470_v13 = vmul.f32 1.442695, %v3361_v14  ;;  %v4916_v24 = vpop.eup %4915  ;;  %v1534_v52 = vsub.f32 1.5, %v1533_v46  ;;  %vm1539_vm12 = vcmp.eq.f32.partialorder %v7739_v39, 0.0  ;;  %v8664_v46 = vld [vmem:[#allocation10_spill] sm:$0xff] }
 0x274   :  { %v1523_v19 = vmul.f32 %v4910_v20, %v1522_v32  ;;  %v4029_v58 = vmul.f32 %v6010_v0, %v2547_v6  ;;  %vm7789_vm13 = vcmp.eq.s32.totalorder %v2684_v50, 128  ;;  %4923 = vpow2.f32 %v4136_v54 }
 0x275   :  { %v1540_v61 = vand.u32 2147483648, %v7739_v39  ;;  %v908_v26 = vsub.f32 %v8663_v60, %v844_v41  ;;  %v4918_v21 = vpop.eup %4917  ;;  %v1535_v37 = vmul.f32 %v4912_v36, %v1534_v52  ;;  %v2685_v20 = vsub.s32 %v7771_v28, %v5860_v9 }
 0x276   :  { %v1524_v11 = vmul.f32 %v1523_v19, %v7728_v33  ;;  %v845_v1 = vmul.f32 2.0, %v509_v42  ;;  %v3884_v34 = vmul.f32 %v4916_v24, %v7744_v22  ;;  %4925 = vpow2.f32 %v3470_v13 }
 0x277   :  { %v7799_v63 = vmax.f32 %v908_v26, 0.0  ;;  %v2420_v14 = vmul.f32 2.0, %v1972_v45  ;;  %v4920_v50 = vpop.eup %4919  ;;  %v1536_v6 = vmul.f32 %v1535_v37, %v7739_v39  ;;  %v4138_v41 = vmul.f32 1.442695, %v4029_v58 }
 0x278   :  { %v1526_v54 = vsel %vm1525_vm9, %v7728_v33, %v1524_v11  ;;  %v909_v36 = vsub.f32 %v8664_v46, %v845_v1  ;;  %v4922_v32 = vpop.eup %4921  ;;  %v4219_v28 = vmul.f32 %v4918_v21, %v7765_v31  ;;  %v7812_v13 = vsel %vm7789_vm13, 0.0, %v8555_v8  ;;  %v399_v46 = vpop.f32.mrf.mxu0 }
 0x279   :  { %v1529_v22 = vsel %vm1527_vm10, %v1528_v4, %v1526_v54  ;;  %4927 = vrsqrt.f32 %v7799_v63  ;;  %v1538_v24 = vsel %vm1537_vm11, %v7739_v39, %v1536_v6  ;;  %vm7819_vm14 = vcmp.eq.s32.totalorder %v2685_v20, 0  ;;  %v2293_v4 = vpop.permute.xlu1 %2292 }
 0x27a   :  { %v3694_v42 = vmul.f32 %v6026_v49, %v1529_v22  ;;  %v7823_v52 = vmax.f32 %v909_v36, 0.0  ;;  %v4924_v33 = vpop.eup %4923  ;;  %v3947_v58 = vadd.f32 %v7762_v29, %v3884_v34  ;;  %v1541_v45 = vsel %vm1539_vm12, %v1540_v61, %v1538_v24  ;;  %v2085_v34 = vpop.f32.mrf.mxu3 }
 0x27b   :  { %v2484_v27 = vsub.f32 %v7272_v62, %v2420_v14  ;;  %v7830_v60 = vadd.s32 184, %v5857_v7  ;;  %v3885_v26 = vmul.f32 %v4920_v50, %v7765_v31  ;;  %v3552_v21 = vmul.f32 %v4922_v32, %v7812_v13  ;;  %v512_v32 = vpop.f32.mrf.mxu1 }
 0x27c   :  { %v3802_v11 = vmul.f32 1.442695, %v3694_v42  ;;  %4929 = vpow2.f32 %v4138_v41  ;;  %v4926_v37 = vpop.eup %4925  ;;  %v3695_v20 = vmul.f32 %v6026_v49, %v1541_v45  ;;  %v3362_v39 = vmul.f32 %v5925_v56, %v7799_v63 }
 0x27d   :  { %4931 = vrsqrt.f32 %v7823_v52  ;;  %v2548_v29 = vmax.f32 %v2484_v27, 0.0  ;;  %v7839_v62 = vadd.f32 %v5819_v53, %v2293_v4  ;;  %v7842_v61 = vadd.f32 %v5821_v55, %v2293_v4 }
 0x27e   :  { %v3614_v31 = vadd.f32 %v7768_v10, %v3551_v57  ;;  %v4220_v1 = vmul.f32 %v4924_v33, %v7812_v13  ;;  %v7846_v50 = vadd.f32 %v3947_v58, %v3885_v26  ;;  %v4282_v54 = vadd.f32 %v7774_v15, %v4219_v28 }
 0x27f   :  { %v4928_v14 = vpop.eup %4927  ;;  %v7852_v6 = vsel %vm7819_vm14, 0.0, %v8552_v2  ;;  %v2686_v41 = vsub.s32 %v7830_v60, %v5813_v51  ;;  %4933 = vpow2.f32 %v3802_v11  ;;  %v3472_v57 = vmul.f32 1.442695, %v3362_v39  ;;  %v1975_v39 = vpop.f32.mrf.mxu2 }
 0x280   :  { %v1543_v10 = vmul.f32 %v4928_v14, %v7799_v63  ;;  %v4030_v36 = vmul.f32 %v6010_v0, %v2548_v29  ;;  %v3615_v22 = vadd.f32 %v3614_v31, %v3552_v21  ;;  %v3804_v42 = vmul.f32 1.442695, %v3695_v20 }
 0x281   :  { %v1552_v15 = vand.u32 2147483648, %v7799_v63  ;;  %v2421_v28 = vmul.f32 2.0, %v2085_v34  ;;  %v4283_v19 = vadd.f32 %v4282_v54, %v4220_v1  ;;  %v3553_v33 = vmul.f32 %v4926_v37, %v7852_v6  ;;  %v8669_v34 = vld [vmem:[#allocation23_spill] sm:$0xff] }
 0x282   :  { %v4930_v24 = vpop.eup %4929  ;;  %v1544_v4 = vmul.f32 %v4928_v14, %v1543_v10  ;;  %v846_v58 = vmul.f32 2.0, %v399_v46  ;;  %vm1549_vm15 = vcmp.eq.f32.partialorder %v7799_v63, inf  ;;  %vm7861_vm1 = vcmp.eq.s32.totalorder %v2686_v41, 128 }
 0x283   :  { %v4932_v45 = vpop.eup %4931  ;;  %v2485_v26 = vsub.f32 %v7334_v38, %v2421_v28  ;;  %v3363_v21 = vmul.f32 %v5925_v56, %v7823_v52  ;;  %v847_v11 = vmul.f32 2.0, %v512_v32  ;;  %vm1551_vm2 = vcmp.eq.f32.partialorder %v7799_v63, 0.0  ;;  %v8670_v28 = vld [vmem:[#allocation24_spill] sm:$0xff] }
 0x284   :  { %v1545_v20 = vmul.f32 0.5, %v1544_v4  ;;  %v1555_v29 = vmul.f32 %v4932_v45, %v7823_v52  ;;  %4935 = vpow2.f32 %v3472_v57  ;;  %v4140_v37 = vmul.f32 1.442695, %v4030_v36 }
 0x285   :  { %v3616_v31 = vadd.f32 %v3615_v22, %v3553_v33  ;;  %4937 = vpow2.f32 %v3804_v42  ;;  %v4221_v1 = vmul.f32 %v4930_v24, %v7852_v6  ;;  %v910_v54 = vsub.f32 %v8669_v34, %v846_v58  ;;  %v4934_v41 = vpop.eup %4933 }
 0x286   :  { %v1556_v38 = vmul.f32 %v4932_v45, %v1555_v29  ;;  %v1546_v46 = vsub.f32 1.5, %v1545_v20  ;;  %v2549_v10 = vmax.f32 %v2485_v26, 0.0  ;;  %v911_v32 = vsub.f32 %v8670_v28, %v847_v11 }
 0x287   :  { %v2687_v4 = vsub.s32 %v7830_v60, %v5860_v9  ;;  %v3474_v17 = vmul.f32 1.442695, %v3363_v21  ;;  %v7875_v12 = vmax.f32 %v910_v54, 0.0  ;;  %v2422_v57 = vmul.f32 2.0, %v1975_v39 }
 0x288   :  { %v1557_v36 = vmul.f32 0.5, %v1556_v38  ;;  %v1547_v22 = vmul.f32 %v4928_v14, %v1546_v46  ;;  %4939 = vpow2.f32 %v4140_v37  ;;  %v7877_v42 = vmax.f32 %v911_v32, 0.0 }
 0x289   :  { %v3886_v24 = vmul.f32 %v4934_v41, %v7812_v13  ;;  %v7883_v33 = vsel %vm7861_vm1, 0.0, %v8555_v8  ;;  %vm1561_vm3 = vcmp.eq.f32.partialorder %v7823_v52, inf  ;;  %4941 = vrsqrt.f32 %v7875_v12 }
 0x28a   :  { %v4936_v60 = vpop.eup %4935  ;;  %v7887_v58 = vadd.f32 %v4283_v19, %v4221_v1  ;;  %v1548_v26 = vmul.f32 %v1547_v22, %v7799_v63  ;;  %v1558_v14 = vsub.f32 1.5, %v1557_v36  ;;  %v4031_v21 = vmul.f32 %v6010_v0, %v2549_v10 }
 0x28b   :  { %v4938_v11 = vpop.eup %4937  ;;  %vm1563_vm0 = vcmp.eq.f32.partialorder %v7823_v52, 0.0  ;;  %v1564_v13 = vand.u32 2147483648, %v7823_v52  ;;  %4943 = vpow2.f32 %v3474_v17  ;;  %v2486_v27 = vsub.f32 %v7261_v35, %v2422_v57 }
 0x28c   :  { %v1550_v20 = vsel %vm1549_vm15, %v7799_v63, %v1548_v26  ;;  %v1559_v29 = vmul.f32 %v4932_v45, %v1558_v14  ;;  %vm2977_vm4 = vcmp.eq.s32.totalorder %v2687_v4, 0  ;;  %4945 = vrsqrt.f32 %v7877_v42  ;;  %v2088_v4 = vpop.f32.mrf.mxu3 }
 0x28d   :  { %v3949_v19 = vadd.f32 %v7846_v50, %v3886_v24  ;;  %v1553_v37 = vsel %vm1551_vm2, %v1552_v15, %v1550_v20  ;;  %v3554_v39 = vmul.f32 %v4936_v60, %v7883_v33  ;;  %v2550_v1 = vmax.f32 %v2486_v27, 0.0 }
 0x28e   :  { %v4940_v34 = vpop.eup %4939  ;;  %v3696_v17 = vmul.f32 %v6026_v49, %v1553_v37  ;;  %v1560_v35 = vmul.f32 %v1559_v29, %v7823_v52  ;;  %v4142_v54 = vmul.f32 1.442695, %v4031_v21  ;;  %v3364_v45 = vmul.f32 %v5925_v56, %v7875_v12  ;;  %v515_v29 = vpop.f32.mrf.mxu1 }
 0x28f   :  { %v4942_v41 = vpop.eup %4941  ;;  %v3887_v38 = vmul.f32 %v4938_v11, %v7852_v6  ;;  %v7908_v50 = vsel %vm2977_vm4, 0.0, %v8552_v2  ;;  %v2592_v63 = vadd.s32 192, %v5857_v7  ;;  %v4032_v15 = vmul.f32 %v6010_v0, %v2550_v1 }
 0x290   :  { %v3806_v46 = vmul.f32 1.442695, %v3696_v17  ;;  %v1562_v10 = vsel %vm1561_vm3, %v7823_v52, %v1560_v35  ;;  %v1567_v28 = vmul.f32 %v4942_v41, %v7875_v12  ;;  %v3476_v32 = vmul.f32 1.442695, %v3364_v45 }
 0x291   :  { %v4944_v57 = vpop.eup %4943  ;;  %v7916_v36 = vadd.f32 %v3949_v19, %v3887_v38  ;;  %v3617_v6 = vadd.f32 %v3616_v31, %v3554_v39  ;;  %v4222_v22 = vmul.f32 %v4940_v34, %v7883_v33  ;;  %v1565_v24 = vsel %vm1563_vm0, %v1564_v13, %v1562_v10  ;;  %v402_v31 = vpop.f32.mrf.mxu0 }
 0x292   :  { %v4946_v60 = vpop.eup %4945  ;;  %v3697_v26 = vmul.f32 %v6026_v49, %v1565_v24  ;;  %4947 = vpow2.f32 %v4142_v54  ;;  %v1568_v14 = vmul.f32 %v4942_v41, %v1567_v28  ;;  %v4144_v21 = vmul.f32 1.442695, %v4032_v15 }
 0x293   :  { %4949 = vpow2.f32 %v3806_v46  ;;  %v1579_v11 = vmul.f32 %v4946_v60, %v7877_v42  ;;  %vm1573_vm5 = vcmp.eq.f32.partialorder %v7875_v12, inf  ;;  %v2688_v27 = vsub.s32 %v2592_v63, %v5813_v51 }
 0x294   :  { %v2423_v20 = vmul.f32 2.0, %v2088_v4  ;;  %v3555_v19 = vmul.f32 %v4944_v57, %v7908_v50  ;;  %v1569_v52 = vmul.f32 0.5, %v1568_v14  ;;  %vm1575_vm6 = vcmp.eq.f32.partialorder %v7875_v12, 0.0  ;;  %v8673_v4 = vld [vmem:[#allocation18_spill] sm:$0xff]  ;;  %v8674_v57 = vld [vmem:[#allocation19_spill] sm:$0xff] }
 0x295   :  { %v1576_v13 = vand.u32 2147483648, %v7875_v12  ;;  %4951 = vpow2.f32 %v3476_v32  ;;  %v3808_v37 = vmul.f32 1.442695, %v3697_v26  ;;  %v1580_v39 = vmul.f32 %v4946_v60, %v1579_v11 }
 0x296   :  { %v2487_v1 = vsub.f32 %v7265_v43, %v2423_v20  ;;  %v3365_v34 = vmul.f32 %v5925_v56, %v7877_v42  ;;  %v1570_v17 = vsub.f32 1.5, %v1569_v52  ;;  %4953 = vpow2.f32 %v4144_v21  ;;  %v1978_v52 = vpop.f32.mrf.mxu2 }
 0x297   :  { %v848_v35 = vmul.f32 2.0, %v402_v31  ;;  %v849_v54 = vmul.f32 2.0, %v515_v29  ;;  %v1581_v45 = vmul.f32 0.5, %v1580_v39  ;;  %vm7931_vm7 = vcmp.eq.s32.totalorder %v2688_v27, 128 }
 0x298   :  { %v2689_v15 = vsub.s32 %v2592_v63, %v5860_v9  ;;  %v3478_v46 = vmul.f32 1.442695, %v3365_v34  ;;  %v4948_v10 = vpop.eup %4947  ;;  %v1571_v28 = vmul.f32 %v4942_v41, %v1570_v17  ;;  %v2551_v32 = vmax.f32 %v2487_v1, 0.0 }
 0x299   :  { %v912_v43 = vsub.f32 %v8673_v4, %v848_v35  ;;  %v913_v24 = vsub.f32 %v8674_v57, %v849_v54  ;;  %v4950_v26 = vpop.eup %4949  ;;  %v4285_v14 = vadd.f32 %v7887_v58, %v4222_v22  ;;  %4955 = vpow2.f32 %v3808_v37 }
 0x29a   :  { %v1582_v21 = vsub.f32 1.5, %v1581_v45  ;;  %vm1585_vm8 = vcmp.eq.f32.partialorder %v7877_v42, inf  ;;  %v3618_v27 = vadd.f32 %v3617_v6, %v3555_v19  ;;  %v1572_v20 = vmul.f32 %v1571_v28, %v7875_v12 }
 0x29b   :  { %v4952_v11 = vpop.eup %4951  ;;  %v7944_v41 = vsel %vm7931_vm7, 0.0, %v8555_v8  ;;  %v7946_v63 = vmax.f32 %v912_v43, 0.0  ;;  %vm7948_vm9 = vcmp.eq.s32.totalorder %v2689_v15, 0  ;;  %4957 = vpow2.f32 %v3478_v46 }
 0x29c   :  { %v1583_v31 = vmul.f32 %v4946_v60, %v1582_v21  ;;  %v7952_v58 = vmax.f32 %v913_v24, 0.0  ;;  %v4954_v22 = vpop.eup %4953  ;;  %v1574_v6 = vsel %vm1573_vm5, %v7875_v12, %v1572_v20  ;;  %vm1587_vm10 = vcmp.eq.f32.partialorder %v7877_v42, 0.0  ;;  %v2091_v24 = vpop.f32.mrf.mxu3 }
 0x29d   :  { %v4033_v19 = vmul.f32 %v6010_v0, %v2551_v32  ;;  %4959 = vrsqrt.f32 %v7946_v63  ;;  %v3888_v60 = vmul.f32 %v4950_v26, %v7883_v33  ;;  %v1577_v37 = vsel %vm1575_vm6, %v1576_v13, %v1574_v6 }
 0x29e   :  { %v1584_v39 = vmul.f32 %v1583_v31, %v7877_v42  ;;  %v1588_v1 = vand.u32 2147483648, %v7877_v42  ;;  %v4223_v34 = vmul.f32 %v4948_v10, %v7908_v50  ;;  %v3556_v17 = vmul.f32 %v4952_v11, %v7944_v41 }
 0x29f   :  { %v3698_v35 = vmul.f32 %v6026_v49, %v1577_v37  ;;  %v7971_v54 = vsel %vm7948_vm9, 0.0, %v8552_v2  ;;  %v4956_v45 = vpop.eup %4955  ;;  %v4224_v33 = vmul.f32 %v4954_v22, %v7944_v41  ;;  %4961 = vrsqrt.f32 %v7952_v58 }
 0x2a0   :  { %v1586_v12 = vsel %vm1585_vm8, %v7877_v42, %v1584_v39  ;;  %v2424_v13 = vmul.f32 2.0, %v1978_v52  ;;  %v4146_v46 = vmul.f32 1.442695, %v4033_v19  ;;  %v7981_v10 = vadd.s32 200, %v5857_v7 }
 0x2a1   :  { %v3810_v38 = vmul.f32 1.442695, %v3698_v35  ;;  %v1589_v15 = vsel %vm1587_vm10, %v1588_v1, %v1586_v12  ;;  %v4958_v28 = vpop.eup %4957  ;;  %v3951_v32 = vadd.f32 %v7916_v36, %v3888_v60  ;;  %v3366_v57 = vmul.f32 %v5925_v56, %v7946_v63 }
 0x2a2   :  { %v3699_v4 = vmul.f32 %v6026_v49, %v1589_v15  ;;  %v2488_v43 = vsub.f32 %v7456_v3, %v2424_v13  ;;  %v3889_v21 = vmul.f32 %v4956_v45, %v7908_v50  ;;  %v4286_v42 = vadd.f32 %v4285_v14, %v4223_v34  ;;  %v405_v34 = vpop.f32.mrf.mxu0 }
 0x2a3   :  { %v4960_v26 = vpop.eup %4959  ;;  %v3619_v11 = vadd.f32 %v3618_v27, %v3556_v17  ;;  %4963 = vpow2.f32 %v3810_v38  ;;  %v2690_v36 = vsub.s32 %v7981_v10, %v5813_v51  ;;  %v3480_v29 = vmul.f32 1.442695, %v3366_v57 }
 0x2a4   :  { %v1591_v20 = vmul.f32 %v4960_v26, %v7946_v63  ;;  %v2552_v31 = vmax.f32 %v2488_v43, 0.0  ;;  %v7992_v22 = vadd.f32 %v4286_v42, %v4224_v33  ;;  %v3557_v3 = vmul.f32 %v4958_v28, %v7971_v54  ;;  %v518_v33 = vpop.f32.mrf.mxu1 }
 0x2a5   :  { %4965 = vpow2.f32 %v4146_v46  ;;  %v2425_v6 = vmul.f32 2.0, %v2091_v24  ;;  %v4962_v19 = vpop.eup %4961  ;;  %v3952_v52 = vadd.f32 %v3951_v32, %v3889_v21  ;;  %v3812_v60 = vmul.f32 1.442695, %v3699_v4  ;;  %v1981_v21 = vpop.f32.mrf.mxu2 }
 0x2a6   :  { %v1592_v50 = vmul.f32 %v4960_v26, %v1591_v20  ;;  %v1600_v14 = vand.u32 2147483648, %v7946_v63  ;;  %v7996_v27 = vadd.f32 %v3619_v11, %v3557_v3  ;;  %v1603_v37 = vmul.f32 %v4962_v19, %v7952_v58  ;;  %v8680_v3 = vld [vmem:[#allocation25_spill] sm:$0xff] }
 0x2a7   :  { %vm1597_vm11 = vcmp.eq.f32.partialorder %v7946_v63, inf  ;;  %v4034_v39 = vmul.f32 %v6010_v0, %v2552_v31  ;;  %v2489_v1 = vsub.f32 %v7476_v44, %v2425_v6  ;;  %vm1599_vm12 = vcmp.eq.f32.partialorder %v7946_v63, 0.0 }
 0x2a8   :  { %v1593_v17 = vmul.f32 0.5, %v1592_v50  ;;  %vm8003_vm13 = vcmp.eq.s32.totalorder %v2690_v36, 128  ;;  %4967 = vpow2.f32 %v3480_v29  ;;  %v3367_v45 = vmul.f32 %v5925_v56, %v7952_v58 }
 0x2a9   :  { %v4964_v12 = vpop.eup %4963  ;;  %v1604_v13 = vmul.f32 %v4962_v19, %v1603_v37  ;;  %v4148_v38 = vmul.f32 1.442695, %v4034_v39  ;;  %v2553_v15 = vmax.f32 %v2489_v1, 0.0  ;;  %v2691_v44 = vsub.s32 %v7981_v10, %v5860_v9  ;;  %v8679_v10 = vld [vmem:[#allocation22_spill] sm:$0xff] }
 0x2aa   :  { %4969 = vpow2.f32 %v3812_v60  ;;  %v1594_v46 = vsub.f32 1.5, %v1593_v17  ;;  %vm1609_vm14 = vcmp.eq.f32.partialorder %v7952_v58, inf  ;;  %v3482_v28 = vmul.f32 1.442695, %v3367_v45 }
 0x2ab   :  { %v850_v32 = vmul.f32 2.0, %v405_v34  ;;  %v4966_v4 = vpop.eup %4965  ;;  %v1605_v43 = vmul.f32 0.5, %v1604_v13  ;;  %4971 = vpow2.f32 %v4148_v38  ;;  %v4035_v57 = vmul.f32 %v6010_v0, %v2553_v15 }
 0x2ac   :  { %v851_v24 = vmul.f32 2.0, %v518_v33  ;;  %v1595_v42 = vmul.f32 %v4960_v26, %v1594_v46  ;;  %v8016_v11 = vsel %vm8003_vm13, 0.0, %v8555_v8  ;;  %vm1611_vm15 = vcmp.eq.f32.partialorder %v7952_v58, 0.0  ;;  %v8043_v46 = vpop.permute.xlu2 %2297 }
 0x2ad   :  { %v914_v20 = vsub.f32 %v8679_v10, %v850_v32  ;;  %v3890_v31 = vmul.f32 %v4964_v12, %v7944_v41  ;;  %v1606_v36 = vsub.f32 1.5, %v1605_v43  ;;  %v4150_v29 = vmul.f32 1.442695, %v4035_v57 }
 0x2ae   :  { %v915_v6 = vsub.f32 %v8680_v3, %v851_v24  ;;  %v4968_v60 = vpop.eup %4967  ;;  %v1596_v50 = vmul.f32 %v1595_v42, %v7946_v63  ;;  %4973 = vpow2.f32 %v3482_v28  ;;  %v2426_v37 = vmul.f32 2.0, %v1981_v21  ;;  %v2094_v3 = vpop.f32.mrf.mxu3 }
 0x2af   :  { %v8023_v26 = vmax.f32 %v914_v20, 0.0  ;;  %v1607_v39 = vmul.f32 %v4962_v19, %v1606_v36  ;;  %vm2981_vm1 = vcmp.eq.s32.totalorder %v2691_v44, 0  ;;  %4975 = vpow2.f32 %v4150_v29 }
 0x2b0   :  { %v8025_v1 = vmax.f32 %v915_v6, 0.0  ;;  %v4970_v34 = vpop.eup %4969  ;;  %v4225_v17 = vmul.f32 %v4966_v4, %v7971_v54  ;;  %v1598_v41 = vsel %vm1597_vm11, %v7946_v63, %v1596_v50  ;;  %v1612_v35 = vand.u32 2147483648, %v7952_v58 }
 0x2b1   :  { %4977 = vrsqrt.f32 %v8023_v26  ;;  %v4972_v45 = vpop.eup %4971  ;;  %v1601_v33 = vsel %vm1599_vm12, %v1600_v14, %v1598_v41  ;;  %v3558_v19 = vmul.f32 %v4968_v60, %v8016_v11  ;;  %v1608_v12 = vmul.f32 %v1607_v39, %v7952_v58 }
 0x2b2   :  { %4979 = vrsqrt.f32 %v8025_v1  ;;  %v3953_v13 = vadd.f32 %v3952_v52, %v3890_v31  ;;  %v3700_v38 = vmul.f32 %v6026_v49, %v1601_v33  ;;  %v8040_v15 = vsel %vm2981_vm1, 0.0, %v8552_v2 }
 0x2b3   :  { %v2490_v44 = vsub.f32 %v7556_v5, %v2426_v37  ;;  %v3891_v28 = vmul.f32 %v4970_v34, %v7971_v54  ;;  %v4226_v63 = vmul.f32 %v4972_v45, %v8016_v11  ;;  %v1610_v14 = vsel %vm1609_vm14, %v7952_v58, %v1608_v12  ;;  %v408_v34 = vpop.f32.mrf.mxu0 }
 0x2b4   :  { %v3368_v52 = vmul.f32 %v5925_v56, %v8023_v26  ;;  %v4974_v32 = vpop.eup %4973  ;;  %v3814_v4 = vmul.f32 1.442695, %v3700_v38  ;;  %v1613_v43 = vsel %vm1611_vm15, %v1612_v35, %v1610_v14  ;;  %v2594_v5 = vadd.s32 208, %v5857_v7 }
 0x2b5   :  { %v2554_v57 = vmax.f32 %v2490_v44, 0.0  ;;  %v4976_v24 = vpop.eup %4975  ;;  %v4288_v54 = vadd.f32 %v7992_v22, %v4225_v17  ;;  %v3621_v21 = vadd.f32 %v7996_v27, %v3558_v19  ;;  %v3701_v42 = vmul.f32 %v6026_v49, %v1613_v43  ;;  %v521_v17 = vpop.f32.mrf.mxu1 }
 0x2b6   :  { %v3484_v10 = vmul.f32 1.442695, %v3368_v52  ;;  %v8060_v31 = vadd.f32 %v5819_v53, %v8043_v46  ;;  %v8062_v36 = vadd.f32 %v3953_v13, %v3891_v28  ;;  %v1624_v58 = vand.u32 2147483648, %v8023_v26 }
 0x2b7   :  { %v4978_v20 = vpop.eup %4977  ;;  %v4036_v29 = vmul.f32 %v6010_v0, %v2554_v57  ;;  %4981 = vpow2.f32 %v3814_v4  ;;  %v4289_v22 = vadd.f32 %v4288_v54, %v4226_v63  ;;  %v3559_v27 = vmul.f32 %v4974_v32, %v8040_v15  ;;  %v1984_v63 = vpop.f32.mrf.mxu2  ;;  %v8681_v54 = vld [vmem:[#allocation29_spill] sm:$0xff] }
 0x2b8   :  { %v4980_v6 = vpop.eup %4979  ;;  %v1615_v60 = vmul.f32 %v4978_v20, %v8023_v26  ;;  %v3816_v50 = vmul.f32 1.442695, %v3701_v42  ;;  %v2692_v53 = vsub.s32 %v2594_v5, %v5813_v51  ;;  %v4227_v35 = vmul.f32 %v4976_v24, %v8040_v15 }
 0x2b9   :  { %v1627_v37 = vmul.f32 %v4980_v6, %v8025_v1  ;;  %v4152_v39 = vmul.f32 1.442695, %v4036_v29  ;;  %v8070_v41 = vadd.f32 %v3621_v21, %v3559_v27  ;;  %4983 = vpow2.f32 %v3484_v10 }
 0x2ba   :  { %v1616_v45 = vmul.f32 %v4978_v20, %v1615_v60  ;;  %vm1621_vm2 = vcmp.eq.f32.partialorder %v8023_v26, inf  ;;  %v2427_v19 = vmul.f32 2.0, %v2094_v3  ;;  %v2693_v12 = vsub.s32 %v2594_v5, %v5860_v9 }
 0x2bb   :  { %v1628_v33 = vmul.f32 %v4980_v6, %v1627_v37  ;;  %4985 = vpow2.f32 %v4152_v39  ;;  %vm1623_vm3 = vcmp.eq.f32.partialorder %v8023_v26, 0.0  ;;  %v3369_v38 = vmul.f32 %v5925_v56, %v8025_v1  ;;  %v2097_v39 = vpop.f32.mrf.mxu3 }
 0x2bc   :  { %v1617_v13 = vmul.f32 0.5, %v1616_v45  ;;  %v852_v44 = vmul.f32 2.0, %v408_v34  ;;  %v853_v28 = vmul.f32 2.0, %v521_v17  ;;  %4987 = vpow2.f32 %v3816_v50 }
 0x2bd   :  { %v1629_v14 = vmul.f32 0.5, %v1628_v33  ;;  %vm3046_vm0 = vcmp.eq.s32.totalorder %v2692_v53, 128  ;;  %v2491_v52 = vsub.f32 %v7615_v47, %v2427_v19  ;;  %v4982_v32 = vpop.eup %4981  ;;  %v4290_v4 = vadd.f32 %v4289_v22, %v4227_v35  ;;  %v8684_v47 = vld [vmem:[#allocation39_spill] sm:$0xff] }
 0x2be   :  { %v1618_v43 = vsub.f32 1.5, %v1617_v13  ;;  %vm1633_vm4 = vcmp.eq.f32.partialorder %v8025_v1, inf  ;;  %v3486_v57 = vmul.f32 1.442695, %v3369_v38  ;;  %v916_v21 = vsub.f32 %v8681_v54, %v852_v44 }
 0x2bf   :  { %v1630_v5 = vsub.f32 1.5, %v1629_v14  ;;  %v2555_v24 = vmax.f32 %v2491_v52, 0.0  ;;  %v2428_v42 = vmul.f32 2.0, %v1984_v63  ;;  %v4984_v10 = vpop.eup %4983  ;;  %v8082_v3 = vsel %vm3046_vm0, 0.0, %v8555_v8 }
 0x2c0   :  { %v1619_v29 = vmul.f32 %v4978_v20, %v1618_v43  ;;  %vm8084_vm5 = vcmp.eq.s32.totalorder %v2693_v12, 0  ;;  %v917_v22 = vsub.f32 %v8684_v47, %v853_v28  ;;  %v3892_v50 = vmul.f32 %v4982_v32, %v8016_v11  ;;  %v411_v43 = vpop.f32.mrf.mxu0 }
 0x2c1   :  { %v4986_v60 = vpop.eup %4985  ;;  %v1631_v37 = vmul.f32 %v4980_v6, %v1630_v5  ;;  %4989 = vpow2.f32 %v3486_v57  ;;  %v4037_v53 = vmul.f32 %v6010_v0, %v2555_v24  ;;  %vm1635_vm6 = vcmp.eq.f32.partialorder %v8025_v1, 0.0  ;;  %v524_v24 = vpop.f32.mrf.mxu1 }
 0x2c2   :  { %v1620_v34 = vmul.f32 %v1619_v29, %v8023_v26  ;;  %v8093_v20 = vmax.f32 %v916_v21, 0.0  ;;  %v8095_v17 = vmax.f32 %v917_v22, 0.0  ;;  %v4988_v35 = vpop.eup %4987  ;;  %v1636_v33 = vand.u32 2147483648, %v8025_v1 }
 0x2c3   :  { %v1632_v45 = vmul.f32 %v1631_v37, %v8025_v1  ;;  %v4154_v19 = vmul.f32 1.442695, %v4037_v53  ;;  %v2492_v11 = vsub.f32 %v7620_v30, %v2428_v42  ;;  %v3560_v12 = vmul.f32 %v4984_v10, %v8082_v3  ;;  %v2100_v37 = vpop.f32.mrf.mxu3 }
 0x2c4   :  { %v1622_v6 = vsel %vm1621_vm2, %v8023_v26, %v1620_v34  ;;  %v8107_v13 = vsel %vm8084_vm5, 0.0, %v8552_v2  ;;  %4991 = vrsqrt.f32 %v8093_v20  ;;  %v3955_v38 = vadd.f32 %v8062_v36, %v3892_v50 }
 0x2c5   :  { %v1625_v30 = vsel %vm1623_vm3, %v1624_v58, %v1622_v6  ;;  %v4228_v44 = vmul.f32 %v4986_v60, %v8082_v3  ;;  %v1634_v28 = vsel %vm1633_vm4, %v8025_v1, %v1632_v45  ;;  %v3893_v63 = vmul.f32 %v4988_v35, %v8040_v15 }
 0x2c6   :  { %v3702_v14 = vmul.f32 %v6026_v49, %v1625_v30  ;;  %v1637_v52 = vsel %vm1635_vm6, %v1636_v33, %v1634_v28  ;;  %4993 = vrsqrt.f32 %v8095_v17  ;;  %v2556_v26 = vmax.f32 %v2492_v11, 0.0 }
 0x2c7   :  { %v4990_v36 = vpop.eup %4989  ;;  %v3703_v32 = vmul.f32 %v6026_v49, %v1637_v52  ;;  %4995 = vpow2.f32 %v4154_v19  ;;  %v2595_v58 = vadd.s32 216, %v5857_v7  ;;  %v8128_v57 = vadd.f32 %v5821_v55, %v8043_v46  ;;  %v1987_v55 = vpop.f32.mrf.mxu2  ;;  %v8685_v52 = vld [vmem:[#allocation38_spill] sm:$0xff] }
 0x2c8   :  { %v3623_v15 = vadd.f32 %v8070_v41, %v3560_v12  ;;  %v3818_v5 = vmul.f32 1.442695, %v3702_v14  ;;  %v3370_v1 = vmul.f32 %v5925_v56, %v8093_v20  ;;  %v3956_v54 = vadd.f32 %v3955_v38, %v3893_v63 }
 0x2c9   :  { %v4291_v21 = vadd.f32 %v4290_v4, %v4228_v44  ;;  %v3820_v42 = vmul.f32 1.442695, %v3703_v32  ;;  %v4038_v10 = vmul.f32 %v6010_v0, %v2556_v26  ;;  %v3561_v27 = vmul.f32 %v4990_v36, %v8107_v13 }
 0x2ca   :  { %v4992_v29 = vpop.eup %4991  ;;  %4997 = vpow2.f32 %v3818_v5  ;;  %v3488_v47 = vmul.f32 1.442695, %v3370_v1  ;;  %v2429_v22 = vmul.f32 2.0, %v2097_v39  ;;  %v1648_v41 = vand.u32 2147483648, %v8093_v20 }
 0x2cb   :  { %v1639_v46 = vmul.f32 %v4992_v29, %v8093_v20  ;;  %v2694_v60 = vsub.s32 %v2595_v58, %v5813_v51  ;;  %v4156_v50 = vmul.f32 1.442695, %v4038_v10  ;;  %v8138_v4 = vadd.f32 %v3623_v15, %v3561_v27  ;;  %v527_v27 = vpop.f32.mrf.mxu1 }
 0x2cc   :  { %v4994_v53 = vpop.eup %4993  ;;  %4999 = vpow2.f32 %v3820_v42  ;;  %v1660_v34 = vand.u32 2147483648, %v8095_v17  ;;  %v2493_v35 = vsub.f32 %v7634_v25, %v2429_v22  ;;  %v2695_v19 = vsub.s32 %v2595_v58, %v5860_v9  ;;  %v8686_v42 = vld [vmem:[#allocation26_spill] sm:$0xff] }
 0x2cd   :  { %v4996_v45 = vpop.eup %4995  ;;  %v1640_v33 = vmul.f32 %v4992_v29, %v1639_v46  ;;  %v1651_v39 = vmul.f32 %v4994_v53, %v8095_v17  ;;  %5001 = vpow2.f32 %v3488_v47  ;;  %vm1645_vm7 = vcmp.eq.f32.partialorder %v8093_v20, inf }
 0x2ce   :  { %5003 = vpow2.f32 %v4156_v50  ;;  %v2557_v11 = vmax.f32 %v2493_v35, 0.0  ;;  %v3371_v6 = vmul.f32 %v5925_v56, %v8095_v17  ;;  %v854_v12 = vmul.f32 2.0, %v411_v43  ;;  %v414_v43 = vpop.f32.mrf.mxu0 }
 0x2cf   :  { %v1641_v38 = vmul.f32 0.5, %v1640_v33  ;;  %v1652_v30 = vmul.f32 %v4994_v53, %v1651_v39  ;;  %vm1647_vm8 = vcmp.eq.f32.partialorder %v8093_v20, 0.0  ;;  %vm3048_vm9 = vcmp.eq.s32.totalorder %v2694_v60, 128  ;;  %v1990_v33 = vpop.f32.mrf.mxu2 }
 0x2d0   :  { %v855_v25 = vmul.f32 2.0, %v524_v24  ;;  %v4998_v44 = vpop.eup %4997  ;;  %v4229_v28 = vmul.f32 %v4996_v45, %v8107_v13  ;;  %vm1657_vm10 = vcmp.eq.f32.partialorder %v8095_v17, inf  ;;  %v3490_v63 = vmul.f32 1.442695, %v3371_v6  ;;  %v2103_v6 = vpop.f32.mrf.mxu3 }
 0x2d1   :  { %v4039_v14 = vmul.f32 %v6010_v0, %v2557_v11  ;;  %v918_v36 = vsub.f32 %v8685_v52, %v854_v12  ;;  %v3894_v32 = vmul.f32 %v4998_v44, %v8082_v3  ;;  %v1653_v26 = vmul.f32 0.5, %v1652_v30 }
 0x2d2   :  { %v1642_v58 = vsub.f32 1.5, %v1641_v38  ;;  %vm1659_vm11 = vcmp.eq.f32.partialorder %v8095_v17, 0.0  ;;  %vm2985_vm12 = vcmp.eq.s32.totalorder %v2695_v19, 0  ;;  %v5000_v15 = vpop.eup %4999  ;;  %v8155_v5 = vsel %vm3048_vm9, 0.0, %v8555_v8 }
 0x2d3   :  { %v4158_v1 = vmul.f32 1.442695, %v4039_v14  ;;  %v8157_v24 = vmax.f32 %v918_v36, 0.0  ;;  %v919_v10 = vsub.f32 %v8686_v42, %v855_v25  ;;  %v5002_v47 = vpop.eup %5001  ;;  %v4292_v22 = vadd.f32 %v4291_v21, %v4229_v28 }
 0x2d4   :  { %v1643_v46 = vmul.f32 %v4992_v29, %v1642_v58  ;;  %v1654_v3 = vsub.f32 1.5, %v1653_v26  ;;  %5005 = vpow2.f32 %v3490_v63  ;;  %v5004_v60 = vpop.eup %5003  ;;  %v3957_v50 = vadd.f32 %v3956_v54, %v3894_v32 }
 0x2d5   :  { %v8161_v35 = vsel %vm2985_vm12, 0.0, %v8552_v2  ;;  %5007 = vpow2.f32 %v4158_v1  ;;  %v2430_v45 = vmul.f32 2.0, %v1987_v55  ;;  %v3895_v39 = vmul.f32 %v5000_v15, %v8107_v13 }
 0x2d6   :  { %v1644_v19 = vmul.f32 %v1643_v46, %v8093_v20  ;;  %v1655_v11 = vmul.f32 %v4994_v53, %v1654_v3  ;;  %5009 = vrsqrt.f32 %v8157_v24  ;;  %v8167_v21 = vmul.f32 %v5002_v47, %v8155_v5  ;;  %v530_v47 = vpop.f32.mrf.mxu1 }
 0x2d7   :  { %v8169_v29 = vmax.f32 %v919_v10, 0.0  ;;  %v2494_v54 = vsub.f32 %v7541_v48, %v2430_v45  ;;  %v2596_v12 = vadd.s32 224, %v5857_v7  ;;  %v4230_v13 = vmul.f32 %v5004_v60, %v8155_v5  ;;  %v1993_v45 = vpop.f32.mrf.mxu2 }
 0x2d8   :  { %v1646_v55 = vsel %vm1645_vm7, %v8093_v20, %v1644_v19  ;;  %v1656_v53 = vmul.f32 %v1655_v11, %v8095_v17  ;;  %v2431_v38 = vmul.f32 2.0, %v2100_v37  ;;  %v8178_v30 = vadd.f32 %v3957_v50, %v3895_v39 }
 0x2d9   :  { %v1649_v25 = vsel %vm1647_vm8, %v1648_v41, %v1646_v55  ;;  %v2558_v44 = vmax.f32 %v2494_v54, 0.0  ;;  %v2696_v48 = vsub.s32 %v2596_v12, %v5813_v51  ;;  %v2697_v37 = vsub.s32 %v2596_v12, %v5860_v9  ;;  %v2106_v12 = vpop.f32.mrf.mxu3 }
 0x2da   :  { %v5006_v28 = vpop.eup %5005  ;;  %v3704_v63 = vmul.f32 %v6026_v49, %v1649_v25  ;;  %v1658_v14 = vsel %vm1657_vm10, %v8095_v17, %v1656_v53  ;;  %v2495_v52 = vsub.f32 %v7549_v16, %v2431_v38  ;;  %5011 = vrsqrt.f32 %v8169_v29  ;;  %v417_v16 = vpop.f32.mrf.mxu0 }
 0x2db   :  { %v5008_v36 = vpop.eup %5007  ;;  %v1661_v20 = vsel %vm1659_vm11, %v1660_v34, %v1658_v14  ;;  %v4040_v41 = vmul.f32 %v6010_v0, %v2558_v44  ;;  %v856_v32 = vmul.f32 2.0, %v414_v43  ;;  %v4293_v15 = vadd.f32 %v4292_v22, %v4230_v13 }
 0x2dc   :  { %v8197_v26 = vpop.eup %5009  ;;  %v3822_v58 = vmul.f32 1.442695, %v3704_v63  ;;  %v3705_v1 = vmul.f32 %v6026_v49, %v1661_v20  ;;  %vm3050_vm13 = vcmp.eq.s32.totalorder %v2696_v48, 128  ;;  %v8201_v42 = vmul.f32 %v5006_v28, %v8161_v35 }
 0x2dd   :  { %v1663_v17 = vmul.f32 %v8197_v26, %v8157_v24  ;;  %v4160_v34 = vmul.f32 1.442695, %v4040_v41  ;;  %v2559_v10 = vmax.f32 %v2495_v52, 0.0  ;;  %v4231_v43 = vmul.f32 %v5008_v36, %v8161_v35 }
 0x2de   :  { %5013 = vpow2.f32 %v3822_v58  ;;  %v3824_v46 = vmul.f32 1.442695, %v3705_v1  ;;  %vm8206_vm14 = vcmp.eq.s32.totalorder %v2697_v37, 0  ;;  %v8211_v22 = vsel %vm3050_vm13, 0.0, %v8555_v8 }
 0x2df   :  { %5015 = vpow2.f32 %v4160_v34  ;;  %v4041_v60 = vmul.f32 %v6010_v0, %v2559_v10  ;;  %v920_v50 = vsub.f32 %v7340_v59, %v856_v32  ;;  %v1664_v39 = vmul.f32 %v8197_v26, %v1663_v17 }
 0x2e0   :  { %v857_v19 = vmul.f32 2.0, %v527_v27  ;;  %v2432_v11 = vmul.f32 2.0, %v1990_v33  ;;  %v8217_v54 = vadd.s32 232, %v5857_v7  ;;  %v8219_v55 = vpop.eup %5011  ;;  %5017 = vpow2.f32 %v3824_v46 }
 0x2e1   :  { %v4162_v13 = vmul.f32 1.442695, %v4041_v60  ;;  %v8221_v53 = vmax.f32 %v920_v50, 0.0  ;;  %v2433_v38 = vmul.f32 2.0, %v2103_v6  ;;  %v858_v27 = vmul.f32 2.0, %v417_v16  ;;  %v1996_v50 = vpop.f32.mrf.mxu2 }
 0x2e2   :  { %v921_v25 = vsub.f32 %v7343_v40, %v857_v19  ;;  %v2496_v59 = vsub.f32 %v7839_v62, %v2432_v11  ;;  %v2698_v44 = vsub.s32 %v8217_v54, %v5813_v51  ;;  %v8230_v33 = vsel %vm8206_vm14, 0.0, %v8552_v2  ;;  %v420_v58 = vpop.f32.mrf.mxu0  ;;  %v2109_v19 = vpop.f32.mrf.mxu3 }
 0x2e3   :  { %v2497_v48 = vsub.f32 %v7842_v61, %v2433_v38  ;;  %v859_v28 = vmul.f32 2.0, %v530_v47  ;;  %v2434_v63 = vmul.f32 2.0, %v1993_v45  ;;  %v4294_v52 = vadd.f32 %v4293_v15, %v4231_v43  ;;  %v8689_v38 = vld [vmem:[#allocation15_spill] sm:$0xff] }
 0x2e4   :  { %v5014_v14 = vpop.eup %5013  ;;  %v8235_v40 = vmul.f32 %v8219_v55, %v8169_v29  ;;  %5019 = vpow2.f32 %v4162_v13  ;;  %v2560_v62 = vmax.f32 %v2496_v59, 0.0  ;;  %v8237_v37 = vmax.f32 %v921_v25, 0.0 }
 0x2e5   :  { %v5016_v6 = vpop.eup %5015  ;;  %vm3052_vm15 = vcmp.eq.s32.totalorder %v2698_v44, 128  ;;  %v2561_v36 = vmax.f32 %v2497_v48, 0.0  ;;  %v922_v20 = vsub.f32 %v7404_v18, %v858_v27  ;;  %v8241_v41 = vmul.f32 %v5014_v14, %v8155_v5  ;;  %v533_v18 = vpop.f32.mrf.mxu1 }
 0x2e6   :  { %v8243_v61 = vmul.f32 0.5, %v1664_v39  ;;  %5021 = vrsqrt.f32 %v8221_v53  ;;  %v4042_v32 = vmul.f32 %v6010_v0, %v2560_v62  ;;  %v5018_v15 = vpop.eup %5017  ;;  %v4232_v1 = vmul.f32 %v5016_v6, %v8211_v22  ;;  %v8691_v62 = vld [vmem:[#allocation27_spill] sm:$0xff] }
 0x2e7   :  { %v4043_v16 = vmul.f32 %v6010_v0, %v2561_v36  ;;  %v923_v17 = vsub.f32 %v7411_v23, %v859_v28  ;;  %v2498_v34 = vsub.f32 %v8060_v31, %v2434_v63  ;;  %v8252_v5 = vsel %vm3052_vm15, 0.0, %v8555_v8 }
 0x2e8   :  { %v4164_v10 = vmul.f32 1.442695, %v4042_v32  ;;  %v8254_v47 = vmax.f32 %v922_v20, 0.0  ;;  %v2435_v46 = vmul.f32 2.0, %v2106_v12  ;;  %5023 = vrsqrt.f32 %v8237_v37 }
 0x2e9   :  { %v4166_v43 = vmul.f32 1.442695, %v4043_v16  ;;  %v2562_v3 = vmax.f32 %v2498_v34, 0.0  ;;  %v860_v60 = vmul.f32 2.0, %v420_v58  ;;  %v8258_v39 = vmul.f32 %v5018_v15, %v8161_v35  ;;  %v8690_v35 = vld [vmem:[#allocation17_spill] sm:$0xff]  ;;  %v8692_v58 = vld [vmem:[#allocation28_spill] sm:$0xff] }
 0x2ea   :  { %v5020_v45 = vpop.eup %5019  ;;  %5025 = vpow2.f32 %v4164_v10  ;;  %v2499_v23 = vsub.f32 %v8128_v57, %v2435_v46  ;;  %v861_v31 = vmul.f32 2.0, %v533_v18  ;;  %v8261_v11 = vadd.f32 %v4294_v52, %v4232_v1 }
 0x2eb   :  { %v8263_v13 = vmax.f32 %v923_v17, 0.0  ;;  %v4044_v12 = vmul.f32 %v6010_v0, %v2562_v3  ;;  %v924_v25 = vsub.f32 %v8689_v38, %v860_v60  ;;  %5027 = vrsqrt.f32 %v8254_v47 }
 0x2ec   :  { %v8267_v59 = vpop.eup %5021  ;;  %v2563_v44 = vmax.f32 %v2499_v23, 0.0  ;;  %v925_v27 = vsub.f32 %v8690_v35, %v861_v31  ;;  %v2436_v48 = vmul.f32 2.0, %v1996_v50  ;;  %5029 = vpow2.f32 %v4166_v43 }
 0x2ed   :  { %v4168_v57 = vmul.f32 1.442695, %v4044_v12  ;;  %v2437_v28 = vmul.f32 2.0, %v2109_v19  ;;  %v2598_v63 = vadd.s32 240, %v5857_v7  ;;  %v8273_v52 = vmax.f32 %v924_v25, 0.0 }
 0x2ee   :  { %v4045_v14 = vmul.f32 %v6010_v0, %v2563_v44  ;;  %v2500_v6 = vsub.f32 %v8691_v62, %v2436_v48  ;;  %v2599_v36 = vadd.s32 248, %v5857_v7  ;;  %v8277_v20 = vpop.eup %5023  ;;  %5031 = vrsqrt.f32 %v8263_v13 }
 0x2ef   :  { %v8280_v32 = vmax.f32 %v925_v27, 0.0  ;;  %v2501_v15 = vsub.f32 %v8692_v58, %v2437_v28  ;;  %v2699_v1 = vsub.s32 %v8217_v54, %v5860_v9  ;;  %v2700_v18 = vsub.s32 %v2598_v63, %v5813_v51 }
 0x2f0   :  { %v5026_v16 = vpop.eup %5025  ;;  %v4170_v17 = vmul.f32 1.442695, %v4045_v14  ;;  %v2564_v34 = vmax.f32 %v2500_v6, 0.0  ;;  %v2701_v10 = vsub.s32 %v2598_v63, %v5860_v9  ;;  %v4233_v46 = vmul.f32 %v5020_v45, %v8230_v33 }
 0x2f1   :  { %5033 = vpow2.f32 %v4168_v57  ;;  %v2565_v43 = vmax.f32 %v2501_v15, 0.0  ;;  %v2702_v3 = vsub.s32 %v2599_v36, %v5813_v51  ;;  %v8289_v60 = vpop.eup %5027  ;;  %v2703_v54 = vsub.s32 %v2599_v36, %v5860_v9 }
 0x2f2   :  { %5035 = vrsqrt.f32 %v8273_v52  ;;  %v4046_v50 = vmul.f32 %v6010_v0, %v2564_v34  ;;  %vm2989_vm1 = vcmp.eq.s32.totalorder %v2699_v1, 0  ;;  %v5030_v23 = vpop.eup %5029  ;;  %v8296_v31 = vmul.f32 %v8267_v59, %v8221_v53 }
 0x2f3   :  { %v4234_v45 = vmul.f32 %v5026_v16, %v8252_v5  ;;  %5037 = vrsqrt.f32 %v8280_v32  ;;  %v4047_v19 = vmul.f32 %v6010_v0, %v2565_v43  ;;  %vm8301_vm2 = vcmp.eq.s32.totalorder %v2701_v10, 0 }
 0x2f4   :  { %5039 = vpow2.f32 %v4170_v17  ;;  %v4172_v12 = vmul.f32 1.442695, %v4046_v50  ;;  %vm8305_vm3 = vcmp.eq.s32.totalorder %v2700_v18, 128  ;;  %v8309_v25 = vpop.eup %5031  ;;  %vm8311_vm0 = vcmp.eq.s32.totalorder %v2703_v54, 0 }
 0x2f5   :  { %v4174_v44 = vmul.f32 1.442695, %v4047_v19  ;;  %vm8315_vm4 = vcmp.eq.s32.totalorder %v2702_v3, 128  ;;  %v8320_v0 = vsel %vm2989_vm1, 0.0, %v8552_v2  ;;  %v3372_v48 = vmul.f32 %v5925_v56, %v8157_v24 }
 0x2f6   :  { %5041 = vpow2.f32 %v4172_v12  ;;  %v3373_v57 = vmul.f32 %v5925_v56, %v8169_v29  ;;  %v3374_v28 = vmul.f32 %v5925_v56, %v8221_v53  ;;  %v3375_v14 = vmul.f32 %v5925_v56, %v8237_v37 }
 0x2f7   :  { %v5034_v63 = vpop.eup %5033  ;;  %5043 = vpow2.f32 %v4174_v44  ;;  %v3376_v62 = vmul.f32 %v5925_v56, %v8254_v47  ;;  %v3377_v6 = vmul.f32 %v5925_v56, %v8263_v13  ;;  %v3378_v58 = vmul.f32 %v5925_v56, %v8273_v52 }
 0x2f8   :  { %v8334_v36 = vpop.eup %5035  ;;  %v3379_v15 = vmul.f32 %v5925_v56, %v8280_v32  ;;  %v3492_v1 = vmul.f32 1.442695, %v3372_v48  ;;  %v3494_v16 = vmul.f32 1.442695, %v3373_v57  ;;  %v8345_v34 = vsel %vm8305_vm3, 0.0, %v8555_v8 }
 0x2f9   :  { %v8340_v17 = vpop.eup %5037  ;;  %v3496_v18 = vmul.f32 1.442695, %v3374_v28  ;;  %v3498_v10 = vmul.f32 1.442695, %v3375_v14  ;;  %v3625_v43 = vadd.f32 %v8138_v4, %v8167_v21  ;;  %v8352_v50 = vsel %vm8301_vm2, 0.0, %v8552_v2 }
 0x2fa   :  { %v5040_v3 = vpop.eup %5039  ;;  %v8357_v56 = vsel %vm8315_vm4, 0.0, %v8555_v8  ;;  %5045 = vpow2.f32 %v3492_v1  ;;  %v3500_v54 = vmul.f32 1.442695, %v3376_v62  ;;  %v8362_v19 = vsel %vm8311_vm0, 0.0, %v8552_v2 }
 0x2fb   :  { %5047 = vpow2.f32 %v3494_v16  ;;  %v3502_v4 = vmul.f32 1.442695, %v3377_v6  ;;  %v3504_v21 = vmul.f32 1.442695, %v3378_v58  ;;  %v3506_v38 = vmul.f32 1.442695, %v3379_v15 }
 0x2fc   :  { %v5042_v12 = vpop.eup %5041  ;;  %5049 = vpow2.f32 %v3496_v18  ;;  %v4296_v9 = vadd.f32 %v8261_v11, %v4233_v46  ;;  %v1666_v44 = vsub.f32 1.5, %v8243_v61  ;;  %v3626_v8 = vadd.f32 %v3625_v43, %v8201_v42 }
 0x2fd   :  { %v5044_v27 = vpop.eup %5043  ;;  %5051 = vpow2.f32 %v3498_v10  ;;  %v4235_v48 = vmul.f32 %v5030_v23, %v8320_v0  ;;  %v4236_v35 = vmul.f32 %v5034_v63, %v8345_v34  ;;  %v4237_v2 = vmul.f32 %v5040_v3, %v8352_v50 }
 0x2fe   :  { %5053 = vpow2.f32 %v3500_v54  ;;  %v4297_v57 = vadd.f32 %v4296_v9, %v4234_v45  ;;  %v1667_v28 = vmul.f32 %v8197_v26, %v1666_v44  ;;  %v4238_v14 = vmul.f32 %v5042_v12, %v8357_v56 }
 0x2ff   :  { %5055 = vpow2.f32 %v3502_v4  ;;  %vm1669_vm5 = vcmp.eq.f32.partialorder %v8157_v24, inf  ;;  %v1676_v61 = vmul.f32 %v8219_v55, %v8235_v40  ;;  %vm1671_vm6 = vcmp.eq.f32.partialorder %v8157_v24, 0.0 }
 0x300   :  { %v5046_v11 = vpop.eup %5045  ;;  %5057 = vpow2.f32 %v3504_v21  ;;  %v4298_v42 = vadd.f32 %v4297_v57, %v4235_v48  ;;  %v1668_v46 = vmul.f32 %v1667_v28, %v8157_v24  ;;  %v4239_v26 = vmul.f32 %v5044_v27, %v8362_v19 }
 0x301   :  { %v5048_v23 = vpop.eup %5047  ;;  %5059 = vpow2.f32 %v3506_v38  ;;  %v3564_v45 = vmul.f32 %v5046_v11, %v8211_v22  ;;  %v1677_v63 = vmul.f32 0.5, %v1676_v61  ;;  %v1672_v40 = vand.u32 2147483648, %v8157_v24 }
 0x302   :  { %v5050_v62 = vpop.eup %5049  ;;  %v4299_v6 = vadd.f32 %v4298_v42, %v4236_v35  ;;  %v1670_v58 = vsel %vm1669_vm5, %v8157_v24, %v1668_v46  ;;  %v1688_v15 = vmul.f32 %v8267_v59, %v8296_v31  ;;  %v3565_v16 = vmul.f32 %v5048_v23, %v8230_v33 }
 0x303   :  { %v5052_v1 = vpop.eup %5051  ;;  %v3566_v18 = vmul.f32 %v5050_v62, %v8252_v5  ;;  %v3627_v10 = vadd.f32 %v3626_v8, %v3564_v45  ;;  %v1678_v43 = vsub.f32 1.5, %v1677_v63  ;;  %vm1681_vm7 = vcmp.eq.f32.partialorder %v8169_v29, inf }
 0x304   :  { %v5054_v3 = vpop.eup %5053  ;;  %v4300_v54 = vadd.f32 %v4299_v6, %v4237_v2  ;;  %vm1683_vm8 = vcmp.eq.f32.partialorder %v8169_v29, 0.0  ;;  %v1689_v4 = vmul.f32 0.5, %v1688_v15  ;;  %v8389_v38 = vsel %vm1671_vm6, %v1672_v40, %v1670_v58 }
 0x305   :  { %v5056_v21 = vpop.eup %5055  ;;  %v3628_v12 = vadd.f32 %v3627_v10, %v3565_v16  ;;  %v1679_v31 = vmul.f32 %v8219_v55, %v1678_v43  ;;  %v1684_v9 = vand.u32 2147483648, %v8169_v29  ;;  %v3567_v27 = vmul.f32 %v5052_v1, %v8320_v0 }
 0x306   :  { %v5058_v44 = vpop.eup %5057  ;;  %v4301_v8 = vadd.f32 %v4300_v54, %v4238_v14  ;;  %v1690_v48 = vsub.f32 1.5, %v1689_v4  ;;  %vm1693_vm9 = vcmp.eq.f32.partialorder %v8221_v53, inf  ;;  %v3568_v2 = vmul.f32 %v5054_v3, %v8345_v34 }
 0x307   :  { %v5060_v35 = vpop.eup %5059  ;;  %v3629_v57 = vadd.f32 %v3628_v12, %v3566_v18  ;;  %v1680_v28 = vmul.f32 %v1679_v31, %v8169_v29  ;;  %v1699_v24 = vmul.f32 %v8277_v20, %v8237_v37  ;;  %v3569_v55 = vmul.f32 %v5056_v21, %v8352_v50 }
 0x308   :  { %v4302_v61 = vadd.f32 %v4301_v8, %v4239_v26  ;;  %v1691_v11 = vmul.f32 %v8267_v59, %v1690_v48  ;;  %vm1695_vm10 = vcmp.eq.f32.partialorder %v8221_v53, 0.0  ;;  %v1696_v46 = vand.u32 2147483648, %v8221_v53 }
 0x309   :  { %v3630_v14 = vadd.f32 %v3629_v57, %v3567_v27  ;;  %v1682_v42 = vsel %vm1681_vm7, %v8169_v29, %v1680_v28  ;;  %v1700_v23 = vmul.f32 %v8277_v20, %v1699_v24  ;;  %v3570_v45 = vmul.f32 %v5058_v44, %v8357_v56 }
 0x30a   :  { %v3571_v63 = vmul.f32 %v5060_v35, %v8362_v19  ;;  %4303 = vadd.xlane.f32.xlu0 %v4302_v61  ;;  %v1692_v26 = vmul.f32 %v1691_v11, %v8221_v53  ;;  %v1711_v59 = vmul.f32 %v8289_v60, %v8254_v47  ;;  %vm1705_vm11 = vcmp.eq.f32.partialorder %v8237_v37, inf }
 0x30b   :  { %v3631_v62 = vadd.f32 %v3630_v14, %v3568_v2  ;;  %v1701_v6 = vmul.f32 0.5, %v1700_v23  ;;  %vm1707_vm12 = vcmp.eq.f32.partialorder %v8237_v37, 0.0  ;;  %v1685_v58 = vsel %vm1683_vm8, %v1684_v9, %v1682_v42 }
 0x30c   :  { %v1694_v40 = vsel %vm1693_vm9, %v8221_v53, %v1692_v26  ;;  %v1712_v15 = vmul.f32 %v8289_v60, %v1711_v59  ;;  %v1723_v1 = vmul.f32 %v8309_v25, %v8263_v13  ;;  %v1708_v10 = vand.u32 2147483648, %v8237_v37 }
 0x30d   :  { %v3632_v16 = vadd.f32 %v3631_v62, %v3569_v55  ;;  %v1702_v18 = vsub.f32 1.5, %v1701_v6  ;;  %vm1717_vm13 = vcmp.eq.f32.partialorder %v8254_v47, inf  ;;  %vm1719_vm14 = vcmp.eq.f32.partialorder %v8254_v47, 0.0 }
 0x30e   :  { %v1713_v43 = vmul.f32 0.5, %v1712_v15  ;;  %v1720_v29 = vand.u32 2147483648, %v8254_v47  ;;  %v1724_v3 = vmul.f32 %v8309_v25, %v1723_v1  ;;  %v1697_v4 = vsel %vm1695_vm10, %v1696_v46, %v1694_v40 }
 0x30f   :  { %v3633_v54 = vadd.f32 %v3632_v16, %v3570_v45  ;;  %v1703_v21 = vmul.f32 %v8277_v20, %v1702_v18  ;;  %v1735_v12 = vmul.f32 %v8334_v36, %v8273_v52  ;;  %vm1729_vm15 = vcmp.eq.f32.partialorder %v8263_v13, inf }
 0x310   :  { %v1714_v31 = vsub.f32 1.5, %v1713_v43  ;;  %v1725_v9 = vmul.f32 0.5, %v1724_v3  ;;  %vm1731_vm1 = vcmp.eq.f32.partialorder %v8263_v13, 0.0  ;;  %v1747_v53 = vmul.f32 %v8340_v17, %v8280_v32 }
 0x311   :  { %v3634_v44 = vadd.f32 %v3633_v54, %v3571_v63  ;;  %v1704_v27 = vmul.f32 %v1703_v21, %v8237_v37  ;;  %v1736_v8 = vmul.f32 %v8334_v36, %v1735_v12  ;;  %v1732_v35 = vand.u32 2147483648, %v8263_v13 }
 0x312   :  { %v1715_v48 = vmul.f32 %v8289_v60, %v1714_v31  ;;  %v1726_v20 = vsub.f32 1.5, %v1725_v9  ;;  %vm1741_vm2 = vcmp.eq.f32.partialorder %v8273_v52, inf  ;;  %vm1743_vm3 = vcmp.eq.f32.partialorder %v8273_v52, 0.0 }
 0x313   :  { %3635 = vadd.xlane.f32.xlu1 %v3634_v44  ;;  %v1706_v2 = vsel %vm1705_vm11, %v8237_v37, %v1704_v27  ;;  %v1737_v57 = vmul.f32 0.5, %v1736_v8  ;;  %v1744_v28 = vand.u32 2147483648, %v8273_v52  ;;  %v1748_v24 = vmul.f32 %v8340_v17, %v1747_v53 }
 0x314   :  { %v1709_v60 = vsel %vm1707_vm12, %v1708_v10, %v1706_v2  ;;  %v1716_v55 = vmul.f32 %v1715_v48, %v8254_v47  ;;  %v1727_v61 = vmul.f32 %v8309_v25, %v1726_v20  ;;  %v3706_v11 = vmul.f32 %v6026_v49, %v8389_v38 }
 0x315   :  { %v1738_v14 = vsub.f32 1.5, %v1737_v57  ;;  %v1749_v42 = vmul.f32 0.5, %v1748_v24  ;;  %v3707_v46 = vmul.f32 %v6026_v49, %v1685_v58  ;;  %v3708_v23 = vmul.f32 %v6026_v49, %v1697_v4 }
 0x316   :  { %v1718_v45 = vsel %vm1717_vm13, %v8254_v47, %v1716_v55  ;;  %v1728_v37 = vmul.f32 %v1727_v61, %v8263_v13  ;;  %v3709_v63 = vmul.f32 %v6026_v49, %v1709_v60  ;;  %v3826_v26 = vmul.f32 1.442695, %v3706_v11 }
 0x317   :  { %v1721_v25 = vsel %vm1719_vm14, %v1720_v29, %v1718_v45  ;;  %v1739_v38 = vmul.f32 %v8334_v36, %v1738_v14  ;;  %v1750_v59 = vsub.f32 1.5, %v1749_v42  ;;  %v3828_v62 = vmul.f32 1.442695, %v3707_v46 }
 0x318   :  { %v1730_v6 = vsel %vm1729_vm15, %v8263_v13, %v1728_v37  ;;  %v3710_v58 = vmul.f32 %v6026_v49, %v1721_v25  ;;  %5061 = vpow2.f32 %v3826_v26  ;;  %v3830_v40 = vmul.f32 1.442695, %v3708_v23 }
 0x319   :  { %v1733_v15 = vsel %vm1731_vm1, %v1732_v35, %v1730_v6  ;;  %v1740_v1 = vmul.f32 %v1739_v38, %v8273_v52  ;;  %v1751_v47 = vmul.f32 %v8340_v17, %v1750_v59  ;;  %5063 = vpow2.f32 %v3828_v62 }
 0x31a   :  { %v3711_v36 = vmul.f32 %v6026_v49, %v1733_v15  ;;  %5065 = vpow2.f32 %v3830_v40  ;;  %v3832_v16 = vmul.f32 1.442695, %v3709_v63  ;;  %v3834_v18 = vmul.f32 1.442695, %v3710_v58 }
 0x31b   :  { %v1742_v10 = vsel %vm1741_vm2, %v8273_v52, %v1740_v1  ;;  %v1752_v43 = vmul.f32 %v1751_v47, %v8280_v32  ;;  %vm1753_vm0 = vcmp.eq.f32.partialorder %v8280_v32, inf  ;;  %v3959_v13 = vadd.f32 %v8178_v30, %v8241_v41 }
 0x31c   :  { %v1745_v17 = vsel %vm1743_vm3, %v1744_v28, %v1742_v10  ;;  %v1756_v29 = vand.u32 2147483648, %v8280_v32  ;;  %5067 = vpow2.f32 %v3832_v16  ;;  %v3836_v3 = vmul.f32 1.442695, %v3711_v36 }
 0x31d   :  { %v1754_v54 = vsel %vm1753_vm0, %v8280_v32, %v1752_v43  ;;  %vm1755_vm4 = vcmp.eq.f32.partialorder %v8280_v32, 0.0  ;;  %v3712_v4 = vmul.f32 %v6026_v49, %v1745_v17  ;;  %5069 = vpow2.f32 %v3834_v18 }
 0x31e   :  { %v5062_v21 = vpop.eup %5061  ;;  %v1757_v12 = vsel %vm1755_vm4, %v1756_v29, %v1754_v54  ;;  %v3960_v52 = vadd.f32 %v3959_v13, %v8258_v39  ;;  %5071 = vpow2.f32 %v3836_v3  ;;  %vm4319_vm5 = vcmp.eq.s32.totalorder %v5857_v7, 0 }
 0x31f   :  { %v5064_v31 = vpop.eup %5063  ;;  %v3713_v9 = vmul.f32 %v6026_v49, %v1757_v12  ;;  %v3838_v30 = vmul.f32 1.442695, %v3712_v4  ;;  %v3898_v41 = vmul.f32 %v5062_v21, %v8211_v22  ;;  %vm4320_vm6 = vcmp.eq.s32.totalorder %v5813_v51, 0 }
 0x320   :  { %v5066_v44 = vpop.eup %5065  ;;  %v3899_v27 = vmul.f32 %v5064_v31, %v8230_v33  ;;  %vm4325_vm7 = vcmp.eq.s32.totalorder %v5813_v51, 1  ;;  %vm4330_vm8 = vcmp.eq.s32.totalorder %v5813_v51, 2  ;;  %vm4321_vm9 = vmand %vm4319_vm5, %vm4320_vm6 }
 0x321   :  { %5073 = vpow2.f32 %v3838_v30  ;;  %v3840_v8 = vmul.f32 1.442695, %v3713_v9  ;;  %v3900_v32 = vmul.f32 %v5066_v44, %v8252_v5  ;;  %v3961_v53 = vadd.f32 %v3960_v52, %v3898_v41  ;;  %vm4326_vm10 = vmand %vm4319_vm5, %vm4325_vm7 }
 0x322   :  { %v5068_v48 = vpop.eup %5067  ;;  %vm4331_vm11 = vmand %vm4319_vm5, %vm4330_vm8 }
 0x323   :  { %v5070_v20 = vpop.eup %5069  ;;  %v3962_v35 = vadd.f32 %v3961_v53, %v3899_v27  ;;  %5075 = vpow2.f32 %v3840_v8  ;;  %v3901_v49 = vmul.f32 %v5068_v48, %v8320_v0 }
 0x324   :  { %v3902_v2 = vmul.f32 %v5070_v20, %v8345_v34  ;;  %v5072_v57 = vpop.eup %5071 }
 0x325   :  { %v3963_v22 = vadd.f32 %v3962_v35, %v3900_v32  ;;  %v3903_v24 = vmul.f32 %v5072_v57, %v8352_v50 }
 0x327   :  { %v5074_v39 = vpop.eup %5073  ;;  %v3964_v28 = vadd.f32 %v3963_v22, %v3901_v49 }
 0x328   :  { %v3904_v33 = vmul.f32 %v5074_v39, %v8357_v56 }
 0x329   :  { %v3965_v60 = vadd.f32 %v3964_v28, %v3902_v2  ;;  %v5076_v55 = vpop.eup %5075 }
 0x32a   :  { %v3905_v61 = vmul.f32 %v5076_v55, %v8362_v19 }
 0x32b   :  { %v3966_v5 = vadd.f32 %v3965_v60, %v3903_v24 }
 0x32d   :  { %v3967_v11 = vadd.f32 %v3966_v5, %v3904_v33 }
 0x32f   :  { %v3968_v14 = vadd.f32 %v3967_v11, %v3905_v61 }
 0x331   :  { %3969 = vadd.xlane.f32.xlu2 %v3968_v14 }
 0x37d   :  { %v4304_v63 = vpop.xlane.xlu0 %4303 }
 0x37e   :  { %v4305_v50 = vrot.slane %v4304_v63, 4 }
 0x380   :  { %v4306_v26 = vadd.f32 %v4305_v50, %v4304_v63 }
 0x382   :  { %v4307_v56 = vrot.slane %v4306_v26, 2 }
 0x384   :  { %v4308_v62 = vadd.f32 %v4307_v56, %v4306_v26 }
 0x386   :  { %v3636_v42 = vpop.xlane.xlu1 %3635  ;;  %v4309_v58 = vrot.slane %v4308_v62, 1 }
 0x387   :  { %v3637_v0 = vrot.slane %v3636_v42, 4 }
 0x388   :  { %v4310_v1 = vadd.f32 %v4309_v58, %v4308_v62 }
 0x389   :  { %v3638_v46 = vadd.f32 %v3637_v0, %v3636_v42 }
 0x38b   :  { %v3639_v34 = vrot.slane %v3638_v46, 2 }
 0x38d   :  { %v3640_v23 = vadd.f32 %v3639_v34, %v3638_v46 }
 0x38f   :  { %v3641_v45 = vrot.slane %v3640_v23, 1 }
 0x391   :  { %v3642_v37 = vadd.f32 %v3641_v45, %v3640_v23 }
 0x393   :  { %4551 = vpush %v3642_v37 }
 0x3a4   :  { %v3970_v25 = vpop.xlane.xlu2 %3969 }
 0x3a5   :  { %v3971_v38 = vrot.slane %v3970_v25, 4 }
 0x3a7   :  { %v3972_v59 = vadd.f32 %v3971_v38, %v3970_v25 }
 0x3a9   :  { %v3973_v19 = vrot.slane %v3972_v59, 2 }
 0x3ab   :  { %v3974_v6 = vadd.f32 %v3973_v19, %v3972_v59 }
 0x3ad   :  { %v3975_v40 = vrot.slane %v3974_v6, 1 }
 0x3af   :  { %v3976_v15 = vadd.f32 %v3975_v40, %v3974_v6 }
 0x3b1   :  { %4553 = vpush %v3976_v15 }
 0x3b2   :  { %4555 = vpush %v4310_v1 }
 0x3c4   :  { %s4552_s1 = spop %4551 }
 0x3c5   :  { %v4323_v47 = vstv %s4552_s1 }
 0x3c6   :  { %v4324_v36 = vsel %vm4321_vm9, %v4323_v47, 0.0 }
 0x3e2   :  { %s4554_s18 = spop %4553 }
 0x3e3   :  { %v4328_v16 = vstv %s4554_s18  ;;  %s4556_s19 = spop %4555 }
 0x3e4   :  { %v4329_v7 = vsel %vm4326_vm10, %v4328_v16, %v4324_v36  ;;  %v4333_v18 = vstv %s4556_s19 }
 0x3e5   :  { %v4334_v10 = vsel %vm4331_vm11, %v4333_v18, %v4329_v7 }
 0x3e6   :  { %4335 = vst [vmem:[#allocation6] sm:$0xff] %v4334_v10 }
 0x3e7   :  { %4346 = dma.vmem_to_hbm [thread:$0]  %s4342_s0, 128, %s4344_s17, [#allocation4]  }
 0x3e8   :  { %5115 = dma.done.wait [#allocation4], 128  }
 0x3e9   :  { %5116 = vsyncadd [#allocation4], 4294967168 }
 0x3ea   :  { %4351 = vsyncpa [#allocation4], 1 }
 0x3eb   :  { %4352 = vsyncpa [#allocation5], 1 }

</bundles_post_ra>
